<compile_context>
chip_gen: v5e
topology: v5e:2x2
jax: 0.10.0
libtpu: 0.0.40
codegen_flags: <defaults>
</compile_context>

<pallas_src>
import functools

import jax
import jax.numpy as jnp
from jax.experimental import pallas as pl
from jax.experimental.pallas import tpu as pltpu


def _gelu_exact(x):
    # PyTorch nn.GELU(approximate='none'): 0.5 * x * (1 + erf(x / sqrt(2)))
    return 0.5 * x * (1.0 + jax.lax.erf(x * jnp.float32(0.7071067811865476)))


def _layernorm(x, gamma, beta, eps=1e-5):
    mu = jnp.mean(x, axis=-1, keepdims=True)
    var = jnp.mean(jnp.square(x - mu), axis=-1, keepdims=True)
    return (x - mu) * jax.lax.rsqrt(var + eps) * gamma + beta


def flow_matching_kernel(
    z_ref, t_ref,
    wt1_ref, bt1_ref,            # time_embed Linear(1,32)       (f32, VPU path)
    wt2w1t_ref,                  # (wt2 @ w1t)        [32, H]    (f32)
    wlrw1_ref, b1c_ref,          # (wlr @ w1z)        [P, H] + folded bias
    g1_ref, be1_ref,             # LayerNorm 1
    w2_ref, b2_ref,              # main_net linear2   [H, H]     (bf16 MXU)
    g2_ref, be2_ref,             # LayerNorm 2
    wcomb_ref, bcomb_ref,        # (w3 @ winv)        [H, P], (b3 @ winv + binv)
    out_ref,
):
    f32 = jnp.float32

    z = z_ref[...]                               # [TB, P] f32
    t = t_ref[...]                               # [TB, 1] f32

    # time_embed: Linear(1,32) -> SiLU   (K=1 matmul as broadcast mul, VPU/EUP)
    h = t * wt1_ref[...] + bt1_ref[...]          # [TB, 32]
    h = h * jax.nn.sigmoid(h)                    # SiLU, f32

    # main_net linear1 with low_rank_proj AND time_embed[2] folded in:
    #   concat([z @ wlr + blr, h @ wt2 + bt2]) @ w1 + b1
    #     == z @ (wlr @ w1z) + h @ (wt2 @ w1t) + (b1 + blr @ w1z + bt2 @ w1t)
    x = (jnp.dot(z.astype(wlrw1_ref.dtype), wlrw1_ref[...],
                 preferred_element_type=f32)
         + jnp.dot(h.astype(wt2w1t_ref.dtype), wt2w1t_ref[...],
                   preferred_element_type=f32)
         + b1c_ref[...])                                                 # [TB, H]
    x = _layernorm(x, g1_ref[...], be1_ref[...])
    x = _gelu_exact(x)
    # Dropout(0.1): identity in eval mode.

    x = jnp.dot(x.astype(w2_ref.dtype), w2_ref[...],
                preferred_element_type=f32) + b2_ref[...]
    x = _layernorm(x, g2_ref[...], be2_ref[...])
    x = _gelu_exact(x)
    # Dropout(0.1): identity in eval mode.

    # main_net linear3 fused with inv_proj: x @ (w3 @ winv) + (b3 @ winv + binv)
    out_ref[...] = (jnp.dot(x.astype(wcomb_ref.dtype), wcomb_ref[...],
                            preferred_element_type=f32)
                    + bcomb_ref[...]).astype(out_ref.dtype)              # [TB, P]


def fuse_params(p, *, fused_dtype=jnp.float32, mxu_dtype=jnp.bfloat16):
    """Fold the torch-layout params into the kernel's fused layout.

    Fused weight *products* default to f32 (tighter accuracy, negligible MXU
    cost at these FLOP counts); the plain square w2 matmul uses bf16 operands.
    """
    (wt1, bt1, wt2, bt2, wlr, blr,
     w1z, w1t, b1, g1, be1,
     w2, b2, g2, be2,
     w3, b3, winv, binv) = p
    wt2w1t = (wt2 @ w1t).astype(fused_dtype)          # [32, H]
    wlrw1 = (wlr @ w1z).astype(fused_dtype)           # [P, H]
    b1c = b1 + bt2 @ w1t + blr @ w1z                  # [1, H]  (f32)
    wcomb = (w3 @ winv).astype(fused_dtype)           # [H, P]
    bcomb = b3 @ winv + binv                          # [1, P]  (f32)
    return (wt1, bt1, wt2w1t,
            wlrw1, b1c, g1, be1,
            w2.astype(mxu_dtype), b2, g2, be2,
            wcomb, bcomb)


def _padded_vmem_bytes(a):
    """Conservative per-buffer VMEM footprint (rounded up to (8,128) tiles)."""
    rows = a.shape[0] if a.ndim > 1 else 1
    cols = a.shape[-1]
    sub = 8 * max(1, 4 // a.dtype.itemsize)           # 8 for f32, 16 for bf16
    r = -(-rows // sub) * sub
    c = -(-cols // 128) * 128
    return r * c * a.dtype.itemsize


@functools.partial(jax.jit, static_argnames=("tile_b",))
def flow_matching_forward(z, t, fused_params, *, tile_b=128):
    """z: [B, P] f32, t: [B, 1] f32, fused_params: output of fuse_params."""
    B, P = z.shape
    grid = (pl.cdiv(B, tile_b),)       # ragged last block masked by Pallas

    def batched_spec(arr):
        return pl.BlockSpec((tile_b, arr.shape[1]), lambda i: (i, 0))

    def resident_spec(arr):
        # Weights/biases: full block, same block index every step -> DMA'd once,
        # stays resident in VMEM across the batch grid.
        return pl.BlockSpec(arr.shape, lambda i: (0,) * arr.ndim)

    in_specs = [batched_spec(z), batched_spec(t)] + [resident_spec(w) for w in fused_params]
    out_specs = pl.BlockSpec((tile_b, P), lambda i: (i, 0))

    H = fused_params[3].shape[1]          # wlrw1: [P, H]

    # VMEM budget: resident weights + double-buffered z/t/out tiles (+ margin),
    # clamped into [32 MiB, 128 MiB] so it never drops below the scoped default
    # but scales up before the v7x 32 MiB ceiling would bite.
    weight_bytes = sum(_padded_vmem_bytes(w) for w in fused_params)
    io_bytes = (tile_b * P * 4) * 2 + tile_b * 128 * 4
    vmem_est = 2 * (weight_bytes + io_bytes) + (4 << 20)
    vmem_limit = int(min(128 << 20, max(32 << 20, vmem_est)))

    # Cost estimate for the XLA scheduler (4 matmuls, sigmoid/erf/rsqrt
    # transcendentals, weight + activation bytes).
    flops = 2 * B * (P * H + 32 * H + H * H + H * P)
    transcendentals = B * (32 + 2 * H + 2)
    bytes_accessed = int(z.size * 4 + t.size * 4 + B * P * 4
                         + sum(int(w.size) * w.dtype.itemsize for w in fused_params))

    return pl.pallas_call(
        flow_matching_kernel,
        out_shape=jax.ShapeDtypeStruct((B, P), jnp.float32),
        grid=grid,
        in_specs=in_specs,
        out_specs=out_specs,
        compiler_params=pltpu.CompilerParams(
            dimension_semantics=("parallel",),       # megacore sharding on v7x
            vmem_limit_bytes=vmem_limit),
        cost_estimate=pl.CostEstimate(
            flops=flops, transcendentals=transcendentals,
            bytes_accessed=bytes_accessed),
    )(z, t, *fused_params)


# ---------------------------------------------------------------------------
# Parameter construction (deterministic, mirrors _init_weights: xavier_normal
# gain=0.02 for Linear weights, zeros for biases, ones/zeros for LayerNorm).
# Stored pre-transposed as [in, out].
# ---------------------------------------------------------------------------
def xavier_normal_T(key, fan_in, fan_out, gain=0.02):
    std = gain * (2.0 / (fan_in + fan_out)) ** 0.5
    return std * jax.random.normal(key, (fan_in, fan_out), jnp.float32)


def make_params(key, param_dim, hidden_dim, rank):
    ks = jax.random.split(key, 7)
    wt1 = xavier_normal_T(ks[0], 1, 32)                  # time_embed[0]
    bt1 = jnp.zeros((1, 32), jnp.float32)
    wt2 = xavier_normal_T(ks[1], 32, 64)                 # time_embed[2]
    bt2 = jnp.zeros((1, 64), jnp.float32)
    wlr = xavier_normal_T(ks[2], param_dim, rank)        # low_rank_proj
    blr = jnp.zeros((1, rank), jnp.float32)
    w1 = xavier_normal_T(ks[3], rank + 64, hidden_dim)   # main_net[0]
    w1z, w1t = w1[:rank], w1[rank:]
    b1 = jnp.zeros((1, hidden_dim), jnp.float32)
    g1 = jnp.ones((1, hidden_dim), jnp.float32)          # main_net[1] LayerNorm
    be1 = jnp.zeros((1, hidden_dim), jnp.float32)
    w2 = xavier_normal_T(ks[4], hidden_dim, hidden_dim)  # main_net[4]
    b2 = jnp.zeros((1, hidden_dim), jnp.float32)
    g2 = jnp.ones((1, hidden_dim), jnp.float32)          # main_net[5] LayerNorm
    be2 = jnp.zeros((1, hidden_dim), jnp.float32)
    w3 = xavier_normal_T(ks[5], hidden_dim, rank)        # main_net[8]
    b3 = jnp.zeros((1, rank), jnp.float32)
    winv = xavier_normal_T(ks[6], rank, param_dim)       # inv_proj
    binv = jnp.zeros((1, param_dim), jnp.float32)
    return (wt1, bt1, wt2, bt2, wlr, blr,
            w1z, w1t, b1, g1, be1,
            w2, b2, g2, be2,
            w3, b3, winv, binv)


def reference_forward(z, t, p):
    """Pure-JAX f32 reference with the original (unfused) module math."""
    (wt1, bt1, wt2, bt2, wlr, blr,
     w1z, w1t, b1, g1, be1,
     w2, b2, g2, be2,
     w3, b3, winv, binv) = p
    h = t * wt1 + bt1
    h = h * jax.nn.sigmoid(h)
    t_emb = h @ wt2 + bt2
    z_proj = z @ wlr + blr
    x = z_proj @ w1z + t_emb @ w1t + b1          # == concat([z_proj, t_emb]) @ w1
    x = _layernorm(x, g1, be1)
    x = _gelu_exact(x)
    x = x @ w2 + b2
    x = _layernorm(x, g2, be2)
    x = _gelu_exact(x)
    x = x @ w3 + b3
    return x @ winv + binv


if __name__ == "__main__":
    # Small shapes consistent with forward(): z [B, param_dim], t [B, 1].
    # B is intentionally not a multiple of the batch tile to exercise the
    # ragged (masked) last block; TILE_B=128 -> grid=2 (balanced on v7x's
    # two TensorCores, 128-multiple for v5e, single resident weight load).
    B, PARAM_DIM, HIDDEN_DIM, RANK = 200, 256, 128, 64
    TILE_B = 128

    root = jax.random.PRNGKey(0)
    k_params, k_z, k_t = jax.random.split(root, 3)
    params = make_params(k_params, PARAM_DIM, HIDDEN_DIM, RANK)
    fused = fuse_params(params)

    z = jax.random.normal(k_z, (B, PARAM_DIM), jnp.float32)
    t = jax.random.uniform(k_t, (B, 1), jnp.float32)

    out = flow_matching_forward(z, t, fused, tile_b=TILE_B)
    out = jax.block_until_ready(out)

    ref = reference_forward(z, t, params)
    assert out.shape == (B, PARAM_DIM)
    # f32 fused weight products + single bf16 MXU matmul => tighter tolerance
    # than v2 (reassociation + one bf16 cast remain).
    rel_l2 = jnp.linalg.norm(out - ref) / (jnp.linalg.norm(ref) + 1e-12)
    assert rel_l2 < 2e-2, f"relative L2 error too large: {rel_l2}"
    assert jnp.allclose(out, ref, atol=2e-5, rtol=1e-1), "kernel/reference mismatch"

    print("KERNEL_OK")
</pallas_src>

<mosaic_0001>
module attributes {stable_mosaic.version = 11 : i64} {
  func.func @flow_matching_kernel(%arg0: i32, %arg1: memref<128x256xf32, #tpu.memory_space<vmem>>, %arg2: memref<128x1xf32, #tpu.memory_space<vmem>>, %arg3: memref<1x32xf32, #tpu.memory_space<vmem>>, %arg4: memref<1x32xf32, #tpu.memory_space<vmem>>, %arg5: memref<32x128xf32, #tpu.memory_space<vmem>>, %arg6: memref<256x128xf32, #tpu.memory_space<vmem>>, %arg7: memref<1x128xf32, #tpu.memory_space<vmem>>, %arg8: memref<1x128xf32, #tpu.memory_space<vmem>>, %arg9: memref<1x128xf32, #tpu.memory_space<vmem>>, %arg10: memref<128x128xbf16, #tpu.memory_space<vmem>>, %arg11: memref<1x128xf32, #tpu.memory_space<vmem>>, %arg12: memref<1x128xf32, #tpu.memory_space<vmem>>, %arg13: memref<1x128xf32, #tpu.memory_space<vmem>>, %arg14: memref<128x256xf32, #tpu.memory_space<vmem>>, %arg15: memref<1x256xf32, #tpu.memory_space<vmem>>, %arg16: memref<128x256xf32, #tpu.memory_space<vmem>>) attributes {dimension_semantics = [#tpu.dimension_semantics<parallel>], iteration_bounds = array<i64: 2>, scalar_prefetch = 0 : i64, scratch_operands = 0 : i64, tpu.core_type = #tpu.core_type<tc>, window_params = [{transform_indices = @transform_0, window_bounds = array<i64: 128, 256>}, {transform_indices = @transform_1, window_bounds = array<i64: 128, 1>}, {pipeline_mode = #tpu.pipeline_mode<synchronous>, transform_indices = @transform_2, window_bounds = array<i64: 1, 32>}, {pipeline_mode = #tpu.pipeline_mode<synchronous>, transform_indices = @transform_3, window_bounds = array<i64: 1, 32>}, {pipeline_mode = #tpu.pipeline_mode<synchronous>, transform_indices = @transform_4, window_bounds = array<i64: 32, 128>}, {pipeline_mode = #tpu.pipeline_mode<synchronous>, transform_indices = @transform_5, window_bounds = array<i64: 256, 128>}, {pipeline_mode = #tpu.pipeline_mode<synchronous>, transform_indices = @transform_6, window_bounds = array<i64: 1, 128>}, {pipeline_mode = #tpu.pipeline_mode<synchronous>, transform_indices = @transform_7, window_bounds = array<i64: 1, 128>}, {pipeline_mode = #tpu.pipeline_mode<synchronous>, transform_indices = @transform_8, window_bounds = array<i64: 1, 128>}, {pipeline_mode = #tpu.pipeline_mode<synchronous>, transform_indices = @transform_9, window_bounds = array<i64: 128, 128>}, {pipeline_mode = #tpu.pipeline_mode<synchronous>, transform_indices = @transform_10, window_bounds = array<i64: 1, 128>}, {pipeline_mode = #tpu.pipeline_mode<synchronous>, transform_indices = @transform_11, window_bounds = array<i64: 1, 128>}, {pipeline_mode = #tpu.pipeline_mode<synchronous>, transform_indices = @transform_12, window_bounds = array<i64: 1, 128>}, {pipeline_mode = #tpu.pipeline_mode<synchronous>, transform_indices = @transform_13, window_bounds = array<i64: 128, 256>}, {pipeline_mode = #tpu.pipeline_mode<synchronous>, transform_indices = @transform_14, window_bounds = array<i64: 1, 256>}, {transform_indices = @transform_15, window_bounds = array<i64: 128, 256>}]} {
    %c0 = arith.constant 0 : index
    %c0_0 = arith.constant 0 : index
    %0 = vector.load %arg1[%c0, %c0_0] : memref<128x256xf32, #tpu.memory_space<vmem>>, vector<128x256xf32>
    %c0_1 = arith.constant 0 : index
    %c0_2 = arith.constant 0 : index
    %1 = vector.load %arg2[%c0_1, %c0_2] : memref<128x1xf32, #tpu.memory_space<vmem>>, vector<128x1xf32>
    %c0_3 = arith.constant 0 : index
    %c0_4 = arith.constant 0 : index
    %2 = vector.load %arg3[%c0_3, %c0_4] : memref<1x32xf32, #tpu.memory_space<vmem>>, vector<1x32xf32>
    %3 = vector.broadcast %1 : vector<128x1xf32> to vector<128x32xf32>
    %4 = vector.broadcast %2 : vector<1x32xf32> to vector<128x32xf32>
    %5 = arith.mulf %3, %4 : vector<128x32xf32>
    %c0_5 = arith.constant 0 : index
    %c0_6 = arith.constant 0 : index
    %6 = vector.load %arg4[%c0_5, %c0_6] : memref<1x32xf32, #tpu.memory_space<vmem>>, vector<1x32xf32>
    %7 = vector.broadcast %6 : vector<1x32xf32> to vector<128x32xf32>
    %8 = arith.addf %5, %7 : vector<128x32xf32>
    %9 = arith.negf %8 : vector<128x32xf32>
    %10 = math.exp %9 : vector<128x32xf32>
    %cst = arith.constant 1.000000e+00 : f32
    %11 = vector.broadcast %cst : f32 to vector<128x32xf32>
    %12 = arith.addf %11, %10 : vector<128x32xf32>
    %13 = arith.divf %11, %12 : vector<128x32xf32>
    %14 = arith.mulf %8, %13 : vector<128x32xf32>
    %c0_7 = arith.constant 0 : index
    %c0_8 = arith.constant 0 : index
    %15 = vector.load %arg6[%c0_7, %c0_8] : memref<256x128xf32, #tpu.memory_space<vmem>>, vector<256x128xf32>
    %cst_9 = arith.constant dense<0.000000e+00> : vector<128x128xf32>
    %16 = tpu.matmul %0, %15, %cst_9 {dimension_numbers = #tpu.dot_dimension_numbers<[1], [0], [0], [1], [0, 0, 1, 1], [], []>} : vector<128x256xf32>, vector<256x128xf32>, vector<128x128xf32> -> vector<128x128xf32>
    %c0_10 = arith.constant 0 : index
    %c0_11 = arith.constant 0 : index
    %17 = vector.load %arg5[%c0_10, %c0_11] : memref<32x128xf32, #tpu.memory_space<vmem>>, vector<32x128xf32>
    %cst_12 = arith.constant dense<0.000000e+00> : vector<128x128xf32>
    %18 = tpu.matmul %14, %17, %cst_12 {dimension_numbers = #tpu.dot_dimension_numbers<[1], [0], [0], [1], [0, 0, 1, 1], [], []>} : vector<128x32xf32>, vector<32x128xf32>, vector<128x128xf32> -> vector<128x128xf32>
    %19 = arith.addf %16, %18 : vector<128x128xf32>
    %c0_13 = arith.constant 0 : index
    %c0_14 = arith.constant 0 : index
    %20 = vector.load %arg7[%c0_13, %c0_14] : memref<1x128xf32, #tpu.memory_space<vmem>>, vector<1x128xf32>
    %21 = vector.broadcast %20 : vector<1x128xf32> to vector<128x128xf32>
    %22 = arith.addf %19, %21 : vector<128x128xf32>
    %c0_15 = arith.constant 0 : index
    %c0_16 = arith.constant 0 : index
    %23 = vector.load %arg8[%c0_15, %c0_16] : memref<1x128xf32, #tpu.memory_space<vmem>>, vector<1x128xf32>
    %c0_17 = arith.constant 0 : index
    %c0_18 = arith.constant 0 : index
    %24 = vector.load %arg9[%c0_17, %c0_18] : memref<1x128xf32, #tpu.memory_space<vmem>>, vector<1x128xf32>
    %cst_19 = arith.constant dense<0.000000e+00> : vector<128xf32>
    %25 = vector.multi_reduction <add>, %22, %cst_19 [1] : vector<128x128xf32> to vector<128xf32>
    %26 = vector.shape_cast %25 : vector<128xf32> to vector<128x1xf32>
    %cst_20 = arith.constant 1.280000e+02 : f32
    %27 = vector.broadcast %cst_20 : f32 to vector<128x1xf32>
    %28 = arith.divf %26, %27 : vector<128x1xf32>
    %29 = vector.broadcast %28 : vector<128x1xf32> to vector<128x128xf32>
    %30 = arith.subf %22, %29 : vector<128x128xf32>
    %31 = arith.mulf %30, %30 : vector<128x128xf32>
    %cst_21 = arith.constant dense<0.000000e+00> : vector<128xf32>
    %32 = vector.multi_reduction <add>, %31, %cst_21 [1] : vector<128x128xf32> to vector<128xf32>
    %33 = vector.shape_cast %32 : vector<128xf32> to vector<128x1xf32>
    %cst_22 = arith.constant 1.280000e+02 : f32
    %34 = vector.broadcast %cst_22 : f32 to vector<128x1xf32>
    %35 = arith.divf %33, %34 : vector<128x1xf32>
    %36 = vector.broadcast %28 : vector<128x1xf32> to vector<128x128xf32>
    %37 = arith.subf %22, %36 : vector<128x128xf32>
    %cst_23 = arith.constant 9.99999974E-6 : f32
    %38 = vector.broadcast %cst_23 : f32 to vector<128x1xf32>
    %39 = arith.addf %35, %38 : vector<128x1xf32>
    %40 = math.rsqrt %39 : vector<128x1xf32>
    %41 = vector.broadcast %40 : vector<128x1xf32> to vector<128x128xf32>
    %42 = arith.mulf %37, %41 : vector<128x128xf32>
    %43 = vector.broadcast %23 : vector<1x128xf32> to vector<128x128xf32>
    %44 = arith.mulf %42, %43 : vector<128x128xf32>
    %45 = vector.broadcast %24 : vector<1x128xf32> to vector<128x128xf32>
    %46 = arith.addf %44, %45 : vector<128x128xf32>
    %cst_24 = arith.constant 5.000000e-01 : f32
    %47 = vector.broadcast %cst_24 : f32 to vector<128x128xf32>
    %48 = arith.mulf %47, %46 : vector<128x128xf32>
    %cst_25 = arith.constant 0.707106769 : f32
    %49 = vector.broadcast %cst_25 : f32 to vector<128x128xf32>
    %50 = arith.mulf %46, %49 : vector<128x128xf32>
    %51 = math.erf %50 : vector<128x128xf32>
    %cst_26 = arith.constant 1.000000e+00 : f32
    %52 = vector.broadcast %cst_26 : f32 to vector<128x128xf32>
    %53 = arith.addf %52, %51 : vector<128x128xf32>
    %54 = arith.mulf %48, %53 : vector<128x128xf32>
    %55 = arith.truncf %54 : vector<128x128xf32> to vector<128x128xbf16>
    %c0_27 = arith.constant 0 : index
    %c0_28 = arith.constant 0 : index
    %56 = vector.load %arg10[%c0_27, %c0_28] : memref<128x128xbf16, #tpu.memory_space<vmem>>, vector<128x128xbf16>
    %cst_29 = arith.constant dense<0.000000e+00> : vector<128x128xf32>
    %57 = tpu.matmul %55, %56, %cst_29 {dimension_numbers = #tpu.dot_dimension_numbers<[1], [0], [0], [1], [0, 0, 1, 1], [], []>} : vector<128x128xbf16>, vector<128x128xbf16>, vector<128x128xf32> -> vector<128x128xf32>
    %c0_30 = arith.constant 0 : index
    %c0_31 = arith.constant 0 : index
    %58 = vector.load %arg11[%c0_30, %c0_31] : memref<1x128xf32, #tpu.memory_space<vmem>>, vector<1x128xf32>
    %59 = vector.broadcast %58 : vector<1x128xf32> to vector<128x128xf32>
    %60 = arith.addf %57, %59 : vector<128x128xf32>
    %c0_32 = arith.constant 0 : index
    %c0_33 = arith.constant 0 : index
    %61 = vector.load %arg12[%c0_32, %c0_33] : memref<1x128xf32, #tpu.memory_space<vmem>>, vector<1x128xf32>
    %c0_34 = arith.constant 0 : index
    %c0_35 = arith.constant 0 : index
    %62 = vector.load %arg13[%c0_34, %c0_35] : memref<1x128xf32, #tpu.memory_space<vmem>>, vector<1x128xf32>
    %cst_36 = arith.constant dense<0.000000e+00> : vector<128xf32>
    %63 = vector.multi_reduction <add>, %60, %cst_36 [1] : vector<128x128xf32> to vector<128xf32>
    %64 = vector.shape_cast %63 : vector<128xf32> to vector<128x1xf32>
    %cst_37 = arith.constant 1.280000e+02 : f32
    %65 = vector.broadcast %cst_37 : f32 to vector<128x1xf32>
    %66 = arith.divf %64, %65 : vector<128x1xf32>
    %67 = vector.broadcast %66 : vector<128x1xf32> to vector<128x128xf32>
    %68 = arith.subf %60, %67 : vector<128x128xf32>
    %69 = arith.mulf %68, %68 : vector<128x128xf32>
    %cst_38 = arith.constant dense<0.000000e+00> : vector<128xf32>
    %70 = vector.multi_reduction <add>, %69, %cst_38 [1] : vector<128x128xf32> to vector<128xf32>
    %71 = vector.shape_cast %70 : vector<128xf32> to vector<128x1xf32>
    %cst_39 = arith.constant 1.280000e+02 : f32
    %72 = vector.broadcast %cst_39 : f32 to vector<128x1xf32>
    %73 = arith.divf %71, %72 : vector<128x1xf32>
    %74 = vector.broadcast %66 : vector<128x1xf32> to vector<128x128xf32>
    %75 = arith.subf %60, %74 : vector<128x128xf32>
    %cst_40 = arith.constant 9.99999974E-6 : f32
    %76 = vector.broadcast %cst_40 : f32 to vector<128x1xf32>
    %77 = arith.addf %73, %76 : vector<128x1xf32>
    %78 = math.rsqrt %77 : vector<128x1xf32>
    %79 = vector.broadcast %78 : vector<128x1xf32> to vector<128x128xf32>
    %80 = arith.mulf %75, %79 : vector<128x128xf32>
    %81 = vector.broadcast %61 : vector<1x128xf32> to vector<128x128xf32>
    %82 = arith.mulf %80, %81 : vector<128x128xf32>
    %83 = vector.broadcast %62 : vector<1x128xf32> to vector<128x128xf32>
    %84 = arith.addf %82, %83 : vector<128x128xf32>
    %cst_41 = arith.constant 5.000000e-01 : f32
    %85 = vector.broadcast %cst_41 : f32 to vector<128x128xf32>
    %86 = arith.mulf %85, %84 : vector<128x128xf32>
    %cst_42 = arith.constant 0.707106769 : f32
    %87 = vector.broadcast %cst_42 : f32 to vector<128x128xf32>
    %88 = arith.mulf %84, %87 : vector<128x128xf32>
    %89 = math.erf %88 : vector<128x128xf32>
    %cst_43 = arith.constant 1.000000e+00 : f32
    %90 = vector.broadcast %cst_43 : f32 to vector<128x128xf32>
    %91 = arith.addf %90, %89 : vector<128x128xf32>
    %92 = arith.mulf %86, %91 : vector<128x128xf32>
    %c0_44 = arith.constant 0 : index
    %c0_45 = arith.constant 0 : index
    %93 = vector.load %arg14[%c0_44, %c0_45] : memref<128x256xf32, #tpu.memory_space<vmem>>, vector<128x256xf32>
    %cst_46 = arith.constant dense<0.000000e+00> : vector<128x256xf32>
    %94 = tpu.matmul %92, %93, %cst_46 {dimension_numbers = #tpu.dot_dimension_numbers<[1], [0], [0], [1], [0, 0, 1, 1], [], []>} : vector<128x128xf32>, vector<128x256xf32>, vector<128x256xf32> -> vector<128x256xf32>
    %c0_47 = arith.constant 0 : index
    %c0_48 = arith.constant 0 : index
    %95 = vector.load %arg15[%c0_47, %c0_48] : memref<1x256xf32, #tpu.memory_space<vmem>>, vector<1x256xf32>
    %96 = vector.broadcast %95 : vector<1x256xf32> to vector<128x256xf32>
    %97 = arith.addf %94, %96 : vector<128x256xf32>
    %c0_49 = arith.constant 0 : index
    %c0_50 = arith.constant 0 : index
    %98 = vector.load %arg16[%c0_49, %c0_50] : memref<128x256xf32, #tpu.memory_space<vmem>>, vector<128x256xf32>
    tpu.vector_store %arg16[%c0_49, %c0_50], %97 {strides = array<i32>} : memref<128x256xf32, #tpu.memory_space<vmem>>, vector<128x256xf32>,
    return
  }
  func.func @transform_0(%arg0: i32) -> (i32, i32) {
    %c0_i32 = arith.constant 0 : i32
    %c0_i32_0 = arith.constant 0 : i32
    return %arg0, %c0_i32 : i32, i32
  }
  func.func @transform_1(%arg0: i32) -> (i32, i32) {
    %c0_i32 = arith.constant 0 : i32
    %c0_i32_0 = arith.constant 0 : i32
    return %arg0, %c0_i32 : i32, i32
  }
  func.func @transform_2(%arg0: i32) -> (i32, i32) {
    %c0_i32 = arith.constant 0 : i32
    %c0_i32_0 = arith.constant 0 : i32
    %c0_i32_1 = arith.constant 0 : i32
    return %c0_i32, %c0_i32_0 : i32, i32
  }
  func.func @transform_3(%arg0: i32) -> (i32, i32) {
    %c0_i32 = arith.constant 0 : i32
    %c0_i32_0 = arith.constant 0 : i32
    %c0_i32_1 = arith.constant 0 : i32
    return %c0_i32, %c0_i32_0 : i32, i32
  }
  func.func @transform_4(%arg0: i32) -> (i32, i32) {
    %c0_i32 = arith.constant 0 : i32
    %c0_i32_0 = arith.constant 0 : i32
    %c0_i32_1 = arith.constant 0 : i32
    return %c0_i32, %c0_i32_0 : i32, i32
  }
  func.func @transform_5(%arg0: i32) -> (i32, i32) {
    %c0_i32 = arith.constant 0 : i32
    %c0_i32_0 = arith.constant 0 : i32
    %c0_i32_1 = arith.constant 0 : i32
    return %c0_i32, %c0_i32_0 : i32, i32
  }
  func.func @transform_6(%arg0: i32) -> (i32, i32) {
    %c0_i32 = arith.constant 0 : i32
    %c0_i32_0 = arith.constant 0 : i32
    %c0_i32_1 = arith.constant 0 : i32
    return %c0_i32, %c0_i32_0 : i32, i32
  }
  func.func @transform_7(%arg0: i32) -> (i32, i32) {
    %c0_i32 = arith.constant 0 : i32
    %c0_i32_0 = arith.constant 0 : i32
    %c0_i32_1 = arith.constant 0 : i32
    return %c0_i32, %c0_i32_0 : i32, i32
  }
  func.func @transform_8(%arg0: i32) -> (i32, i32) {
    %c0_i32 = arith.constant 0 : i32
    %c0_i32_0 = arith.constant 0 : i32
    %c0_i32_1 = arith.constant 0 : i32
    return %c0_i32, %c0_i32_0 : i32, i32
  }
  func.func @transform_9(%arg0: i32) -> (i32, i32) {
    %c0_i32 = arith.constant 0 : i32
    %c0_i32_0 = arith.constant 0 : i32
    %c0_i32_1 = arith.constant 0 : i32
    return %c0_i32, %c0_i32_0 : i32, i32
  }
  func.func @transform_10(%arg0: i32) -> (i32, i32) {
    %c0_i32 = arith.constant 0 : i32
    %c0_i32_0 = arith.constant 0 : i32
    %c0_i32_1 = arith.constant 0 : i32
    return %c0_i32, %c0_i32_0 : i32, i32
  }
  func.func @transform_11(%arg0: i32) -> (i32, i32) {
    %c0_i32 = arith.constant 0 : i32
    %c0_i32_0 = arith.constant 0 : i32
    %c0_i32_1 = arith.constant 0 : i32
    return %c0_i32, %c0_i32_0 : i32, i32
  }
  func.func @transform_12(%arg0: i32) -> (i32, i32) {
    %c0_i32 = arith.constant 0 : i32
    %c0_i32_0 = arith.constant 0 : i32
    %c0_i32_1 = arith.constant 0 : i32
    return %c0_i32, %c0_i32_0 : i32, i32
  }
  func.func @transform_13(%arg0: i32) -> (i32, i32) {
    %c0_i32 = arith.constant 0 : i32
    %c0_i32_0 = arith.constant 0 : i32
    %c0_i32_1 = arith.constant 0 : i32
    return %c0_i32, %c0_i32_0 : i32, i32
  }
  func.func @transform_14(%arg0: i32) -> (i32, i32) {
    %c0_i32 = arith.constant 0 : i32
    %c0_i32_0 = arith.constant 0 : i32
    %c0_i32_1 = arith.constant 0 : i32
    return %c0_i32, %c0_i32_0 : i32, i32
  }
  func.func @transform_15(%arg0: i32) -> (i32, i32) {
    %c0_i32 = arith.constant 0 : i32
    %c0_i32_0 = arith.constant 0 : i32
    return %arg0, %c0_i32 : i32, i32
  }
}

</mosaic_0001>

<bundles_post_ra>
// kernel: flow_matching_forward.1
= control target key start
LH: loop header
LB: loop body
LE: loop exit
PB: predicated region body
PF: predicated region fallthrough
CT: control target
= control target key end

     0   :  { %s7297_s0 = inlined_call_operand.hbm [shape: f32[200,256], index: 0, kind: input, shape index: {}]   ;;  %s7298_s1 = inlined_call_operand.vmem [shape: f32[200,1], index: 1, kind: input, shape index: {}]   ;;  %s7299_s2 = inlined_call_operand.vmem [shape: f32[1,32], index: 2, kind: input, shape index: {}]   ;;  %s7300_s3 = inlined_call_operand.vmem [shape: f32[1,32], index: 3, kind: input, shape index: {}]   ;;  %s7301_s4 = inlined_call_operand.vmem [shape: f32[32,128], index: 4, kind: input, shape index: {}]   ;;  %s7302_s5 = inlined_call_operand.hbm [shape: f32[256,128], index: 5, kind: input, shape index: {}]   ;;  %s7303_s6 = inlined_call_operand.vmem [shape: f32[1,128], index: 6, kind: input, shape index: {}]   ;;  %s7304_s7 = inlined_call_operand.vmem [shape: f32[1,128], index: 7, kind: input, shape index: {}]   ;;  %s7305_s8 = inlined_call_operand.vmem [shape: f32[1,128], index: 8, kind: input, shape index: {}]   ;;  %s7306_s9 = inlined_call_operand.vmem [shape: bf16[128,128], index: 9, kind: input, shape index: {}]   ;;  %s7307_s10 = inlined_call_operand.vmem [shape: f32[1,128], index: 10, kind: input, shape index: {}]   ;;  %s7308_s11 = inlined_call_operand.vmem [shape: f32[1,128], index: 11, kind: input, shape index: {}]   ;;  %s7309_s12 = inlined_call_operand.vmem [shape: f32[1,128], index: 12, kind: input, shape index: {}]   ;;  %s7310_s13 = inlined_call_operand.hbm [shape: f32[128,256], index: 13, kind: input, shape index: {}]   ;;  %s7311_s14 = inlined_call_operand.vmem [shape: f32[1,256], index: 14, kind: input, shape index: {}]   ;;  %s7312_s15 = inlined_call_operand.hbm [shape: f32[200,256], index: 15, kind: output, shape index: {}]  }
   0x1   :  { %7326 = sst [smem:[#allocation18_spill]] %s7302_s5 }
   0x2   :  { %7327 = sst [smem:[#allocation19_spill]] %s7309_s12 }
   0x3   :  { %7328 = sst [smem:[#allocation20_spill]] %s7310_s13 }
   0x4   :  { %7329 = sst [smem:[#allocation21_spill]] %s7311_s14 }
   0x5   :  { %7330 = sst [smem:[#allocation22_spill]] %s7312_s15 }
   0x6   :  { %20 = vsyncpa [#allocation3], 0 }
   0x7   :  { %22 = vsyncpa [#allocation3 + $0x1], 0 }
   0x8   :  { %23 = vsyncpa [#allocation6], 0 }
   0x9   :  { %24 = vsyncpa [#allocation4], 0 }
   0xa   :  { %26 = vsyncpa [#allocation4 + $0x1], 0  ;;  %s4721_s18 = smov 0   ;;  %s4723_s19 = smov 0  }
   0xb   :  { %s4725_s20 = smov 0   ;;  %s4727_s21 = smov 0  }
   0xc LB: > { %7331 = sst [smem:[#allocation12_spill]] %s4613_s18  ;;  %s4742_s22 = sadd.s32 4294967295, %s4625_s21   ;;  %s4625_s21 = sphi %s4727_s21, %s7439_s21   ;;  %s4621_s20 = sphi %s4725_s20, %s7441_s20   ;;  %s4617_s19 = sphi %s4723_s19, %s7443_s19   ;;  %s4613_s18 = sphi %s4721_s18, %s7442_s18  }
   0xd   : > { %7332 = sst [smem:[#allocation13_spill]] %s4621_s20  ;;  %s3988_s23 = sadd.s32 4294967294, %s4625_s21  }
   0xe   : > { %s4746_s24 = sadd.s32 1, %s4625_s21   ;;  %s39_s25 = sadd.s32 1, %s4621_s20 }
   0xf   : > { %7333 = sst [smem:[#allocation14_spill]] %s4746_s24  ;;  %s36_s26 = ssub.s32 %s4625_s21, %s4746_s24 }
  0x10   : > { %p46_p0 = scmp.ne.s32.totalorder %s4621_s20, %s4617_s19  ;;  %p37_p1 = scmp.eq.s32.totalorder %s36_s26, 0 }
  0x11   : > { %p47_p2 = scmp.eq.s32.totalorder %s4625_s21, 0  ;;  %p52_p3 = scmp.ne.s32.totalorder %s4617_s19, %s4613_s18 }
  0x12   : > { %p7323_p4 = scmp.eq.s32.totalorder %s4742_s22, 0  ;;  %p375_p7 = scmp.eq.s32.totalorder %s4742_s22, 1 }
  0x13   : > { %s4758_s27 = scalar_select %p37_p1, %s4621_s20, %s39_s25  }
  0x14   : > { %p4760_p5 = por %p47_p2, %p46_p0  ;;  %p4766_p6 = por %p7323_p4, %p52_p3 }
  0x15   : > { %7334 = sst [smem:[#allocation15_spill]] %s4758_s27  ;;  %p381_p8 = scmp.eq.s32.totalorder %s3988_s23, 1 }
  0x16   : > { %p3989_p9 = scmp.ge.s32.totalorder %s4625_s21, 1  ;;  %p388_p10 = scmp.lt.s32.totalorder %s4625_s21, 3 }
  0x17   : > { %p4773_p11 = por %p375_p7, %p46_p0  ;;  %p4777_p12 = por %p381_p8, %p52_p3 }
  0x18   : > { %p4781_p13 = pnand %p3989_p9, %p388_p10  ;;  %s7342_s5 = sld [smem:[#allocation18_spill]] }
  0x19   : > { %s7337_s30 = scalar_select %p4773_p11, 1, 0 }
  0x1a   : > { %s7339_s16 = scalar_select %p4777_p12, 1, 0 }
  0x1b   : > { %7338 = sst [smem:[#allocation16_spill]] %s7337_s30  ;;  %p4176_p1 = pneg %p4781_p13 }
  0x1c   : > { %7340 = sst [smem:[#allocation17_spill]] %s7339_s16  ;;  %s4627_s23 = smov [#allocation5]  }
  0x1d   : > { %s410_s24 = sshll.u32 %s4627_s23, 4  ;;  %p4177_p0 = pnand %p4176_p1, %p7323_p4  ;;  %s411_s24 = int_to_ptr.vmem [resolvable:$true] %s410_s24 }
  0x1e   : > { %s408_s27 = sshll.u32 %s7342_s5, 4  ;;  %s7343_s13 = sld [smem:[#allocation20_spill]]  ;;  %s409_s27 = int_to_ptr.hbm [resolvable:$true] %s408_s27 }
  0x1f   : > { %s4628_s30 = smov 128   ;;  %s4629_s14 = smov 8  }
  0x20   : > { %4179 = dma.hbm_to_vmem [thread:$0]  (!%p4177_p0), %s409_s27, 4096, %s411_s24, [#allocation6], %s4628_s30, %s4628_s30, %s4629_s14  }
  0x21   : > { %s4630_s12 = smov [#allocation7]   ;;  %s4631_s26 = smov 256  }
  0x22   : > { %s445_s25 = sshll.u32 %s4630_s12, 4  ;;  %s4632_s5 = smov 16   ;;  %s446_s25 = int_to_ptr.vmem [resolvable:$true] %s445_s25 }
  0x23   : > { %p7322_p2 = scmp.ge.s32.totalorder %s4625_s21, 2 }
  0x24   : > { %s443_s16 = sshll.u32 %s7343_s13, 4  ;;  %s444_s16 = int_to_ptr.hbm [resolvable:$true] %s443_s16 }
  0x25   : > { %4182 = dma.hbm_to_vmem [thread:$0]  (!%p4177_p0), %s444_s16, 4096, %s446_s25, [#allocation6], %s4631_s26, %s4631_s26, %s4632_s5  }
  0x26   : > { %458 = sbr.rel (%p7322_p2) target bundleno = 80 (0x50), region = 68 }
  0x2b   : > { %461 = sbr.rel (!%p4760_p5) target bundleno = 80 (0x50), region = 72  ;;  %s462_s15 = sand.u32 (%p4760_p5), 1, %s4621_s20  }
  0x2c   : > { %s3994_s18 = sshll.u32 (%p4760_p5), %s4625_s21, 4  ;;  %s3993_s23 = sshll.u32 (%p4760_p5), %s462_s15, 8 }
  0x2d   : > { %s468_s14 = ssub.s32 (%p4760_p5), 25, %s3994_s18  ;;  %s4805_s27 = scalar_lea.sflag (%p4760_p5), [#allocation3], %s462_s15 }
  0x2e   : > { %p469_p3 = scmp.lt.s32.totalorder (%p4760_p5), %s468_s14, 16  ;;  %s466_s30 = scalar_lea.vmem (%p4760_p5), [#allocation2], %s3993_s23 }
  0x30   : > { %s7445_s14 = smov (!%p469_p3, %s468_s14), 16 }
  0x31   : > { %s4116_s12 = sshll.u32 %s7445_s14, 4 }
  0x32   : > { %s473_s5 = ssub.s32 256, %s4116_s12 }
  0x33   : > { %s474_s24 = sshll.u32 %s473_s5, 4 }
  0x34   : > { %475 = vsyncadd %s4805_s27, %s474_s24  ;;  %p4808_p5 = scmp.ne.s32.totalorder %s4116_s12, 0  ;;  %s4118_s16 = sshll.u32 %s4625_s21, 8 }
  0x35   : > { %s479_s18 = scalar_lea.hbm %s7297_s0, %s4118_s16  ;;  %s4816_s13 = sshll.u32 %s466_s30, 4  ;;  %s484_s13 = int_to_ptr.vmem [resolvable:$true] %s4816_s13 }
  0x36   : > { %s481_s15 = sshll.u32 %s479_s18, 4  ;;  %s7320_s23 = sshll.u32 %s7445_s14, 8  ;;  %s4819_s15 = int_to_ptr.hbm [resolvable:$true] %s481_s15 }
  0x37   : > { %s4505_s5 = sshra.s32 %s4819_s15, 4  ;;  %s4507_s12 = sshrl.u32 %s7320_s23, 4  ;;  %s4506_s5 = int_to_ptr.hbm [resolvable:$true] %s4505_s5 }
  0x38   : > { %s4512_s24 = scalar_lea.hbm %s4506_s5, %s4507_s12  ;;  %s4516_s30 = scalar_lea.hbm %s7297_s0, 400 }
  0x39   : > { %p4513_p7 = scmp.ne.s32.totalorder %s4506_s5, %s4512_s24  ;;  %p4517_p10 = scmp.lt.s32.totalorder %s4506_s5, %s7297_s0 }
  0x3a   : > { %p4518_p1 = scmp.lt.s32.totalorder %s4516_s30, %s4512_s24 }
  0x3b   : > { %p4514_p8 = pnand %p4513_p7, %p4808_p5 }
  0x3c   : > { %p4519_p0 = por %p4518_p1, %p4517_p10 }
  0x3d   : > { %p4515_p9 = pneg %p4514_p8 }
  0x3f   : > { %p4520_p3 = pnand %p4519_p0, %p4515_p9 }
  0x41   : > { %4523 = shalt.err (!%p4520_p3)
}
  0x42   : > { %s4524_s23 = sshra.s32 %s484_s13, 4  ;;  %s4633_s25 = smov [#allocation2]   ;;  %s4525_s23 = int_to_ptr.vmem [resolvable:$true] %s4524_s23 }
  0x43   : > { %s4531_s20 = scalar_lea.vmem %s4525_s23, %s4507_s12  ;;  %s4535_s16 = scalar_lea.vmem %s4633_s25, 512 }
  0x44   : > { %p4532_p7 = scmp.ne.s32.totalorder %s4525_s23, %s4531_s20  ;;  %p4537_p4 = scmp.lt.s32.totalorder %s4535_s16, %s4531_s20 }
  0x46   : > { %p4533_p8 = pnand %p4532_p7, %p4808_p5 }
  0x48   : > { %p4534_p2 = pneg %p4533_p8 }
  0x4a   : > { %p4539_p12 = pnand %p4537_p4, %p4534_p2 }
  0x4c   : > { %4542 = shalt.err (!%p4539_p12)
}
  0x4d   : > { %s4634_s5 = smov 256   ;;  %s4635_s24 = smov 16  }
  0x4e   : > { %s7345_s30 = sshll.u32 %s7445_s14, 8 }
  0x4f   : > { %489 = dma.hbm_to_vmem [thread:$0]  (%p4808_p5), %s4819_s15, %s7345_s30, %s484_s13, %s4805_s27, %s4634_s5, %s4634_s5, %s4635_s24  }
  0x50 PF: > { %512 = sbr.rel (%p4781_p13) target bundleno = 1596 (0x63c), region = 80  ;;  %s4848_s20 = sand.u32 (!%p4781_p13), 1, %s4617_s19  }
  0x51   : > { %s4003_s23 = sshll.u32 (!%p4781_p13), %s4848_s20, 8  ;;  %s515_s12 = scalar_lea.sflag (!%p4781_p13), [#allocation3], %s4848_s20 }
  0x52   : > { %s4854_s26 = scalar_lea.vmem (!%p4781_p13), [#allocation2], %s4003_s23 }
  0x55   : > { %4600 = dma.done.wait (%p4766_p6), %s515_s12, 4096  }
  0x56   : > { %4602 = vsyncadd (%p4766_p6), %s515_s12, 4294963200  ;;  %p7346_p4 = scmp.eq.s32.totalorder %s4742_s22, 0 }
  0x58   : > { %4604 = dma.done.wait (%p7346_p4), [#allocation6], 8192   ;;  %p7347_p12 = pmov %p7346_p4 }
  0x59   : > { %s4865_s13 = sshll.u32 %s4742_s22, 4  ;;  %v4636_v0 = vmov 0   ;;  %v4874_v1 = vld [vmem:[#allocation5 + $0x78] sm:$0xff]  ;;  %v4879_v4 = vld [vmem:[#allocation5 + $0x70] sm:$0xff]  ;;  %v4881_v5 = vld [vmem:[#allocation5 + $0x68] sm:$0xff]  ;;  %vm1135_vm0 = vcmask 261120  }
  0x5a   : > { %4606 = vsyncadd (%p7347_p12), [#allocation6], 4294959104  ;;  %4237 = vset.pattern.permute.xlu1 %v4636_v0  ;;  %4236 = vset.pattern.permute.xlu0 %v4636_v0  ;;  %p596_p13 = scmp.lt.s32.totalorder %s4865_s13, 24  ;;  %v4885_v6 = vld [vmem:[#allocation5 + $0x60] sm:$0xff]  ;;  %v4889_v7 = vld [vmem:[#allocation5 + $0x58] sm:$0xff]  ;;  %s7410_s25 = sld [smem:[#allocation19_spill]] }
  0x5b   : > { %4238 = vset.pattern.permute.xlu2 %v4636_v0  ;;  %4134 = vmatpush.msra.mxu2 %v4874_v1  ;;  %v4895_v10 = vld [vmem:[#allocation5 + $0x50] sm:$0xff]  ;;  %v4900_v12 = vld [vmem:[#allocation5 + $0x48] sm:$0xff]  ;;  %v4902_v13 = vld [vmem:[#allocation5 + $0x40] sm:$0xff]  ;;  %s7023_s29 = scalar_lea.vmem [#allocation8], %s4003_s23  ;;  %s7325_s23 = scalar_lea.sflag [#allocation4], %s4848_s20 }
  0x5c   : > { %s597_s17 = scalar_select %p596_p13, %s4865_s13, 24  ;;  %1249 = vmatpush.msra.mxu1 %v4874_v1  ;;  %v4908_v14 = vld [vmem:[#allocation5 + $0x38] sm:$0xff]  ;;  %v4915_v18 = vld [vmem:[#allocation5 + $0x30] sm:$0xff]  ;;  %v4918_v19 = vld [vmem:[#allocation5 + $0x28] sm:$0xff] }
  0x5d   : > { %4136 = vmatpush.msra.mxu2 %v4879_v4  ;;  %v4922_v20 = vld [vmem:[#allocation5 + $0x20] sm:$0xff]  ;;  %v4926_v21 = vld [vmem:[#allocation5 + $0x18] sm:$0xff]  ;;  %v4933_v25 = vld [vmem:[#allocation5 + $0x10] sm:$0xff] }
  0x5e   : > { %s4008_s14 = sshll.u32 %s597_s17, 3  ;;  %1250 = vmatpush.msra.mxu1 %v4879_v4  ;;  %v4936_v26 = vld [vmem:[#allocation5 + $0x8] sm:$0xff]  ;;  %v4940_v27 = vld [vmem:[#allocation5] sm:$0xff]  ;;  %v1130_v31 = vld [vmem:[#allocation5 + $0xf8] sm:$0xff] }
  0x5f   : > { %s4872_s28 = scalar_lea.vmem %s7298_s1, %s4008_s14  ;;  %4138 = vmatpush.msra.mxu2 %v4881_v5  ;;  %v619_v28 = vld [vmem:[%s4854_s26 + $0x40] sm:$0xff]  ;;  %v1129_v33 = vld [vmem:[#allocation5 + $0xf0] sm:$0xff]  ;;  %v1128_v34 = vld [vmem:[#allocation5 + $0xe8] sm:$0xff]  ;;  %s7423_s14 = sld [smem:[#allocation21_spill]] }
  0x60   : > { %v645_v2 = vld [vmem:[%s4872_s28 + $0x10] sm:$0xff]  ;;  %v643_v3 = vld [vmem:[%s4872_s28] sm:$0xff]  ;;  %v646_v8 = vld [vmem:[%s4872_s28 + $0x18] sm:$0xff]  ;;  %1251 = vmatpush.msra.mxu1 %v4881_v5 }
  0x61   : > { %672 = vperm.xlu1 %4237, %v645_v2   ;;  %662 = vperm.xlu0 %4236, %v643_v3   ;;  %v644_v9 = vld [vmem:[%s4872_s28 + $0x8] sm:$0xff]  ;;  %v647_v11 = vld [vmem:[%s4872_s28 + $0x20] sm:$0xff]  ;;  %v649_v15 = vld [vmem:[%s4872_s28 + $0x30] sm:$0xff] }
  0x62   : > { %4140 = vmatpush.msra.mxu2 %v4885_v6  ;;  %1252 = vmatpush.msra.mxu1 %v4885_v6  ;;  %v653_v16 = vld [vmem:[%s4872_s28 + $0x50] sm:$0xff]  ;;  %v648_v17 = vld [vmem:[%s4872_s28 + $0x28] sm:$0xff]  ;;  %v655_v22 = vld [vmem:[%s4872_s28 + $0x60] sm:$0xff] }
  0x63   : > { %682 = vperm.xlu2 %4238, %v647_v11   ;;  %v650_v23 = vld [vmem:[%s4872_s28 + $0x38] sm:$0xff]  ;;  %v652_v29 = vld [vmem:[%s4872_s28 + $0x48] sm:$0xff]  ;;  %v651_v32 = vld [vmem:[%s4872_s28 + $0x40] sm:$0xff] }
  0x64   : > { %4142 = vmatpush.msra.mxu2 %v4889_v7  ;;  %1253 = vmatpush.msra.mxu1 %v4889_v7  ;;  %v654_v24 = vld [vmem:[%s4872_s28 + $0x58] sm:$0xff]  ;;  %v656_v30 = vld [vmem:[%s4872_s28 + $0x68] sm:$0xff]  ;;  %v1127_v35 = vld [vmem:[#allocation5 + $0xe0] sm:$0xff] }
  0x65   : > { %v621_v36 = vld [vmem:[%s4854_s26 + $0x50] sm:$0xff]  ;;  %v658_v37 = vld [vmem:[%s4872_s28 + $0x78] sm:$0xff]  ;;  %v1124_v41 = vld [vmem:[#allocation5 + $0xc8] sm:$0xff] }
  0x66   : > { %4144 = vmatpush.msra.mxu2 %v4895_v10  ;;  %1254 = vmatpush.msra.mxu1 %v4895_v10  ;;  %v1126_v38 = vld [vmem:[#allocation5 + $0xd8] sm:$0xff]  ;;  %v657_v39 = vld [vmem:[%s4872_s28 + $0x70] sm:$0xff]  ;;  %v1123_v42 = vld [vmem:[#allocation5 + $0xc0] sm:$0xff]  ;;  %s3868_s28 = ssub.s32 (%p4773_p11), 25, %s4865_s13 }
  0x67   : > { %v1125_v40 = vld [vmem:[#allocation5 + $0xd0] sm:$0xff]  ;;  %v623_v43 = vld [vmem:[%s4854_s26 + $0x60] sm:$0xff]  ;;  %v1122_v44 = vld [vmem:[#allocation5 + $0xb8] sm:$0xff]  ;;  %p3869_p6 = scmp.lt.s32.totalorder (%p4773_p11), %s3868_s28, 16 }
  0x68   : > { %4146 = vmatpush.msra.mxu2 %v4900_v12  ;;  %1255 = vmatpush.msra.mxu1 %v4900_v12  ;;  %v1121_v45 = vld [vmem:[#allocation5 + $0xb0] sm:$0xff]  ;;  %v1120_v46 = vld [vmem:[#allocation5 + $0xa8] sm:$0xff]  ;;  %v1119_v47 = vld [vmem:[#allocation5 + $0xa0] sm:$0xff] }
  0x69   : > { %677 = vperm.xlu1 %4237, %v646_v8   ;;  %667 = vperm.xlu0 %4236, %v644_v9   ;;  %v625_v48 = vld [vmem:[%s4854_s26 + $0x70] sm:$0xff]  ;;  %v1118_v49 = vld [vmem:[#allocation5 + $0x98] sm:$0xff]  ;;  %v1116_v51 = vld [vmem:[#allocation5 + $0x88] sm:$0xff] }
  0x6a   : > { %4148 = vmatpush.msra.mxu2 %v4902_v13  ;;  %1256 = vmatpush.msra.mxu1 %v4902_v13  ;;  %v1117_v50 = vld [vmem:[#allocation5 + $0x90] sm:$0xff]  ;;  %v1115_v52 = vld [vmem:[#allocation5 + $0x80] sm:$0xff]  ;;  %v612_v57 = vld [vmem:[%s4854_s26 + $0x8] sm:$0xff] }
  0x6b   : > { %687 = vperm.xlu2 %4238, %v648_v17   ;;  %v627_v53 = vld [vmem:[%s4854_s26 + $0x80] sm:$0xff]  ;;  %v629_v54 = vld [vmem:[%s4854_s26 + $0x90] sm:$0xff]  ;;  %v614_v59 = vld [vmem:[%s4854_s26 + $0x18] sm:$0xff] }
  0x6c   : > { %4150 = vmatpush.msra.mxu2 %v4908_v14  ;;  %1257 = vmatpush.msra.mxu1 %v4908_v14  ;;  %v631_v55 = vld [vmem:[%s4854_s26 + $0xa0] sm:$0xff]  ;;  %v633_v56 = vld [vmem:[%s4854_s26 + $0xb0] sm:$0xff]  ;;  %v616_v61 = vld [vmem:[%s4854_s26 + $0x28] sm:$0xff] }
  0x6d   : > { %v4968_v62 = vld [vmem:[%s7299_s2] ss:$0 sm:$0xff]  ;;  %v1134_v0 = vld [vmem:[%s7301_s4 + $0x18] sm:$0xff]  ;;  %v1133_v9 = vld [vmem:[%s7301_s4 + $0x10] sm:$0xff] }
  0x6e   : > { %4152 = vmatpush.msra.mxu2 %v4915_v18  ;;  %1258 = vmatpush.msra.mxu1 %v4915_v18  ;;  %v4977_v2 = vld [vmem:[%s7300_s3] ss:$0 sm:$0xff] }
  0x6f   : > { %1196 = vmatpush.msra.mxu0 %v1134_v0  ;;  %4130 = vmatpush.msra.mxu3 %v1134_v0 }
  0x70   : > { %4154 = vmatpush.msra.mxu2 %v4918_v19  ;;  %1259 = vmatpush.msra.mxu1 %v4918_v19 }
  0x71   : > { %692 = vperm.xlu1 %4237, %v649_v15   ;;  %712 = vperm.xlu0 %4236, %v653_v16  }
  0x72   : > { %4156 = vmatpush.msra.mxu2 %v4922_v20  ;;  %1260 = vmatpush.msra.mxu1 %v4922_v20 }
  0x73   : > { %717 = vperm.xlu2 %4238, %v654_v24   ;;  %1197 = vmatpush.msra.mxu0 %v1133_v9 }
  0x74   : > { %4158 = vmatpush.msra.mxu2 %v4926_v21  ;;  %1261 = vmatpush.msra.mxu1 %v4926_v21 }
  0x75   : > { %4131 = vmatpush.msra.mxu3 %v1133_v9 }
  0x76   : > { %4160 = vmatpush.msra.mxu2 %v4933_v25  ;;  %1262 = vmatpush.msra.mxu1 %v4933_v25 }
  0x78   : > { %4162 = vmatpush.msra.mxu2 %v4936_v26  ;;  %1263 = vmatpush.msra.mxu1 %v4936_v26 }
  0x79   : > { %722 = vperm.xlu1 %4237, %v655_v22   ;;  %697 = vperm.xlu0 %4236, %v650_v23   ;;  %v618_v22 = vld [vmem:[%s4854_s26 + $0x38] sm:$0xff] }
  0x7a   : > { %4164 = vmatpush.msra.mxu2 %v4940_v27  ;;  %1264 = vmatpush.msra.mxu1 %v4940_v27 }
  0x7b   : > { %1277 = vmatmul.f32.vlgmr.msra.gmra.mxu2 %v619_v28  ;;  %702 = vperm.xlu2 %4238, %v651_v32   ;;  %v1132_v28 = vld [vmem:[%s7301_s4 + $0x8] sm:$0xff]  ;;  %v1131_v32 = vld [vmem:[%s7301_s4] sm:$0xff] }
  0x7c   : > { %1314 = vmatpush.msrb.mxu2 %v1130_v31  ;;  %1198 = vmatpush.msra.mxu0 %v1132_v28 }
  0x7d   : > { %4132 = vmatpush.msra.mxu3 %v1132_v28 }
  0x7e   : > { %1315 = vmatpush.msrb.mxu2 %v1129_v33  ;;  %1199 = vmatpush.msra.mxu0 %v1131_v32 }
  0x7f   : > { %4133 = vmatpush.msra.mxu3 %v1131_v32 }
  0x80   : > { %1316 = vmatpush.msrb.mxu2 %v1128_v34  ;;  %v611_v34 = vld [vmem:[%s4854_s26] sm:$0xff] }
  0x81   : > { %707 = vperm.xlu1 %4237, %v652_v29   ;;  %727 = vperm.xlu0 %4236, %v656_v30  }
  0x82   : > { %1317 = vmatpush.msrb.mxu2 %v1127_v35  ;;  %1265 = vmatmul.f32.vlgmr.msra.gmra.mxu1 %v611_v34 }
  0x83   : > { %1280 = vmatmul.f32.gmra.mxu2 %v621_v36  ;;  %732 = vperm.xlu2 %4238, %v657_v39  }
  0x84   : > { %1318 = vmatpush.msrb.mxu2 %v1126_v38  ;;  %4135 = vmatpush.msrb.mxu3 %v4874_v1 }
  0x86   : > { %1319 = vmatpush.msrb.mxu2 %v1125_v40  ;;  %4137 = vmatpush.msrb.mxu3 %v4879_v4 }
  0x88   : > { %1320 = vmatpush.msrb.mxu2 %v1124_v41  ;;  %4139 = vmatpush.msrb.mxu3 %v4881_v5 }
  0x89   : > { %737 = vperm.xlu0 %4236, %v658_v37  }
  0x8a   : > { %1321 = vmatpush.msrb.mxu2 %v1123_v42  ;;  %4141 = vmatpush.msrb.mxu3 %v4885_v6 }
  0x8b   : > { %1283 = vmatmul.f32.gmra.mxu2 %v623_v43  ;;  %v620_v43 = vld [vmem:[%s4854_s26 + $0x48] sm:$0xff] }
  0x8c   : > { %1322 = vmatpush.msrb.mxu2 %v1122_v44  ;;  %4143 = vmatpush.msrb.mxu3 %v4889_v7 }
  0x8e   : > { %1323 = vmatpush.msrb.mxu2 %v1121_v45  ;;  %4145 = vmatpush.msrb.mxu3 %v4895_v10 }
  0x90   : > { %1324 = vmatpush.msrb.mxu2 %v1120_v46  ;;  %4147 = vmatpush.msrb.mxu3 %v4900_v12 }
  0x92   : > { %1325 = vmatpush.msrb.mxu2 %v1119_v47  ;;  %4149 = vmatpush.msrb.mxu3 %v4902_v13 }
  0x93   : > { %1286 = vmatmul.f32.gmra.mxu2 %v625_v48 }
  0x94   : > { %1326 = vmatpush.msrb.mxu2 %v1118_v49  ;;  %4151 = vmatpush.msrb.mxu3 %v4908_v14 }
  0x96   : > { %1327 = vmatpush.msrb.mxu2 %v1117_v50  ;;  %4153 = vmatpush.msrb.mxu3 %v4915_v18 }
  0x98   : > { %1328 = vmatpush.msrb.mxu2 %v1116_v51  ;;  %v613_v51 = vld [vmem:[%s4854_s26 + $0x10] sm:$0xff]  ;;  %4155 = vmatpush.msrb.mxu3 %v4918_v19 }
  0x99   : > { %1268 = vmatmul.f32.gmra.mxu1 %v613_v51 }
  0x9a   : > { %1329 = vmatpush.msrb.mxu2 %v1115_v52  ;;  %4157 = vmatpush.msrb.mxu3 %v4922_v20  ;;  %v617_v20 = vld [vmem:[%s4854_s26 + $0x30] sm:$0xff] }
  0x9b   : > { %1289 = vmatmul.f32.gmra.mxu2 %v627_v53 }
  0x9c   : > { %4159 = vmatpush.msrb.mxu3 %v4926_v21 }
  0x9e   : > { %4161 = vmatpush.msrb.mxu3 %v4933_v25 }
  0xa0   : > { %4163 = vmatpush.msrb.mxu3 %v4936_v26 }
  0xa2   : > { %4165 = vmatpush.msrb.mxu3 %v4940_v27 }
  0xa3   : > { %1292 = vmatmul.f32.gmra.mxu2 %v629_v54 }
  0xab   : > { %1295 = vmatmul.f32.gmra.mxu2 %v631_v55 }
  0xb3   : > { %1298 = vmatmul.f32.gmra.mxu2 %v633_v56 }
  0xbb   : > { %1330 = vmatmul.f32.vlgmr.msrb.gmra.mxu2 %v612_v57  ;;  %v622_v57 = vld [vmem:[%s4854_s26 + $0x58] sm:$0xff] }
  0xbd   : > { %v683_v58 = vpop.permute.xlu2 %682 }
  0xbe   : > { %v747_v63 = vmul.f32 %v4968_v62, %v683_v58 }
  0xc0   : > { %v4987_v23 = vadd.f32 %v4977_v2, %v747_v63 }
  0xc2   : > { %v4013_v36 = vmul.f32 -1.442695, %v4987_v23 }
  0xc3   : > { %1333 = vmatmul.f32.gmra.mxu2 %v614_v59 }
  0xc5   : > { %v688_v60 = vpop.permute.xlu2 %687 }
  0xc6   : > { %v748_v3 = vmul.f32 %v4968_v62, %v688_v60 }
  0xc8   : > { %v4997_v30 = vadd.f32 %v4977_v2, %v748_v3 }
  0xca   : > { %v4014_v38 = vmul.f32 -1.442695, %v4997_v30 }
  0xcb   : > { %1336 = vmatmul.f32.gmra.mxu2 %v616_v61 }
  0xcd   : > { %v718_v16 = vpop.permute.xlu2 %717 }
  0xce   : > { %v754_v24 = vmul.f32 %v4968_v62, %v718_v16 }
  0xd0   : > { %v5010_v37 = vadd.f32 %v4977_v2, %v754_v24 }
  0xd2   : > { %v4020_v44 = vmul.f32 -1.442695, %v5010_v37 }
  0xd3   : > { %v673_v8 = vpop.permute.xlu1 %672  ;;  %v663_v15 = vpop.permute.xlu0 %662  ;;  %1339 = vmatmul.f32.gmra.mxu2 %v618_v22 }
  0xd4   : > { %v745_v11 = vmul.f32 %v4968_v62, %v673_v8  ;;  %v743_v17 = vmul.f32 %v4968_v62, %v663_v15 }
  0xd5   : > { %v703_v46 = vpop.permute.xlu2 %702 }
  0xd6   : > { %v4994_v29 = vadd.f32 %v4977_v2, %v745_v11  ;;  %v5000_v31 = vadd.f32 %v4977_v2, %v743_v17  ;;  %v751_v58 = vmul.f32 %v4968_v62, %v703_v46 }
  0xd8   : > { %v4011_v33 = vmul.f32 -1.442695, %v4994_v29  ;;  %v4009_v35 = vmul.f32 -1.442695, %v5000_v31  ;;  %v5051_v10 = vadd.f32 %v4977_v2, %v751_v58 }
  0xda   : > { %4247 = vpow2.f32 %v4011_v33  ;;  %v615_v33 = vld [vmem:[%s4854_s26 + $0x20] sm:$0xff] }
  0xdb   : > { %4249 = vpow2.f32 %v4009_v35  ;;  %v678_v39 = vpop.permute.xlu1 %677  ;;  %v668_v41 = vpop.permute.xlu0 %667  ;;  %1342 = vmatmul.f32.gmra.mxu2 %v620_v43  ;;  %v624_v35 = vld [vmem:[%s4854_s26 + $0x68] sm:$0xff]  ;;  %1271 = vmatmul.f32.gmra.mxu1 %v615_v33 }
  0xdc   : > { %v746_v40 = vmul.f32 %v4968_v62, %v678_v39  ;;  %4251 = vpow2.f32 %v4013_v36  ;;  %v744_v42 = vmul.f32 %v4968_v62, %v668_v41 }
  0xdd   : > { %4253 = vpow2.f32 %v4014_v38  ;;  %v733_v0 = vpop.permute.xlu2 %732 }
  0xde   : > { %v5020_v45 = vadd.f32 %v4977_v2, %v746_v40  ;;  %v5024_v1 = vadd.f32 %v4977_v2, %v744_v42  ;;  %4255 = vpow2.f32 %v4020_v44  ;;  %v757_v22 = vmul.f32 %v4968_v62, %v733_v0 }
  0xe0   : > { %v4248_v47 = vpop.eup %4247  ;;  %v4012_v4 = vmul.f32 -1.442695, %v5020_v45  ;;  %v4010_v50 = vmul.f32 -1.442695, %v5024_v1  ;;  %v5093_v44 = vadd.f32 %v4977_v2, %v757_v22 }
  0xe1   : > { %v4250_v48 = vpop.eup %4249  ;;  %v5028_v49 = vadd.f32 1.0, %v4248_v47 }
  0xe2   : > { %v5032_v52 = vadd.f32 1.0, %v4250_v48  ;;  %4257 = vpow2.f32 %v4012_v4  ;;  %v4252_v5 = vpop.eup %4251 }
  0xe3   : > { %4259 = vrcp.f32 %v5028_v49  ;;  %v693_v53 = vpop.permute.xlu1 %692  ;;  %v4254_v54 = vpop.eup %4253  ;;  %v5042_v59 = vadd.f32 1.0, %v4252_v5  ;;  %1345 = vmatmul.f32.gmra.mxu2 %v622_v57  ;;  %vm878_vm2 = vweird.f32 %v5028_v49  ;;  %v882_v4 = vand.u32 2147483647, %v5028_v49  ;;  %1274 = vmatmul.f32.gmra.mxu1 %v617_v20 }
  0xe4   : > { %4261 = vrcp.f32 %v5032_v52  ;;  %v713_v6 = vpop.permute.xlu0 %712  ;;  %v749_v55 = vmul.f32 %v4968_v62, %v693_v53  ;;  %v4256_v7 = vpop.eup %4255  ;;  %v5045_v60 = vadd.f32 1.0, %v4254_v54  ;;  %v852_v39 = vand.u32 2147483647, %v5032_v52 }
  0xe5   : > { %4263 = vpow2.f32 %v4010_v50  ;;  %v753_v56 = vmul.f32 %v4968_v62, %v713_v6  ;;  %v5065_v13 = vadd.f32 1.0, %v4256_v7  ;;  %v854_v40 = vand.u32 2147483648, %v5032_v52 }
  0xe6   : > { %v5059_v12 = vadd.f32 %v4977_v2, %v749_v55  ;;  %4265 = vrcp.f32 %v5042_v59  ;;  %vm848_vm3 = vweird.f32 %v5032_v52  ;;  %vm853_vm5 = vcmp.eq.f32.partialorder %v852_v39, 8.507059e+37 }
  0xe7   : > { %v5048_v61 = vadd.f32 %v4977_v2, %v753_v56  ;;  %4267 = vrcp.f32 %v5045_v60  ;;  %v855_v51 = vor.u32 1.1754944e-38, %v854_v40  ;;  %v884_v5 = vand.u32 2147483648, %v5028_v49 }
  0xe8   : > { %v4258_v63 = vpop.eup %4257  ;;  %v4015_v34 = vmul.f32 -1.442695, %v5059_v12  ;;  %v4017_v56 = vmul.f32 -1.442695, %v5051_v10  ;;  %vm5138_vm7 = vcmp.eq.f32.partialorder %v882_v4, 8.507059e+37 }
  0xe9   : > { %v5054_v3 = vpop.eup %4259  ;;  %v5056_v8 = vadd.f32 1.0, %v4258_v63  ;;  %v4019_v9 = vmul.f32 -1.442695, %v5048_v61  ;;  %v4023_v63 = vmul.f32 -1.442695, %v5093_v44  ;;  %v885_v26 = vor.u32 1.1754944e-38, %v884_v5 }
  0xea   : > { %v4262_v11 = vpop.eup %4261  ;;  %v874_v14 = vmul.f32 %v5054_v3, %v5028_v49  ;;  %vm879_vm6 = vweird.f32 %v5054_v3 }
  0xeb   : > { %v4264_v15 = vpop.eup %4263  ;;  %v723_v16 = vpop.permute.xlu1 %722  ;;  %v844_v17 = vmul.f32 %v4262_v11, %v5032_v52  ;;  %4269 = vpow2.f32 %v4019_v9  ;;  %vm849_vm1 = vweird.f32 %v4262_v11  ;;  %1348 = vmatmul.f32.gmra.mxu2 %v624_v35  ;;  %vm5160_vm10 = vmor %vm878_vm2, %vm879_vm6  ;;  %vm893_vm13 = vweird.f32 %v5056_v8 }
  0xec   : > { %v5069_v24 = vadd.f32 1.0, %v4264_v15  ;;  %v755_v28 = vmul.f32 %v4968_v62, %v723_v16  ;;  %v698_v32 = vpop.permute.xlu0 %697  ;;  %4271 = vrcp.f32 %v5056_v8  ;;  %v5088_v42 = vpop.eup %4265  ;;  %v875_v46 = vsub.f32 1.0, %v874_v14  ;;  %vm5101_vm4 = vmor %vm848_vm3, %vm849_vm1  ;;  %v626_v15 = vld [vmem:[%s4854_s26 + $0x78] sm:$0xff] }
  0xed   : > { %v845_v36 = vsub.f32 1.0, %v844_v17  ;;  %v750_v18 = vmul.f32 %v4968_v62, %v698_v32  ;;  %v5096_v19 = vpop.eup %4267  ;;  %vm1013_vm1 = vweird.f32 %v5065_v13  ;;  %v904_v27 = vmul.f32 %v5088_v42, %v5042_v59 }
  0xee   : > { %4273 = vrcp.f32 %v5069_v24  ;;  %v5081_v38 = vadd.f32 %v4977_v2, %v755_v28  ;;  %v876_v0 = vmul.f32 %v5054_v3, %v875_v46  ;;  %v867_v28 = vand.u32 2147483647, %v5069_v24 }
  0xef   : > { %v846_v41 = vmul.f32 %v4262_v11, %v845_v36  ;;  %4275 = vrcp.f32 %v5065_v13  ;;  %v5113_v54 = vadd.f32 %v4977_v2, %v750_v18  ;;  %v869_v25 = vand.u32 2147483648, %v5069_v24 }
  0xf0   : > { %v4021_v43 = vmul.f32 -1.442695, %v5081_v38  ;;  %4277 = vpow2.f32 %v4015_v34  ;;  %vm863_vm8 = vweird.f32 %v5069_v24  ;;  %v877_v39 = vadd.f32 %v5054_v3, %v876_v0 }
  0xf1   : > { %v847_v47 = vadd.f32 %v4262_v11, %v846_v41  ;;  %v4270_v48 = vpop.eup %4269  ;;  %v4016_v14 = vmul.f32 -1.442695, %v5113_v54  ;;  %vm5168_vm11 = vcmp.eq.f32.partialorder %v867_v28, 8.507059e+37  ;;  %v870_v49 = vor.u32 1.1754944e-38, %v869_v25 }
  0xf2   : > { %4279 = vpow2.f32 %v4021_v43  ;;  %v5108_v53 = vpop.eup %4271  ;;  %v5110_v52 = vadd.f32 1.0, %v4270_v48  ;;  %v881_v5 = vsel %vm5160_vm10, %v5054_v3, %v877_v39  ;;  %v899_v39 = vand.u32 2147483648, %v5056_v8 }
  0xf3   : > { %v708_v6 = vpop.permute.xlu1 %707  ;;  %v851_v55 = vsel %vm5101_vm4, %v4262_v11, %v847_v47  ;;  %v889_v35 = vmul.f32 %v5108_v53, %v5056_v8  ;;  %1351 = vmatmul.f32.gmra.mxu2 %v626_v15  ;;  %v897_v47 = vand.u32 2147483647, %v5056_v8  ;;  %vm894_vm14 = vweird.f32 %v5108_v53 }
  0xf4   : > { %v5118_v57 = vpop.eup %4273  ;;  %v752_v58 = vmul.f32 %v4968_v62, %v708_v6  ;;  %v728_v7 = vpop.permute.xlu0 %727  ;;  %v856_v21 = vsel %vm853_vm5, %v855_v51, %v851_v55  ;;  %4281 = vrcp.f32 %v5110_v52  ;;  %vm998_vm3 = vweird.f32 %v5110_v52 }
  0xf5   : > { %v756_v9 = vmul.f32 %v4968_v62, %v728_v7  ;;  %v1083_v11 = vmul.f32 %v856_v21, %v5000_v31  ;;  %v859_v16 = vmul.f32 %v5118_v57, %v5069_v24  ;;  %v5130_v17 = vpop.eup %4275  ;;  %4283 = vpow2.f32 %v4017_v56  ;;  %v628_v56 = vld [vmem:[%s4854_s26 + $0x88] sm:$0xff] }
  0xf6   : > { %v5133_v22 = vadd.f32 %v4977_v2, %v752_v58  ;;  %v4278_v31 = vpop.eup %4277  ;;  %vm864_vm9 = vweird.f32 %v5118_v57  ;;  %4285 = vpow2.f32 %v4023_v63  ;;  %v890_v50 = vsub.f32 1.0, %v889_v35 }
  0xf7   : > { %v5145_v33 = vadd.f32 %v4977_v2, %v756_v9  ;;  %4025 = vmatmul.msk.f32.vlgmr.msra.gmra.mxu0 %vm1135_vm0, %v1083_v11  ;;  %v860_v34 = vsub.f32 1.0, %v859_v16  ;;  %v5164_v43 = vadd.f32 1.0, %v4278_v31  ;;  %4287 = vpow2.f32 %v4016_v14  ;;  %vm865_vm12 = vmor %vm863_vm8, %vm864_vm9 }
  0xf8   : > { %v4280_v36 = vpop.eup %4279  ;;  %v1002_v58 = vand.u32 2147483647, %v5110_v52  ;;  %v1004_v24 = vand.u32 2147483648, %v5110_v52  ;;  %v1009_v63 = vmul.f32 %v5130_v17, %v5065_v13  ;;  %v891_v9 = vmul.f32 %v5108_v53, %v890_v50  ;;  %vm5245_vm8 = vmor %vm893_vm13, %vm894_vm14 }
  0xf9   : > { %v4022_v40 = vmul.f32 -1.442695, %v5145_v33  ;;  %v861_v18 = vmul.f32 %v5118_v57, %v860_v34  ;;  %v5166_v46 = vadd.f32 1.0, %v4280_v36  ;;  %vm1014_vm2 = vweird.f32 %v5130_v17 }
  0xfa   : > { %v4282_v4 = vpop.eup %4281  ;;  %v1010_v15 = vsub.f32 1.0, %v1009_v63  ;;  %vm1003_vm5 = vcmp.eq.f32.partialorder %v1002_v58, 8.507059e+37  ;;  %v1017_v35 = vand.u32 2147483647, %v5065_v13  ;;  %v1005_v32 = vor.u32 1.1754944e-38, %v1004_v24  ;;  %vm5220_vm6 = vmor %vm1013_vm1, %vm1014_vm2 }
  0xfb   : > { %v862_v48 = vadd.f32 %v5118_v57, %v861_v18  ;;  %4289 = vpow2.f32 %v4022_v40  ;;  %v994_v20 = vmul.f32 %v4282_v4, %v5110_v52  ;;  %v4284_v7 = vpop.eup %4283  ;;  %vm999_vm15 = vweird.f32 %v4282_v4  ;;  %1354 = vmatmul.f32.gmra.mxu2 %v628_v56 }
  0xfc   : > { %v738_v51 = vpop.permute.xlu0 %737  ;;  %4291 = vrcp.f32 %v5166_v46  ;;  %v4286_v0 = vpop.eup %4285  ;;  %vm5206_vm4 = vmor %vm998_vm3, %vm999_vm15  ;;  %v1011_v34 = vmul.f32 %v5130_v17, %v1010_v15  ;;  %v892_v52 = vadd.f32 %v5108_v53, %v891_v9  ;;  %vm5251_vm9 = vcmp.eq.f32.partialorder %v897_v47, 8.507059e+37 }
  0xfd   : > { %v758_v6 = vmul.f32 %v4968_v62, %v738_v51  ;;  %v866_v55 = vsel %vm865_vm12, %v5118_v57, %v862_v48  ;;  %v995_v21 = vsub.f32 1.0, %v994_v20  ;;  %v4288_v16 = vpop.eup %4287  ;;  %v5232_v48 = vadd.f32 1.0, %v4286_v0 }
  0xfe   : > { %v871_v3 = vsel %vm5168_vm11, %v870_v49, %v866_v55  ;;  %v1012_v41 = vadd.f32 %v5130_v17, %v1011_v34  ;;  %v630_v49 = vld [vmem:[%s4854_s26 + $0x98] sm:$0xff]  ;;  %v5257_v55 = vadd.f32 1.0, %v4284_v7  ;;  %v900_v56 = vor.u32 1.1754944e-38, %v899_v39 }
  0xff   : > { %v5193_v62 = vadd.f32 %v4977_v2, %v758_v6  ;;  %v1084_v57 = vmul.f32 %v871_v3, %v5024_v1  ;;  %v996_v11 = vmul.f32 %v4282_v4, %v995_v21  ;;  %v886_v2 = vsel %vm5138_vm7, %v885_v26, %v881_v5 }
 0x100   : > { %v1019_v1 = vand.u32 2147483648, %v5065_v13  ;;  %v1016_v5 = vsel %vm5220_vm6, %v5130_v17, %v1012_v41  ;;  %vm1018_vm7 = vcmp.eq.f32.partialorder %v1017_v35, 8.507059e+37  ;;  %v1085_v20 = vmul.f32 %v886_v2, %v4994_v29 }
 0x101   : > { %v4024_v28 = vmul.f32 -1.442695, %v5193_v62  ;;  %4026 = vmatmul.msk.f32.gmra.mxu0 %vm1135_vm0, %v1084_v57  ;;  %v4290_v25 = vpop.eup %4289  ;;  %v997_v31 = vadd.f32 %v4282_v4, %v996_v11  ;;  %v896_v29 = vsel %vm5245_vm8, %v5108_v53, %v892_v52  ;;  %vm908_vm10 = vweird.f32 %v5042_v59  ;;  %v636_v52 = vld [vmem:[%s4854_s26 + $0xc8] sm:$0xff] }
 0x102   : > { %v5212_v36 = vadd.f32 1.0, %v4290_v25  ;;  %v5224_v40 = vpop.eup %4291  ;;  %v1020_v50 = vor.u32 1.1754944e-38, %v1019_v1  ;;  %vm909_vm11 = vweird.f32 %v5088_v42  ;;  %v4018_v7 = vmul.f32 -1.442695, %v5133_v22 }
 0x103   : > { %4293 = vpow2.f32 %v4024_v28  ;;  %v1001_v18 = vsel %vm5206_vm4, %v4282_v4, %v997_v31  ;;  %v905_v4 = vsub.f32 1.0, %v904_v27  ;;  %v1024_v17 = vmul.f32 %v5224_v40, %v5166_v46  ;;  %1357 = vmatmul.f32.gmra.mxu2 %v630_v49  ;;  %vm5284_vm12 = vmor %vm908_vm10, %vm909_vm11  ;;  %v632_v31 = vld [vmem:[%s4854_s26 + $0xa8] sm:$0xff] }
 0x104   : > { %4295 = vrcp.f32 %v5212_v36  ;;  %v1006_v13 = vsel %vm1003_vm5, %v1005_v32, %v1001_v18  ;;  %v1021_v8 = vsel %vm1018_vm7, %v1020_v50, %v1016_v5  ;;  %v914_v3 = vand.u32 2147483648, %v5042_v59 }
 0x105   : > { %v1093_v51 = vmul.f32 %v1006_v13, %v5048_v61  ;;  %4297 = vrcp.f32 %v5164_v43  ;;  %v906_v58 = vmul.f32 %v5088_v42, %v905_v4  ;;  %v1025_v47 = vsub.f32 1.0, %v1024_v17  ;;  %v634_v17 = vld [vmem:[%s4854_s26 + $0xb8] sm:$0xff] }
 0x106   : > { %4299 = vrcp.f32 %v5232_v48  ;;  %v919_v53 = vmul.f32 %v5096_v19, %v5045_v60  ;;  %v901_v63 = vsel %vm5251_vm9, %v900_v56, %v896_v29  ;;  %v912_v57 = vand.u32 2147483647, %v5042_v59 }
 0x107   : > { %4035 = vmatmul.msk.f32.vlgmr.msra.gmra.mxu3 %vm1135_vm0, %v1093_v51  ;;  %v907_v0 = vadd.f32 %v5088_v42, %v906_v58  ;;  %v1026_v9 = vmul.f32 %v5224_v40, %v1025_v47  ;;  %v5279_v11 = vadd.f32 1.0, %v4288_v16  ;;  %v1094_v15 = vmul.f32 %v1021_v8, %v5010_v37 }
 0x108   : > { %vm1029_vm13 = vweird.f32 %v5224_v40  ;;  %v920_v2 = vsub.f32 1.0, %v919_v53  ;;  %v1034_v16 = vand.u32 2147483648, %v5166_v46  ;;  %v1086_v59 = vmul.f32 %v901_v63, %v5020_v45 }
 0x109   : > { %4027 = vmatmul.msk.f32.gmra.mxu0 %vm1135_vm0, %v1085_v20  ;;  %v4294_v24 = vpop.eup %4293  ;;  %v1027_v14 = vadd.f32 %v5224_v40, %v1026_v9  ;;  %v915_v34 = vor.u32 1.1754944e-38, %v914_v3  ;;  %vm1028_vm14 = vweird.f32 %v5166_v46  ;;  %v1032_v35 = vand.u32 2147483647, %v5166_v46 }
 0x10a   : > { %v5272_v21 = vpop.eup %4295  ;;  %v5291_v25 = vadd.f32 1.0, %v4294_v24  ;;  %v911_v32 = vsel %vm5284_vm12, %v5088_v42, %v907_v0  ;;  %vm5304_vm15 = vcmp.eq.f32.partialorder %v912_v57, 8.507059e+37  ;;  %vm5308_vm1 = vmor %vm1028_vm14, %vm1029_vm13  ;;  %v921_v26 = vmul.f32 %v5096_v19, %v920_v2 }
 0x10b   : > { %v5289_v1 = vpop.eup %4297  ;;  %v1039_v37 = vmul.f32 %v5272_v21, %v5212_v36  ;;  %4301 = vrcp.f32 %v5279_v11  ;;  %1360 = vmatmul.f32.gmra.mxu2 %v632_v31  ;;  %v1031_v42 = vsel %vm5308_vm1, %v5224_v40, %v1027_v14  ;;  %vm923_vm2 = vweird.f32 %v5045_v60 }
 0x10c   : > { %v5313_v18 = vpop.eup %4299  ;;  %vm924_vm3 = vweird.f32 %v5096_v19  ;;  %4303 = vrcp.f32 %v5291_v25  ;;  %v1035_v46 = vor.u32 1.1754944e-38, %v1034_v16  ;;  %v934_v27 = vmul.f32 %v5289_v1, %v5164_v43 }
 0x10d   : > { %v1040_v45 = vsub.f32 1.0, %v1039_v37  ;;  %4305 = vpow2.f32 %v4018_v7  ;;  %v916_v13 = vsel %vm5304_vm15, %v915_v34, %v911_v32  ;;  %vm1033_vm4 = vcmp.eq.f32.partialorder %v1032_v35, 8.507059e+37  ;;  %vm5335_vm5 = vmor %vm923_vm2, %vm924_vm3  ;;  %v5392_v37 = vpop.f32.mrf.mxu2 }
 0x10e   : > { %v929_v40 = vand.u32 2147483648, %v5045_v60  ;;  %v1036_v49 = vsel %vm1033_vm4, %v1035_v46, %v1031_v42  ;;  %v922_v50 = vadd.f32 %v5096_v19, %v921_v26  ;;  %v927_v51 = vand.u32 2147483647, %v5045_v60 }
 0x10f   : > { %4036 = vmatmul.msk.f32.gmra.mxu3 %vm1135_vm0, %v1094_v15  ;;  %v1041_v41 = vmul.f32 %v5272_v21, %v1040_v45  ;;  %v1047_v5 = vand.u32 2147483647, %v5212_v36  ;;  %vm1044_vm6 = vweird.f32 %v5272_v21  ;;  %v1054_v6 = vmul.f32 %v5313_v18, %v5232_v48 }
 0x110   : > { %4307 = vrcp.f32 %v5257_v55  ;;  %v1087_v61 = vmul.f32 %v916_v13, %v4987_v23  ;;  %v1049_v29 = vand.u32 2147483648, %v5212_v36  ;;  %v935_v56 = vsub.f32 1.0, %v934_v27 }
 0x111   : > { %4028 = vmatmul.msk.f32.gmra.mxu0 %vm1135_vm0, %v1086_v59  ;;  %v1042_v20 = vadd.f32 %v5272_v21, %v1041_v41  ;;  %v5347_v60 = vpop.eup %4301  ;;  %v1095_v58 = vmul.f32 %v1036_v49, %v5081_v38  ;;  %v930_v8 = vor.u32 1.1754944e-38, %v929_v40  ;;  %vm1043_vm7 = vweird.f32 %v5212_v36 }
 0x112   : > { %v1055_v47 = vsub.f32 1.0, %v1054_v6  ;;  %v5351_v24 = vpop.eup %4303  ;;  %v926_v7 = vsel %vm5335_vm5, %v5096_v19, %v922_v50  ;;  %vm928_vm8 = vcmp.eq.f32.partialorder %v927_v51, 8.507059e+37  ;;  %vm5358_vm9 = vmor %vm1043_vm7, %vm1044_vm6  ;;  %vm5362_vm10 = vcmp.eq.f32.partialorder %v1047_v5, 8.507059e+37 }
 0x113   : > { %v4306_v38 = vpop.eup %4305  ;;  %1363 = vmatmul.f32.gmra.mxu2 %v634_v17  ;;  %v1046_v36 = vsel %vm5358_vm9, %v5272_v21, %v1042_v20  ;;  %vm1058_vm11 = vweird.f32 %v5232_v48  ;;  %vm1059_vm12 = vweird.f32 %v5313_v18  ;;  %v1050_v53 = vor.u32 1.1754944e-38, %v1049_v29 }
 0x114   : > { %v1056_v19 = vmul.f32 %v5313_v18, %v1055_v47  ;;  %v936_v63 = vmul.f32 %v5289_v1, %v935_v56  ;;  %v1064_v0 = vand.u32 2147483648, %v5232_v48  ;;  %v949_v57 = vmul.f32 %v5347_v60, %v5279_v11  ;;  %vm5386_vm13 = vmor %vm1058_vm11, %vm1059_vm12 }
 0x115   : > { %v931_v9 = vsel %vm928_vm8, %v930_v8, %v926_v7  ;;  %v1062_v15 = vand.u32 2147483647, %v5232_v48  ;;  %v1069_v28 = vmul.f32 %v5351_v24, %v5291_v25  ;;  %v1051_v31 = vsel %vm5362_vm10, %v1050_v53, %v1046_v36  ;;  %v5422_v4 = vpop.f32.mrf.mxu2 }
 0x116   : > { %v1057_v21 = vadd.f32 %v5313_v18, %v1056_v19  ;;  %v5382_v2 = vpop.eup %4307  ;;  %v5390_v16 = vadd.f32 1.0, %v4306_v38  ;;  %vm939_vm14 = vweird.f32 %v5289_v1  ;;  %v1088_v48 = vmul.f32 %v931_v9, %v4997_v30  ;;  %v640_v38 = vld [vmem:[%s4854_s26 + $0xe8] sm:$0xff] }
 0x117   : > { %4037 = vmatmul.msk.f32.gmra.mxu3 %vm1135_vm0, %v1095_v58  ;;  %v1070_v59 = vsub.f32 1.0, %v1069_v28  ;;  %v937_v34 = vadd.f32 %v5289_v1, %v936_v63  ;;  %v1065_v35 = vor.u32 1.1754944e-38, %v1064_v0  ;;  %v950_v32 = vsub.f32 1.0, %v949_v57 }
 0x118   : > { %v1096_v39 = vmul.f32 %v1051_v31, %v5145_v33  ;;  %v944_v26 = vand.u32 2147483648, %v5164_v43  ;;  %v1061_v45 = vsel %vm5386_vm13, %v5313_v18, %v1057_v21  ;;  %vm1063_vm15 = vcmp.eq.f32.partialorder %v1062_v15, 8.507059e+37  ;;  %v635_v21 = vld [vmem:[%s4854_s26 + $0xc0] sm:$0xff]  ;;  %v642_v15 = vld [vmem:[%s4854_s26 + $0xf8] sm:$0xff] }
 0x119   : > { %4029 = vmatmul.msk.f32.gmra.mxu0 %vm1135_vm0, %v1087_v61  ;;  %vm938_vm1 = vweird.f32 %v5164_v43  ;;  %v942_v42 = vand.u32 2147483647, %v5164_v43  ;;  %v964_v30 = vmul.f32 %v5382_v2, %v5257_v55  ;;  %4309 = vrcp.f32 %v5390_v16 }
 0x11a   : > { %vm940_vm2 = vmor %vm938_vm1, %vm939_vm14  ;;  %v1071_v33 = vmul.f32 %v5351_v24, %v1070_v59  ;;  %v1066_v46 = vsel %vm1063_vm15, %v1065_v35, %v1061_v45  ;;  %v951_v43 = vmul.f32 %v5347_v60, %v950_v32  ;;  %v945_v41 = vor.u32 1.1754944e-38, %v944_v26  ;;  %v637_v59 = vld [vmem:[%s4854_s26 + $0xd0] sm:$0xff]  ;;  %v1266_v45 = vpop.f32.mrf.mxu1 }
 0x11b   : > { %1366 = vmatmul.f32.gmra.mxu2 %v636_v52  ;;  %v941_v18 = vsel %vm940_vm2, %v5289_v1, %v937_v34  ;;  %vm943_vm3 = vcmp.eq.f32.partialorder %v942_v42, 8.507059e+37  ;;  %v965_v27 = vsub.f32 1.0, %v964_v30  ;;  %v1097_v40 = vmul.f32 %v1066_v46, %v5093_v44  ;;  %v638_v1 = vld [vmem:[%s4854_s26 + $0xd8] sm:$0xff]  ;;  %v641_v35 = vld [vmem:[%s4854_s26 + $0xf0] sm:$0xff] }
 0x11c   : > { %v946_v13 = vsel %vm943_vm3, %v945_v41, %v941_v18  ;;  %v1072_v49 = vadd.f32 %v5351_v24, %v1071_v33  ;;  %vm1074_vm4 = vweird.f32 %v5351_v24  ;;  %v952_v50 = vadd.f32 %v5347_v60, %v951_v43 }
 0x11d   : > { %vm954_vm5 = vweird.f32 %v5347_v60  ;;  %v1079_v51 = vand.u32 2147483648, %v5291_v25  ;;  %v959_v20 = vand.u32 2147483648, %v5279_v11  ;;  %vm1073_vm6 = vweird.f32 %v5291_v25  ;;  %v5459_v0 = vpop.f32.mrf.mxu2 }
 0x11e   : > { %v1077_v44 = vand.u32 2147483647, %v5291_v25  ;;  %v1089_v6 = vmul.f32 %v946_v13, %v5059_v12  ;;  %vm953_vm7 = vweird.f32 %v5279_v11  ;;  %v957_v61 = vand.u32 2147483647, %v5279_v11  ;;  %vm5430_vm8 = vmor %vm1073_vm6, %vm1074_vm4 }
 0x11f   : > { %4038 = vmatmul.msk.f32.gmra.mxu3 %vm1135_vm0, %v1096_v39  ;;  %v4310_v5 = vpop.eup %4309  ;;  %v966_v29 = vmul.f32 %v5382_v2, %v965_v27  ;;  %vm5436_vm9 = vmor %vm953_vm7, %vm954_vm5  ;;  %v1076_v12 = vsel %vm5430_vm8, %v5351_v24, %v1072_v49  ;;  %vm968_vm10 = vweird.f32 %v5257_v55  ;;  %v1080_v25 = vor.u32 1.1754944e-38, %v1079_v51 }
 0x120   : > { %v956_v11 = vsel %vm5436_vm9, %v5347_v60, %v952_v50  ;;  %vm969_vm11 = vweird.f32 %v5382_v2  ;;  %v979_v58 = vmul.f32 %v4310_v5, %v5390_v16  ;;  %v960_v8 = vor.u32 1.1754944e-38, %v959_v20 }
 0x121   : > { %4030 = vmatmul.msk.f32.gmra.mxu0 %vm1135_vm0, %v1088_v48  ;;  %vm1078_vm12 = vcmp.eq.f32.partialorder %v1077_v44, 8.507059e+37  ;;  %v974_v47 = vand.u32 2147483648, %v5257_v55  ;;  %vm958_vm13 = vcmp.eq.f32.partialorder %v957_v61, 8.507059e+37  ;;  %v967_v7 = vadd.f32 %v5382_v2, %v966_v29  ;;  %vm970_vm14 = vmor %vm968_vm10, %vm969_vm11 }
 0x122   : > { %v1081_v24 = vsel %vm1078_vm12, %v1080_v25, %v1076_v12  ;;  %v972_v23 = vand.u32 2147483647, %v5257_v55  ;;  %v961_v3 = vsel %vm958_vm13, %v960_v8, %v956_v11  ;;  %v980_v60 = vsub.f32 1.0, %v979_v58  ;;  %v1269_v46 = vpop.f32.mrf.mxu1 }
 0x123   : > { %1369 = vmatmul.f32.gmra.mxu2 %v638_v1  ;;  %v1098_v36 = vmul.f32 %v1081_v24, %v5193_v62  ;;  %v975_v19 = vor.u32 1.1754944e-38, %v974_v47  ;;  %v1090_v53 = vmul.f32 %v961_v3, %v5113_v54  ;;  %v971_v63 = vsel %vm970_vm14, %v5382_v2, %v967_v7 }
 0x124   : > { %vm973_vm15 = vcmp.eq.f32.partialorder %v972_v23, 8.507059e+37  ;;  %v981_v55 = vmul.f32 %v4310_v5, %v980_v60  ;;  %vm984_vm1 = vweird.f32 %v4310_v5  ;;  %v989_v54 = vand.u32 2147483648, %v5390_v16 }
 0x125   : > { %v976_v57 = vsel %vm973_vm15, %v975_v19, %v971_v63  ;;  %vm983_vm2 = vweird.f32 %v5390_v16  ;;  %v987_v28 = vand.u32 2147483647, %v5390_v16  ;;  %v639_v16 = vld [vmem:[%s4854_s26 + $0xe0] sm:$0xff] }
 0x126   : > { %v1091_v9 = vmul.f32 %v976_v57, %v5051_v10  ;;  %v982_v62 = vadd.f32 %v4310_v5, %v981_v55  ;;  %vm985_vm3 = vmor %vm983_vm2, %vm984_vm1  ;;  %v5470_v10 = vpop.f32.mrf.mxu2  ;;  %v990_v31 = vor.u32 1.1754944e-38, %v989_v54 }
 0x127   : > { %4039 = vmatmul.msk.f32.gmra.mxu3 %vm1135_vm0, %v1097_v40  ;;  %vm988_vm4 = vcmp.eq.f32.partialorder %v987_v28, 8.507059e+37 }
 0x128   : > { %v986_v2 = vsel %vm985_vm3, %v4310_v5, %v982_v62 }
 0x129   : > { %4031 = vmatmul.msk.f32.gmra.mxu0 %vm1135_vm0, %v1089_v6  ;;  %v991_v14 = vsel %vm988_vm4, %v990_v31, %v986_v2 }
 0x12a   : > { %v1092_v48 = vmul.f32 %v991_v14, %v5133_v22  ;;  %v5488_v22 = vld [vmem:[%s7303_s6] ss:$0 sm:$0xff] }
 0x12b   : > { %1372 = vmatmul.f32.gmra.mxu2 %v640_v38 }
 0x12e   : > { %v5475_v34 = vpop.f32.mrf.mxu2 }
 0x12f   : > { %4040 = vmatmul.msk.f32.gmra.mxu3 %vm1135_vm0, %v1098_v36 }
 0x131   : > { %4032 = vmatmul.msk.f32.gmra.mxu0 %vm1135_vm0, %v1090_v53  ;;  %v4637_v53 = vmov 128.0  }
 0x132   : > { %4311 = vrcp.f32 %v4637_v53 }
 0x133   : > { %1375 = vmatmul.f32.gmra.mxu2 %v642_v15 }
 0x136   : > { %v5479_v32 = vpop.f32.mrf.mxu2 }
 0x137   : > { %1301 = vmatmul.f32.vlgmr.msrb.gmra.mxu3 %v635_v21 }
 0x138   : > { %v4312_v63 = vpop.eup %4311 }
 0x139   : > { %4033 = vmatmul.msk.f32.gmra.mxu0 %vm1135_vm0, %v1091_v9  ;;  %v1434_v55 = vmul.f32 128.0, %v4312_v63 }
 0x13b   : > { %v1435_v57 = vsub.f32 1.0, %v1434_v55 }
 0x13d   : > { %v1436_v21 = vmul.f32 %v4312_v63, %v1435_v57 }
 0x13e   : > { %v5481_v52 = vpop.f32.mrf.mxu2 }
 0x13f   : > { %1304 = vmatmul.f32.gmra.mxu3 %v637_v59  ;;  %v1437_v62 = vadd.f32 %v4312_v63, %v1436_v21 }
 0x141   : > { %4034 = vmatmul.msk.f32.gmra.mxu0 %vm1135_vm0, %v1092_v48  ;;  %vm1438_vm0 = vweird.f32 %v4312_v63 }
 0x142   : > { %v5515_v54 = vsel %vm1438_vm0, %v4312_v63, %v1437_v62 }
 0x146   : > { %v5483_v39 = vpop.f32.mrf.mxu2 }
 0x147   : > { %1307 = vmatmul.f32.gmra.mxu3 %v639_v16 }
 0x14e   : > { %v1331_v26 = vpop.f32.mrf.mxu2 }
 0x14f   : > { %1310 = vmatmul.f32.gmra.mxu3 %v641_v35 }
 0x156   : > { %v1334_v33 = vpop.f32.mrf.mxu2 }
 0x158   : > { %v1272_v49 = vpop.f32.mrf.mxu1 }
 0x15e   : > { %v1337_v13 = vpop.f32.mrf.mxu2 }
 0x160   : > { %v1275_v6 = vpop.f32.mrf.mxu1 }
 0x166   : > { %v1340_v20 = vpop.f32.mrf.mxu2 }
 0x16e   : > { %v1343_v12 = vpop.f32.mrf.mxu2 }
 0x174   : > { %v1201_v42 = vpop.f32.mrf.mxu0 }
 0x175   : > { %v1267_v30 = vadd.f32 %v1266_v45, %v1201_v42 }
 0x176   : > { %v1346_v47 = vpop.f32.mrf.mxu2 }
 0x177   : > { %v1332_v18 = vadd.f32 %v1331_v26, %v1267_v30 }
 0x179   : > { %v1383_v43 = vadd.f32 %v5488_v22, %v1332_v18 }
 0x17b   : > { %1401 = vadd.xlane.f32.xlu1 %v1383_v43 }
 0x17e   : > { %v1204_v41 = vpop.f32.mrf.mxu0 }
 0x17f   : > { %v1270_v27 = vadd.f32 %v1269_v46, %v1204_v41 }
 0x181   : > { %v1335_v40 = vadd.f32 %v1334_v33, %v1270_v27 }
 0x183   : > { %v1384_v50 = vadd.f32 %v5488_v22, %v1335_v40 }
 0x185   : > { %1403 = vadd.xlane.f32.xlu2 %v1384_v50 }
 0x186   : > { %v1207_v51 = vpop.f32.mrf.mxu0 }
 0x187   : > { %v1273_v1 = vadd.f32 %v1272_v49, %v1207_v51 }
 0x189   : > { %v1338_v5 = vadd.f32 %v1337_v13, %v1273_v1 }
 0x18b   : > { %v5493_v44 = vadd.f32 %v5488_v22, %v1338_v5 }
 0x18d   : > { %1405 = vadd.xlane.f32.xlu0 %v5493_v44 }
 0x18e   : > { %v1210_v61 = vpop.f32.mrf.mxu0 }
 0x18f   : > { %v1276_v17 = vadd.f32 %v1275_v6, %v1210_v61 }
 0x191   : > { %v1341_v29 = vadd.f32 %v1340_v20, %v1276_v17 }
 0x193   : > { %v5497_v56 = vadd.f32 %v5488_v22, %v1341_v29 }
 0x195   : > { %1407 = vadd.xlane.f32.xlu2 %v5497_v56 }
 0x196   : > { %v1213_v11 = vpop.f32.mrf.mxu0 }
 0x197   : > { %v1279_v25 = vadd.f32 %v5392_v37, %v1213_v11  ;;  %v1349_v37 = vpop.f32.mrf.mxu2 }
 0x199   : > { %v1344_v58 = vadd.f32 %v1343_v12, %v1279_v25 }
 0x19b   : > { %v5502_v8 = vadd.f32 %v5488_v22, %v1344_v58 }
 0x19d   : > { %1409 = vadd.xlane.f32.xlu1 %v5502_v8 }
 0x19e   : > { %v1216_v24 = vpop.f32.mrf.mxu0 }
 0x19f   : > { %v1282_v7 = vadd.f32 %v5422_v4, %v1216_v24  ;;  %v1231_v4 = vpop.f32.mrf.mxu3  ;;  %v1352_v15 = vpop.f32.mrf.mxu2 }
 0x1a0   : > { %v1297_v12 = vadd.f32 %v5481_v52, %v1231_v4 }
 0x1a1   : > { %v1347_v23 = vadd.f32 %v1346_v47, %v1282_v7 }
 0x1a3   : > { %v5507_v3 = vadd.f32 %v5488_v22, %v1347_v23 }
 0x1a5   : > { %1411 = vadd.xlane.f32.xlu2 %v5507_v3 }
 0x1a6   : > { %v1219_v60 = vpop.f32.mrf.mxu0 }
 0x1a7   : > { %v1285_v38 = vadd.f32 %v5459_v0, %v1219_v60  ;;  %v1234_v9 = vpop.f32.mrf.mxu3  ;;  %v1355_v16 = vpop.f32.mrf.mxu2 }
 0x1a8   : > { %v1300_v52 = vadd.f32 %v5483_v39, %v1234_v9 }
 0x1a9   : > { %v1350_v36 = vadd.f32 %v1349_v37, %v1285_v38 }
 0x1ab   : > { %v5512_v19 = vadd.f32 %v5488_v22, %v1350_v36 }
 0x1ad   : > { %1413 = vadd.xlane.f32.xlu2 %v5512_v19 }
 0x1ae   : > { %v1222_v28 = vpop.f32.mrf.mxu0 }
 0x1af   : > { %v1237_v0 = vpop.f32.mrf.mxu3  ;;  %v1288_v59 = vadd.f32 %v5470_v10, %v1222_v28 }
 0x1b1   : > { %v1353_v26 = vadd.f32 %v1352_v15, %v1288_v59 }
 0x1b3   : > { %v5528_v46 = vadd.f32 %v5488_v22, %v1353_v26 }
 0x1b6   : > { %v1225_v45 = vpop.f32.mrf.mxu0 }
 0x1b7   : > { %v1240_v35 = vpop.f32.mrf.mxu3  ;;  %v1291_v33 = vadd.f32 %v5475_v34, %v1225_v45 }
 0x1b9   : > { %v1356_v41 = vadd.f32 %v1355_v16, %v1291_v33 }
 0x1be   : > { %v1228_v49 = vpop.f32.mrf.mxu0 }
 0x1bf   : > { %v1243_v40 = vpop.f32.mrf.mxu3  ;;  %v1294_v51 = vadd.f32 %v5479_v32, %v1228_v49 }
 0x1ee   : > { %v1402_v2 = vpop.xlane.xlu1 %1401 }
 0x1ef   : > { %v1440_v31 = vmul.f32 %v5515_v54, %v1402_v2 }
 0x1f1   : > { %v5518_v14 = vsub.f32 %v1383_v43, %v1440_v31  ;;  %v1358_v43 = vpop.f32.mrf.mxu2 }
 0x1f2   : > { %v1359_v6 = vadd.f32 %v1358_v43, %v1294_v51 }
 0x1f3   : > { %v1472_v48 = vmul.f32 %v5518_v14, %v5518_v14 }
 0x1f4   : > { %v5553_v32 = vadd.f32 %v5488_v22, %v1359_v6 }
 0x1f5   : > { %1488 = vadd.xlane.f32.xlu0 %v1472_v48 }
 0x1f8   : > { %v1404_v42 = vpop.xlane.xlu2 %1403 }
 0x1f9   : > { %v1441_v30 = vmul.f32 %v5515_v54, %v1404_v42  ;;  %v1361_v5 = vpop.f32.mrf.mxu2 }
 0x1fa   : > { %v1362_v25 = vadd.f32 %v1361_v5, %v1297_v12 }
 0x1fb   : > { %v5525_v18 = vsub.f32 %v1384_v50, %v1441_v30  ;;  %v5538_v50 = vadd.f32 %v5488_v22, %v1356_v41 }
 0x1fc   : > { %v5562_v24 = vadd.f32 %v5488_v22, %v1362_v25 }
 0x1fd   : > { %v1473_v10 = vmul.f32 %v5525_v18, %v5525_v18  ;;  %1415 = vadd.xlane.f32.xlu0 %v5528_v46 }
 0x1ff   : > { %1490 = vadd.xlane.f32.xlu1 %v1473_v10 }
 0x200   : > { %v1406_v27 = vpop.xlane.xlu0 %1405 }
 0x201   : > { %v1442_v13 = vmul.f32 %v5515_v54, %v1406_v27  ;;  %v1364_v47 = vpop.f32.mrf.mxu2 }
 0x202   : > { %v1365_v38 = vadd.f32 %v1364_v47, %v1300_v52 }
 0x203   : > { %v5535_v34 = vsub.f32 %v5493_v44, %v1442_v13  ;;  %v5548_v44 = vpop.f32.mrf.mxu3 }
 0x204   : > { %v5575_v4 = vadd.f32 %v5488_v22, %v1365_v38 }
 0x205   : > { %v1474_v1 = vmul.f32 %v5535_v34, %v5535_v34  ;;  %1417 = vadd.xlane.f32.xlu0 %v5538_v50 }
 0x207   : > { %1492 = vadd.xlane.f32.xlu1 %v1474_v1 }
 0x208   : > { %v1408_v20 = vpop.xlane.xlu2 %1407 }
 0x209   : > { %v1443_v61 = vmul.f32 %v5515_v54, %v1408_v20  ;;  %v1367_v36 = vpop.f32.mrf.mxu2 }
 0x20b   : > { %v5546_v17 = vsub.f32 %v5497_v56, %v1443_v61  ;;  %v1302_v23 = vpop.f32.mrf.mxu3 }
 0x20c   : > { %v1303_v53 = vadd.f32 %v1302_v23, %v1237_v0 }
 0x20d   : > { %v1475_v29 = vmul.f32 %v5546_v17, %v5546_v17 }
 0x20e   : > { %v1368_v57 = vadd.f32 %v1367_v36, %v1303_v53  ;;  %v5625_v36 = vld [vmem:[%s7305_s8] ss:$0 sm:$0xff] }
 0x20f   : > { %1494 = vadd.xlane.f32.xlu2 %v1475_v29  ;;  %1419 = vadd.xlane.f32.xlu1 %v5553_v32 }
 0x210   : > { %v1410_v11 = vpop.xlane.xlu1 %1409  ;;  %v5585_v0 = vadd.f32 %v5488_v22, %v1368_v57 }
 0x211   : > { %v1444_v58 = vmul.f32 %v5515_v54, %v1410_v11 }
 0x213   : > { %v5559_v56 = vsub.f32 %v5502_v8, %v1444_v58  ;;  %v1305_v39 = vpop.f32.mrf.mxu3  ;;  %v5613_v58 = vld [vmem:[%s7304_s7] ss:$0 sm:$0xff] }
 0x214   : > { %v1306_v62 = vadd.f32 %v1305_v39, %v1240_v35 }
 0x215   : > { %v1476_v7 = vmul.f32 %v5559_v56, %v5559_v56 }
 0x217   : > { %1421 = vadd.xlane.f32.xlu1 %v5562_v24  ;;  %1496 = vadd.xlane.f32.xlu2 %v1476_v7 }
 0x218   : > { %v1412_v60 = vpop.xlane.xlu2 %1411 }
 0x219   : > { %v1445_v37 = vmul.f32 %v5515_v54, %v1412_v60 }
 0x21b   : > { %v5570_v8 = vsub.f32 %v5507_v3, %v1445_v37  ;;  %v1370_v3 = vpop.f32.mrf.mxu2  ;;  %v1308_v2 = vpop.f32.mrf.mxu3 }
 0x21c   : > { %v1371_v28 = vadd.f32 %v1370_v3, %v1306_v62  ;;  %v1309_v31 = vadd.f32 %v1308_v2, %v1243_v40 }
 0x21d   : > { %v1477_v63 = vmul.f32 %v5570_v8, %v5570_v8 }
 0x21e   : > { %v5589_v59 = vadd.f32 %v5488_v22, %v1371_v28 }
 0x21f   : > { %1498 = vadd.xlane.f32.xlu0 %v1477_v63  ;;  %1423 = vadd.xlane.f32.xlu2 %v5575_v4 }
 0x220   : > { %v1414_v55 = vpop.xlane.xlu2 %1413 }
 0x221   : > { %v1446_v9 = vmul.f32 %v5515_v54, %v1414_v55 }
 0x223   : > { %v5580_v21 = vsub.f32 %v5512_v19, %v1446_v9  ;;  %v1373_v48 = vpop.f32.mrf.mxu2  ;;  %v1311_v20 = vpop.f32.mrf.mxu3 }
 0x224   : > { %v1374_v19 = vadd.f32 %v1373_v48, %v1309_v31  ;;  %v1312_v25 = vadd.f32 %v1311_v20, %v5548_v44 }
 0x225   : > { %v1478_v15 = vmul.f32 %v5580_v21, %v5580_v21 }
 0x226   : > { %v5593_v16 = vadd.f32 %v5488_v22, %v1374_v19 }
 0x227   : > { %1500 = vadd.xlane.f32.xlu0 %v1478_v15  ;;  %1425 = vadd.xlane.f32.xlu2 %v5585_v0 }
 0x22f   : > { %1427 = vadd.xlane.f32.xlu0 %v5589_v59 }
 0x237   : > { %1429 = vadd.xlane.f32.xlu0 %v5593_v16 }
 0x268   : > { %v1489_v35 = vpop.xlane.xlu0 %1488 }
 0x269   : > { %v1520_v26 = vmul.f32 %v1489_v35, %v5515_v54 }
 0x26b   : > { %v1536_v45 = vadd.f32 1e-05, %v1520_v26 }
 0x26d   : > { %4313 = vrsqrt.f32 %v1536_v45  ;;  %vm1558_vm6 = vweird.f32 %v1536_v45 }
 0x270   : > { %v1416_v42 = vpop.xlane.xlu0 %1415 }
 0x271   : > { %v1447_v30 = vmul.f32 %v5515_v54, %v1416_v42 }
 0x272   : > { %v1491_v33 = vpop.xlane.xlu1 %1490 }
 0x273   : > { %v4314_v10 = vpop.eup %4313  ;;  %v5599_v43 = vsub.f32 %v5528_v46, %v1447_v30  ;;  %v1521_v41 = vmul.f32 %v1491_v33, %v5515_v54 }
 0x274   : > { %v1553_v27 = vmul.f32 %v4314_v10, %v1536_v45  ;;  %vm1559_vm5 = vweird.f32 %v4314_v10 }
 0x275   : > { %v1537_v13 = vadd.f32 1e-05, %v1521_v41  ;;  %v1479_v40 = vmul.f32 %v5599_v43, %v5599_v43  ;;  %vm1560_vm7 = vmor %vm1558_vm6, %vm1559_vm5 }
 0x276   : > { %v1554_v49 = vmul.f32 %v4314_v10, %v1553_v27 }
 0x277   : > { %4315 = vrsqrt.f32 %v1537_v13  ;;  %1502 = vadd.xlane.f32.xlu1 %v1479_v40  ;;  %vm1568_vm9 = vweird.f32 %v1537_v13 }
 0x278   : > { %v1555_v51 = vmul.f32 0.5, %v1554_v49  ;;  %v1418_v1 = vpop.xlane.xlu0 %1417 }
 0x279   : > { %v1448_v5 = vmul.f32 %v5515_v54, %v1418_v1 }
 0x27a   : > { %v1556_v6 = vsub.f32 1.5, %v1555_v51  ;;  %v1493_v61 = vpop.xlane.xlu1 %1492 }
 0x27b   : > { %v5606_v46 = vsub.f32 %v5538_v50, %v1448_v5  ;;  %v1522_v29 = vmul.f32 %v1493_v61, %v5515_v54  ;;  %v1376_v50 = vpop.f32.mrf.mxu2 }
 0x27c   : > { %v1557_v12 = vmul.f32 %v4314_v10, %v1556_v6  ;;  %v1377_v38 = vadd.f32 %v1376_v50, %v1312_v25  ;;  %v4126_v25 = vld [vmem:[%s7306_s9 + $0x38] sm:$0xff] }
 0x27d   : > { %v4316_v11 = vpop.eup %4315  ;;  %v5615_v47 = vadd.f32 1e-05, %v1522_v29  ;;  %v1480_v7 = vmul.f32 %v5606_v46, %v5606_v46  ;;  %2546 = vmatpush.bf16.msra.mxu3 %v4126_v25 }
 0x27e   : > { %v1561_v23 = vsel %vm1560_vm7, %v4314_v10, %v1557_v12  ;;  %v1563_v52 = vmul.f32 %v4316_v11, %v1537_v13  ;;  %vm1569_vm8 = vweird.f32 %v4316_v11  ;;  %v5640_v28 = vadd.f32 %v5488_v22, %v1377_v38 }
 0x27f   : > { %v1712_v60 = vmul.f32 %v1561_v23, %v5518_v14  ;;  %4317 = vrsqrt.f32 %v5615_v47  ;;  %1504 = vadd.xlane.f32.xlu1 %v1480_v7  ;;  %vm1570_vm10 = vmor %vm1568_vm9, %vm1569_vm8  ;;  %vm1578_vm12 = vweird.f32 %v5615_v47 }
 0x280   : > { %v1564_v44 = vmul.f32 %v4316_v11, %v1563_v52 }
 0x281   : > { %v1731_v37 = vmul.f32 %v5613_v58, %v1712_v60 }
 0x282   : > { %v1565_v53 = vmul.f32 0.5, %v1564_v44  ;;  %v1495_v63 = vpop.xlane.xlu2 %1494  ;;  %v1420_v39 = vpop.xlane.xlu1 %1419 }
 0x283   : > { %v1523_v55 = vmul.f32 %v1495_v63, %v5515_v54  ;;  %v1449_v57 = vmul.f32 %v5515_v54, %v1420_v39  ;;  %v5630_v14 = vadd.f32 %v5625_v36, %v1731_v37  ;;  %v4125_v63 = vld [vmem:[%s7306_s9 + $0x30] sm:$0xff] }
 0x284   : > { %v1566_v9 = vsub.f32 1.5, %v1565_v53  ;;  %2547 = vmatpush.bf16.msra.mxu3 %v4125_v63 }
 0x285   : > { %v5632_v3 = vpop.eup %4317  ;;  %v5634_v62 = vadd.f32 1e-05, %v1523_v55  ;;  %v5637_v15 = vsub.f32 %v5553_v32, %v1449_v57  ;;  %v5643_v2 = vmul.f32 0.70710677, %v5630_v14 }
 0x286   : > { %v1567_v31 = vmul.f32 %v4316_v11, %v1566_v9  ;;  %v1573_v48 = vmul.f32 %v5632_v3, %v5615_v47  ;;  %vm1579_vm11 = vweird.f32 %v5632_v3 }
 0x287   : > { %4319 = vrsqrt.f32 %v5634_v62  ;;  %1431 = vadd.xlane.f32.xlu1 %v5640_v28  ;;  %v1481_v32 = vmul.f32 %v5637_v15, %v5637_v15  ;;  %v1798_v22 = vmul.f32 %v5643_v2, %v5643_v2  ;;  %vm5684_vm13 = vmor %vm1578_vm12, %vm1579_vm11  ;;  %vm1588_vm15 = vweird.f32 %v5634_v62 }
 0x288   : > { %v1571_v19 = vsel %vm1570_vm10, %v4316_v11, %v1567_v31  ;;  %v1574_v35 = vmul.f32 %v5632_v3, %v1573_v48 }
 0x289   : > { %v1713_v26 = vmul.f32 %v1571_v19, %v5525_v18  ;;  %1506 = vadd.xlane.f32.xlu2 %v1481_v32  ;;  %v5655_v45 = vmin.f32 %v1798_v22, 16.0 }
 0x28a   : > { %v1575_v42 = vmul.f32 0.5, %v1574_v35  ;;  %v1497_v30 = vpop.xlane.xlu2 %1496  ;;  %v1422_v33 = vpop.xlane.xlu1 %1421 }
 0x28b   : > { %v1732_v10 = vmul.f32 %v5613_v58, %v1713_v26  ;;  %v1524_v41 = vmul.f32 %v1497_v30, %v5515_v54  ;;  %v1450_v27 = vmul.f32 %v5515_v54, %v1422_v33  ;;  %v1800_v13 = vmul.f32 2.1237322e-06, %v5655_v45 }
 0x28c   : > { %v1576_v40 = vsub.f32 1.5, %v1575_v42  ;;  %v1811_v49 = vmul.f32 3.8918573e-05, %v5655_v45 }
 0x28d   : > { %v4320_v51 = vpop.eup %4319  ;;  %v5662_v1 = vadd.f32 1e-05, %v1524_v41  ;;  %v5665_v18 = vsub.f32 %v5562_v24, %v1450_v27  ;;  %v5668_v5 = vadd.f32 %v5625_v36, %v1732_v10  ;;  %v1801_v6 = vadd.f32 0.00028619796, %v1800_v13 }
 0x28e   : > { %v1583_v20 = vmul.f32 %v4320_v51, %v5634_v62  ;;  %v1812_v61 = vadd.f32 0.001143296, %v1811_v49  ;;  %v1577_v29 = vmul.f32 %v5632_v3, %v1576_v40  ;;  %vm1589_vm14 = vweird.f32 %v4320_v51 }
 0x28f   : > { %4321 = vrsqrt.f32 %v5662_v1  ;;  %v1482_v12 = vmul.f32 %v5665_v18, %v5665_v18  ;;  %v5677_v24 = vmul.f32 0.70710677, %v5668_v5  ;;  %v1802_v44 = vmul.f32 %v1801_v6, %v5655_v45  ;;  %vm1590_vm1 = vmor %vm1588_vm15, %vm1589_vm14 }
 0x290   : > { %v1584_v11 = vmul.f32 %v4320_v51, %v1583_v20  ;;  %v1813_v7 = vmul.f32 %v1812_v61, %v5655_v45  ;;  %v1581_v47 = vsel %vm5684_vm13, %v5632_v3, %v1577_v29  ;;  %v4123_v61 = vld [vmem:[%s7306_s9 + $0x20] sm:$0xff]  ;;  %vm1598_vm3 = vweird.f32 %v5662_v1 }
 0x291   : > { %1508 = vadd.xlane.f32.xlu2 %v1482_v12  ;;  %v1838_v38 = vmul.f32 %v5677_v24, %v5677_v24  ;;  %v1714_v32 = vmul.f32 %v1581_v47, %v5535_v34  ;;  %v1803_v35 = vadd.f32 0.0036580483, %v1802_v44 }
 0x292   : > { %v1585_v23 = vmul.f32 0.5, %v1584_v11  ;;  %v1499_v52 = vpop.xlane.xlu0 %1498  ;;  %v1424_v60 = vpop.xlane.xlu2 %1423  ;;  %v1814_v39 = vadd.f32 0.014752088, %v1813_v7 }
 0x293   : > { %v1525_v37 = vmul.f32 %v1499_v52, %v5515_v54  ;;  %v1451_v53 = vmul.f32 %v5515_v54, %v1424_v60  ;;  %v5699_v57 = vmin.f32 %v1838_v38, 16.0  ;;  %v1804_v40 = vmul.f32 %v1803_v35, %v5655_v45 }
 0x294   : > { %v1586_v55 = vsub.f32 1.5, %v1585_v23  ;;  %v1815_v48 = vmul.f32 %v1814_v39, %v5655_v45  ;;  %v1733_v20 = vmul.f32 %v5613_v58, %v1714_v32 }
 0x295   : > { %v5701_v9 = vpop.eup %4321  ;;  %v5704_v31 = vadd.f32 1e-05, %v1525_v37  ;;  %v5707_v3 = vsub.f32 %v5575_v4, %v1451_v53  ;;  %v4124_v4 = vld [vmem:[%s7306_s9 + $0x28] sm:$0xff]  ;;  %v1840_v34 = vmul.f32 2.1237322e-06, %v5699_v57 }
 0x296   : > { %v1587_v22 = vmul.f32 %v4320_v51, %v1586_v55  ;;  %v1593_v19 = vmul.f32 %v5701_v9, %v5662_v1  ;;  %v1816_v26 = vadd.f32 0.112945676, %v1815_v48  ;;  %v1851_v10 = vmul.f32 3.8918573e-05, %v5699_v57  ;;  %2548 = vmatpush.bf16.msra.mxu3 %v4124_v4  ;;  %v4121_v4 = vld [vmem:[%s7306_s9 + $0x10] sm:$0xff] }
 0x297   : > { %4323 = vrsqrt.f32 %v5704_v31  ;;  %v1483_v62 = vmul.f32 %v5707_v3, %v5707_v3  ;;  %v1841_v49 = vadd.f32 0.00028619796, %v1840_v34  ;;  %v1805_v60 = vadd.f32 0.05243302, %v1804_v40 }
 0x298   : > { %v1591_v42 = vsel %vm1590_vm1, %v4320_v51, %v1587_v22  ;;  %v1594_v30 = vmul.f32 %v5701_v9, %v1593_v19  ;;  %v1817_v33 = vmul.f32 %v1816_v26, %v5655_v45  ;;  %v1852_v12 = vadd.f32 0.001143296, %v1851_v10 }
 0x299   : > { %1510 = vadd.xlane.f32.xlu0 %v1483_v62  ;;  %v1715_v41 = vmul.f32 %v1591_v42, %v5546_v17  ;;  %v1842_v17 = vmul.f32 %v1841_v49, %v5699_v57  ;;  %v5744_v38 = vadd.f32 %v5625_v36, %v1733_v20  ;;  %v1806_v22 = vmul.f32 %v1805_v60, %v5655_v45 }
 0x29a   : > { %v1501_v27 = vpop.xlane.xlu0 %1500  ;;  %v1426_v13 = vpop.xlane.xlu2 %1425  ;;  %v1818_v29 = vadd.f32 0.4994258, %v1817_v33  ;;  %v1595_v25 = vmul.f32 0.5, %v1594_v30  ;;  %v1853_v44 = vmul.f32 %v1852_v12, %v5699_v57  ;;  %2549 = vmatpush.bf16.msra.mxu3 %v4123_v61  ;;  %vm1599_vm2 = vweird.f32 %v5701_v9 }
 0x29b   : > { %v1526_v51 = vmul.f32 %v1501_v27, %v5515_v54  ;;  %v1452_v6 = vmul.f32 %v5515_v54, %v1426_v13  ;;  %v1734_v53 = vmul.f32 %v5613_v58, %v1715_v41  ;;  %v1843_v39 = vadd.f32 0.0036580483, %v1842_v17  ;;  %vm5798_vm4 = vmor %vm1598_vm3, %vm1599_vm2 }
 0x29c   : > { %v1819_v23 = vmul.f32 %v1818_v29, %v5655_v45  ;;  %v1596_v55 = vsub.f32 1.5, %v1595_v25  ;;  %v1854_v35 = vadd.f32 0.014752088, %v1853_v44  ;;  %v5767_v42 = vmul.f32 0.70710677, %v5744_v38 }
 0x29d   : > { %v5732_v11 = vpop.eup %4323  ;;  %v5734_v7 = vadd.f32 1e-05, %v1526_v51  ;;  %v5737_v50 = vsub.f32 %v5585_v0, %v1452_v6  ;;  %v4122_v0 = vld [vmem:[%s7306_s9 + $0x18] sm:$0xff]  ;;  %v1844_v19 = vmul.f32 %v1843_v39, %v5699_v57  ;;  %v5764_v26 = vadd.f32 %v5625_v36, %v1734_v53 }
 0x29e   : > { %v1603_v52 = vmul.f32 %v5732_v11, %v5704_v31  ;;  %v5752_v37 = vadd.f32 1.0, %v1819_v23  ;;  %2550 = vmatpush.bf16.msra.mxu3 %v4122_v0  ;;  %v1855_v30 = vmul.f32 %v1854_v35, %v5699_v57  ;;  %v1597_v10 = vmul.f32 %v5701_v9, %v1596_v55 }
 0x29f   : > { %4325 = vrsqrt.f32 %v5734_v7  ;;  %v1484_v47 = vmul.f32 %v5737_v50, %v5737_v50  ;;  %v1845_v34 = vadd.f32 0.05243302, %v1844_v19  ;;  %v5778_v27 = vmul.f32 0.70710677, %v5764_v26 }
 0x2a0   : > { %v1604_v63 = vmul.f32 %v5732_v11, %v1603_v52  ;;  %4327 = vrcp.f32 %v5752_v37  ;;  %v1878_v13 = vmul.f32 %v5767_v42, %v5767_v42  ;;  %v1807_v20 = vadd.f32 0.18741608, %v1806_v22 }
 0x2a1   : > { %1512 = vadd.xlane.f32.xlu1 %v1484_v47  ;;  %v1856_v61 = vadd.f32 0.112945676, %v1855_v30  ;;  %v1918_v1 = vmul.f32 %v5778_v27, %v5778_v27  ;;  %vm1608_vm0 = vweird.f32 %v5704_v31  ;;  %vm1609_vm5 = vweird.f32 %v5732_v11 }
 0x2a2   : > { %v1605_v48 = vmul.f32 0.5, %v1604_v63  ;;  %v1428_v32 = vpop.xlane.xlu0 %1427  ;;  %2551 = vmatpush.bf16.msra.mxu3 %v4121_v4  ;;  %v5792_v29 = vmin.f32 %v1878_v13, 16.0  ;;  %v1846_v25 = vmul.f32 %v1845_v34, %v5699_v57  ;;  %v1601_v23 = vsel %vm5798_vm4, %v5701_v9, %v1597_v10  ;;  %v4119_v9 = vld [vmem:[%s7306_s9] sm:$0xff]  ;;  %vm5829_vm6 = vmor %vm1608_vm0, %vm1609_vm5 }
 0x2a3   : > { %v1453_v62 = vmul.f32 %v5515_v54, %v1428_v32  ;;  %v1857_v60 = vmul.f32 %v1856_v61, %v5699_v57  ;;  %v5815_v39 = vmin.f32 %v1918_v1, 16.0  ;;  %v1716_v34 = vmul.f32 %v1601_v23, %v5559_v56 }
 0x2a4   : > { %v1606_v40 = vsub.f32 1.5, %v1605_v48  ;;  %v1880_v44 = vmul.f32 2.1237322e-06, %v5792_v29  ;;  %v1891_v63 = vmul.f32 3.8918573e-05, %v5792_v29  ;;  %v1808_v48 = vmul.f32 %v1807_v20, %v5655_v45 }
 0x2a5   : > { %v5771_v33 = vpop.eup %4325  ;;  %v5775_v41 = vsub.f32 %v5589_v59, %v1453_v62  ;;  %v4120_v59 = vld [vmem:[%s7306_s9 + $0x8] sm:$0xff]  ;;  %v1858_v32 = vadd.f32 0.4994258, %v1857_v60  ;;  %v1847_v35 = vadd.f32 0.18741608, %v1846_v25  ;;  %vm1826_vm8 = vweird.f32 %v5752_v37 }
 0x2a6   : > { %v1613_v49 = vmul.f32 %v5771_v33, %v5734_v7  ;;  %v5785_v51 = vpop.eup %4327  ;;  %v1607_v47 = vmul.f32 %v5732_v11, %v1606_v40  ;;  %2552 = vmatpush.bf16.msra.mxu3 %v4120_v59  ;;  %v1881_v22 = vadd.f32 0.00028619796, %v1880_v44  ;;  %v1892_v62 = vadd.f32 0.001143296, %v1891_v63 }
 0x2a7   : > { %v1485_v6 = vmul.f32 %v5775_v41, %v5775_v41  ;;  %v1822_v17 = vmul.f32 %v5785_v51, %v5752_v37  ;;  %v1920_v4 = vmul.f32 2.1237322e-06, %v5815_v39  ;;  %v1859_v13 = vmul.f32 %v1858_v32, %v5699_v57 }
 0x2a8   : > { %v1614_v52 = vmul.f32 %v5771_v33, %v1613_v49  ;;  %v1611_v40 = vsel %vm5829_vm6, %v5732_v11, %v1607_v47  ;;  %v1830_v56 = vand.u32 2147483647, %v5752_v37  ;;  %v1882_v49 = vmul.f32 %v1881_v22, %v5792_v29 }
 0x2a9   : > { %1514 = vadd.xlane.f32.xlu2 %v1485_v6  ;;  %v1823_v53 = vsub.f32 1.0, %v1822_v17  ;;  %v1893_v31 = vmul.f32 %v1892_v62, %v5792_v29  ;;  %vm1827_vm7 = vweird.f32 %v5785_v51  ;;  %v1832_v59 = vand.u32 2147483648, %v5752_v37 }
 0x2aa   : > { %v1430_v0 = vpop.xlane.xlu0 %1429  ;;  %v1615_v10 = vmul.f32 0.5, %v1614_v52  ;;  %2553 = vmatpush.bf16.msra.mxu3 %v4119_v9  ;;  %v1848_v11 = vmul.f32 %v1847_v35, %v5699_v57  ;;  %v1921_v1 = vadd.f32 0.00028619796, %v1920_v4  ;;  %v1717_v12 = vmul.f32 %v1611_v40, %v5570_v8  ;;  %vm5854_vm9 = vmor %vm1826_vm8, %vm1827_vm7 }
 0x2ab   : > { %v1454_v55 = vmul.f32 %v5515_v54, %v1430_v0  ;;  %v1824_v19 = vmul.f32 %v5785_v51, %v1823_v53  ;;  %v1894_v61 = vadd.f32 0.014752088, %v1893_v31  ;;  %v1809_v25 = vadd.f32 1.1283791, %v1808_v48 }
 0x2ac   : > { %v1616_v17 = vsub.f32 1.5, %v1615_v10  ;;  %vm5858_vm10 = vcmp.eq.f32.partialorder %v1830_v56, 8.507059e+37  ;;  %v1883_v57 = vadd.f32 0.0036580483, %v1882_v49  ;;  %v1931_v37 = vmul.f32 3.8918573e-05, %v5815_v39 }
 0x2ad   : > { %v5834_v45 = vsub.f32 %v5593_v16, %v1454_v55  ;;  %v1825_v6 = vadd.f32 %v5785_v51, %v1824_v19  ;;  %v5847_v16 = vadd.f32 1.0, %v1859_v13  ;;  %v1895_v60 = vmul.f32 %v1894_v61, %v5792_v29 }
 0x2ae   : > { %v1735_v44 = vmul.f32 %v5613_v58, %v1716_v34  ;;  %vm1619_vm11 = vweird.f32 %v5771_v33  ;;  %v1833_v47 = vor.u32 1.1754944e-38, %v1832_v59  ;;  %v1849_v0 = vadd.f32 1.1283791, %v1848_v11 }
 0x2af   : > { %v1486_v20 = vmul.f32 %v5834_v45, %v5834_v45  ;;  %4329 = vrcp.f32 %v5847_v16  ;;  %v1829_v8 = vsel %vm5854_vm9, %v5785_v51, %v1825_v6  ;;  %v1922_v53 = vmul.f32 %v1921_v1, %v5815_v39 }
 0x2b0   : > { %v1617_v63 = vmul.f32 %v5771_v33, %v1616_v17  ;;  %v1896_v55 = vadd.f32 0.112945676, %v1895_v60  ;;  %v1932_v9 = vadd.f32 0.001143296, %v1931_v37  ;;  %v1736_v48 = vmul.f32 %v5613_v58, %v1717_v12 }
 0x2b1   : > { %1516 = vadd.xlane.f32.xlu0 %v1486_v20  ;;  %vm1618_vm12 = vweird.f32 %v5734_v7  ;;  %v1810_v51 = vmul.f32 %v1809_v25, %v5643_v2  ;;  %v1834_v32 = vsel %vm5858_vm10, %v1833_v47, %v1829_v8  ;;  %v5877_v22 = vadd.f32 %v5625_v36, %v1735_v44 }
 0x2b2   : > { %v1884_v35 = vmul.f32 %v1883_v57, %v5792_v29  ;;  %v1897_v62 = vmul.f32 %v1896_v55, %v5792_v29  ;;  %v1933_v4 = vmul.f32 %v1932_v9, %v5815_v39  ;;  %v5883_v34 = vadd.f32 %v5625_v36, %v1736_v48  ;;  %vm5887_vm13 = vmor %vm1618_vm12, %vm1619_vm11 }
 0x2b3   : > { %v1850_v7 = vmul.f32 %v1849_v0, %v5677_v24  ;;  %v1923_v10 = vadd.f32 0.0036580483, %v1922_v53  ;;  %v1621_v13 = vsel %vm5887_vm13, %v5771_v33, %v1617_v63  ;;  %v1835_v40 = vmul.f32 %v1834_v32, %v1810_v51 }
 0x2b4   : > { %v1898_v56 = vadd.f32 0.4994258, %v1897_v62  ;;  %v1934_v49 = vadd.f32 0.014752088, %v1933_v4  ;;  %v1870_v20 = vand.u32 2147483647, %v5847_v16  ;;  %v1718_v25 = vmul.f32 %v1621_v13, %v5580_v21 }
 0x2b5   : > { %v4330_v19 = vpop.eup %4329  ;;  %v1872_v6 = vand.u32 2147483648, %v5847_v16  ;;  %v5899_v59 = vmul.f32 0.70710677, %v5877_v22  ;;  %v1885_v11 = vadd.f32 0.05243302, %v1884_v35  ;;  %v1924_v12 = vmul.f32 %v1923_v10, %v5815_v39 }
 0x2b6   : > { %v1862_v30 = vmul.f32 %v4330_v19, %v5847_v16  ;;  %v1899_v24 = vmul.f32 %v1898_v56, %v5792_v29  ;;  %v1935_v61 = vmul.f32 %v1934_v49, %v5815_v39  ;;  %v5904_v1 = vmul.f32 0.70710677, %v5883_v34 }
 0x2b7   : > { %vm1867_vm14 = vweird.f32 %v4330_v19  ;;  %v1958_v17 = vmul.f32 %v5899_v59, %v5899_v59  ;;  %vm1866_vm15 = vweird.f32 %v5847_v16  ;;  %v4041_v57 = vclamps-f32 %v1835_v40, 1.0 }
 0x2b8   : > { %v1863_v31 = vsub.f32 1.0, %v1862_v30  ;;  %v5911_v23 = vadd.f32 1.0, %v1899_v24  ;;  %v1936_v52 = vadd.f32 0.112945676, %v1935_v61  ;;  %vm1871_vm1 = vcmp.eq.f32.partialorder %v1870_v20, 8.507059e+37  ;;  %vm1868_vm2 = vmor %vm1866_vm15, %vm1867_vm14 }
 0x2b9   : > { %v5913_v60 = vmin.f32 %v1958_v17, 16.0  ;;  %v1873_v37 = vor.u32 1.1754944e-38, %v1872_v6  ;;  %v1886_v44 = vmul.f32 %v1885_v11, %v5792_v29  ;;  %v1998_v47 = vmul.f32 %v5904_v1, %v5904_v1 }
 0x2ba   : > { %v1864_v33 = vmul.f32 %v4330_v19, %v1863_v31  ;;  %4331 = vrcp.f32 %v5911_v23  ;;  %v1925_v0 = vadd.f32 0.05243302, %v1924_v12  ;;  %v1937_v16 = vmul.f32 %v1936_v52, %v5815_v39 }
 0x2bb   : > { %v1960_v53 = vmul.f32 2.1237322e-06, %v5913_v60  ;;  %v1971_v55 = vmul.f32 3.8918573e-05, %v5913_v60  ;;  %v1737_v9 = vmul.f32 %v5613_v58, %v1718_v25  ;;  %v1766_v48 = vmul.f32 0.5, %v5630_v14 }
 0x2bc   : > { %v1865_v8 = vadd.f32 %v4330_v19, %v1864_v33  ;;  %v1938_v32 = vadd.f32 0.4994258, %v1937_v16  ;;  %v2438_v62 = vadd.f32 1.0, %v4041_v57  ;;  %v1887_v4 = vadd.f32 0.18741608, %v1886_v44 }
 0x2bd   : > { %v1961_v35 = vadd.f32 0.00028619796, %v1960_v53  ;;  %v1972_v2 = vadd.f32 0.001143296, %v1971_v55  ;;  %v5924_v30 = vmin.f32 %v1998_v47, 16.0  ;;  %v1926_v13 = vmul.f32 %v1925_v0, %v5815_v39 }
 0x2be   : > { %v1869_v21 = vsel %vm1868_vm2, %v4330_v19, %v1865_v8  ;;  %v1767_v19 = vmul.f32 0.5, %v5668_v5  ;;  %v1939_v40 = vmul.f32 %v1938_v32, %v5815_v39  ;;  %v5933_v31 = vadd.f32 %v5625_v36, %v1737_v9 }
 0x2bf   : > { %v1874_v63 = vsel %vm1871_vm1, %v1873_v37, %v1869_v21  ;;  %v1962_v49 = vmul.f32 %v1961_v35, %v5913_v60  ;;  %v1973_v14 = vmul.f32 %v1972_v2, %v5913_v60  ;;  %v2011_v5 = vmul.f32 3.8918573e-05, %v5924_v30 }
 0x2c0   : > { %v1875_v51 = vmul.f32 %v1874_v63, %v1850_v7  ;;  %v4332_v56 = vpop.eup %4331  ;;  %v2000_v7 = vmul.f32 2.1237322e-06, %v5924_v30  ;;  %v1940_v11 = vadd.f32 1.0, %v1939_v40  ;;  %v2454_v24 = vmul.f32 %v2438_v62, %v1766_v48 }
 0x2c1   : > { %v1902_v6 = vmul.f32 %v4332_v56, %v5911_v23  ;;  %v1888_v61 = vmul.f32 %v1887_v4, %v5792_v29  ;;  %v1974_v33 = vadd.f32 0.014752088, %v1973_v14  ;;  %v1927_v52 = vadd.f32 0.18741608, %v1926_v13 }
 0x2c2   : > { %v4042_v10 = vclamps-f32 %v1875_v51, 1.0  ;;  %v2001_v12 = vadd.f32 0.00028619796, %v2000_v7  ;;  %4333 = vrcp.f32 %v1940_v11  ;;  %vm1907_vm3 = vweird.f32 %v4332_v56 }
 0x2c3   : > { %v1903_v25 = vsub.f32 1.0, %v1902_v6  ;;  %v1912_v57 = vand.u32 2147483648, %v5911_v23  ;;  %v1975_v8 = vmul.f32 %v1974_v33, %v5913_v60  ;;  %v5941_v37 = vmul.f32 0.70710677, %v5933_v31 }
 0x2c4   : > { %v2439_v20 = vadd.f32 1.0, %v4042_v10  ;;  %v1963_v21 = vadd.f32 0.0036580483, %v1962_v49  ;;  %v2012_v0 = vadd.f32 0.001143296, %v2011_v5  ;;  %v2002_v53 = vmul.f32 %v2001_v12, %v5924_v30 }
 0x2c5   : > { %v1904_v47 = vmul.f32 %v4332_v56, %v1903_v25  ;;  %v1910_v29 = vand.u32 2147483647, %v5911_v23  ;;  %v1976_v16 = vadd.f32 0.112945676, %v1975_v8  ;;  %v1889_v63 = vadd.f32 1.1283791, %v1888_v61 }
 0x2c6   : > { %v2455_v17 = vmul.f32 %v2439_v20, %v1767_v19  ;;  %vm1906_vm4 = vweird.f32 %v5911_v23  ;;  %v2013_v9 = vmul.f32 %v2012_v0, %v5924_v30  ;;  %v1928_v48 = vmul.f32 %v1927_v52, %v5815_v39 }
 0x2c7   : > { %v1905_v55 = vadd.f32 %v4332_v56, %v1904_v47  ;;  %vm1908_vm0 = vmor %vm1906_vm4, %vm1907_vm3  ;;  %v1977_v51 = vmul.f32 %v1976_v16, %v5913_v60  ;;  %v2038_v32 = vmul.f32 %v5941_v37, %v5941_v37  ;;  %v1913_v4 = vor.u32 1.1754944e-38, %v1912_v57 }
 0x2c8   : > { %v2470_v44 = vpack.c.bf16 %v2455_v17, %v2454_v24  ;;  %v4334_v35 = vpop.eup %4333  ;;  %v1964_v2 = vmul.f32 %v1963_v21, %v5913_v60  ;;  %v2014_v19 = vadd.f32 0.014752088, %v2013_v9  ;;  %vm1911_vm5 = vcmp.eq.f32.partialorder %v1910_v29, 8.507059e+37 }
 0x2c9   : > { %v1909_v62 = vsel %vm1908_vm0, %v4332_v56, %v1905_v55  ;;  %v1942_v10 = vmul.f32 %v4334_v35, %v1940_v11  ;;  %v2003_v23 = vadd.f32 0.0036580483, %v2002_v53  ;;  %v1890_v13 = vmul.f32 %v1889_v63, %v5767_v42 }
 0x2ca   : > { %2554 = vmatmul.bf16.vlgmr.msra.gmra.mxu3 %v2470_v44  ;;  %v1914_v40 = vsel %vm1911_vm5, %v1913_v4, %v1909_v62  ;;  %v1978_v49 = vadd.f32 0.4994258, %v1977_v51  ;;  %v2015_v39 = vmul.f32 %v2014_v19, %v5924_v30  ;;  %v1929_v14 = vadd.f32 1.1283791, %v1928_v48 }
 0x2cb   : > { %v1943_v7 = vsub.f32 1.0, %v1942_v10  ;;  %v1950_v20 = vand.u32 2147483647, %v1940_v11  ;;  %v5955_v6 = vmin.f32 %v2038_v32, 16.0  ;;  %v1952_v5 = vand.u32 2147483648, %v1940_v11 }
 0x2cc   : > { %v1965_v56 = vadd.f32 0.05243302, %v1964_v2  ;;  %v1979_v24 = vmul.f32 %v1978_v49, %v5913_v60  ;;  %v2016_v61 = vadd.f32 0.112945676, %v2015_v39  ;;  %v1915_v33 = vmul.f32 %v1914_v40, %v1890_v13 }
 0x2cd   : > { %v1944_v12 = vmul.f32 %v4334_v35, %v1943_v7  ;;  %vm1947_vm6 = vweird.f32 %v4334_v35  ;;  %v2004_v17 = vmul.f32 %v2003_v23, %v5924_v30  ;;  %v1930_v52 = vmul.f32 %v1929_v14, %v5778_v27 }
 0x2ce   : > { %v1980_v42 = vadd.f32 1.0, %v1979_v24  ;;  %v2017_v25 = vmul.f32 %v2016_v61, %v5924_v30  ;;  %vm1946_vm7 = vweird.f32 %v1940_v11  ;;  %v2051_v8 = vmul.f32 3.8918573e-05, %v5955_v6 }
 0x2cf   : > { %v1945_v57 = vadd.f32 %v4334_v35, %v1944_v12  ;;  %vm1948_vm8 = vmor %vm1946_vm7, %vm1947_vm6  ;;  %vm1951_vm9 = vcmp.eq.f32.partialorder %v1950_v20, 8.507059e+37  ;;  %v1953_v44 = vor.u32 1.1754944e-38, %v1952_v5  ;;  %v1966_v47 = vmul.f32 %v1965_v56, %v5913_v60 }
 0x2d0   : > { %4335 = vrcp.f32 %v1980_v42  ;;  %v4043_v21 = vclamps-f32 %v1915_v33, 1.0  ;;  %v2005_v29 = vadd.f32 0.05243302, %v2004_v17  ;;  %v2018_v16 = vadd.f32 0.4994258, %v2017_v25 }
 0x2d1   : > { %v1949_v0 = vsel %vm1948_vm8, %v4334_v35, %v1945_v57  ;;  %v2052_v9 = vadd.f32 0.001143296, %v2051_v8  ;;  %v1967_v27 = vadd.f32 0.18741608, %v1966_v47  ;;  %v1768_v4 = vmul.f32 0.5, %v5744_v38 }
 0x2d2   : > { %v1954_v53 = vsel %vm1951_vm9, %v1953_v44, %v1949_v0  ;;  %v2019_v55 = vmul.f32 %v2018_v16, %v5924_v30  ;;  %v2440_v11 = vadd.f32 1.0, %v4043_v21  ;;  %v2006_v51 = vmul.f32 %v2005_v29, %v5924_v30 }
 0x2d3   : > { %v1955_v63 = vmul.f32 %v1954_v53, %v1930_v52  ;;  %v1769_v2 = vmul.f32 0.5, %v5764_v26  ;;  %v2053_v10 = vmul.f32 %v2052_v9, %v5955_v6  ;;  %v1968_v23 = vmul.f32 %v1967_v27, %v5913_v60 }
 0x2d4   : > { %v2020_v32 = vadd.f32 1.0, %v2019_v55  ;;  %v2456_v13 = vmul.f32 %v2440_v11, %v1768_v4  ;;  %v2007_v39 = vadd.f32 0.18741608, %v2006_v51  ;;  %v1990_v14 = vand.u32 2147483647, %v1980_v42 }
 0x2d5   : > { %v4044_v48 = vclamps-f32 %v1955_v63, 1.0  ;;  %v1992_v7 = vand.u32 2147483648, %v1980_v42  ;;  %v2054_v56 = vadd.f32 0.014752088, %v2053_v10  ;;  %v1969_v38 = vadd.f32 1.1283791, %v1968_v23 }
 0x2d6   : > { %v4336_v62 = vpop.eup %4335  ;;  %4337 = vrcp.f32 %v2020_v32  ;;  %vm1986_vm11 = vweird.f32 %v1980_v42  ;;  %v2008_v61 = vmul.f32 %v2007_v39, %v5924_v30  ;;  %vm1991_vm13 = vcmp.eq.f32.partialorder %v1990_v14, 8.507059e+37 }
 0x2d7   : > { %v2441_v19 = vadd.f32 1.0, %v4044_v48  ;;  %v1982_v35 = vmul.f32 %v4336_v62, %v1980_v42  ;;  %vm1987_vm10 = vweird.f32 %v4336_v62  ;;  %v1993_v33 = vor.u32 1.1754944e-38, %v1992_v7 }
 0x2d8   : > { %vm1988_vm12 = vmor %vm1986_vm11, %vm1987_vm10  ;;  %v2055_v17 = vmul.f32 %v2054_v56, %v5955_v6  ;;  %v1970_v25 = vmul.f32 %v1969_v38, %v5899_v59  ;;  %v2009_v8 = vadd.f32 1.1283791, %v2008_v61  ;;  %v2032_v44 = vand.u32 2147483648, %v2020_v32 }
 0x2d9   : > { %v2457_v40 = vmul.f32 %v2441_v19, %v1769_v2  ;;  %v1983_v49 = vsub.f32 1.0, %v1982_v35  ;;  %v2030_v0 = vand.u32 2147483647, %v2020_v32  ;;  %vm2026_vm15 = vweird.f32 %v2020_v32 }
 0x2da   : > { %v2056_v42 = vadd.f32 0.112945676, %v2055_v17  ;;  %v2033_v16 = vor.u32 1.1754944e-38, %v2032_v44  ;;  %v2010_v55 = vmul.f32 %v2009_v8, %v5904_v1  ;;  %v2040_v51 = vmul.f32 2.1237322e-06, %v5955_v6 }
 0x2db   : > { %v2471_v20 = vpack.c.bf16 %v2457_v40, %v2456_v13  ;;  %v1984_v5 = vmul.f32 %v4336_v62, %v1983_v49  ;;  %vm2031_vm2 = vcmp.eq.f32.partialorder %v2030_v0, 8.507059e+37  ;;  %v1770_v2 = vmul.f32 0.5, %v5877_v22 }
 0x2dc   : > { %v4338_v24 = vpop.eup %4337  ;;  %v2057_v48 = vmul.f32 %v2056_v42, %v5955_v6  ;;  %v1771_v19 = vmul.f32 0.5, %v5883_v34  ;;  %v2041_v23 = vadd.f32 0.00028619796, %v2040_v51 }
 0x2dd   : > { %2559 = vmatmul.bf16.gmra.mxu3 %v2471_v20  ;;  %v1985_v26 = vadd.f32 %v4336_v62, %v1984_v5  ;;  %v2022_v60 = vmul.f32 %v4338_v24, %v2020_v32  ;;  %vm2027_vm14 = vweird.f32 %v4338_v24 }
 0x2de   : > { %vm2028_vm1 = vmor %vm2026_vm15, %vm2027_vm14  ;;  %v2058_v4 = vadd.f32 0.4994258, %v2057_v48  ;;  %v2042_v5 = vmul.f32 %v2041_v23, %v5955_v6 }
 0x2df   : > { %v1989_v12 = vsel %vm1988_vm12, %v4336_v62, %v1985_v26  ;;  %v2023_v57 = vsub.f32 1.0, %v2022_v60 }
 0x2e0   : > { %v1994_v52 = vsel %vm1991_vm13, %v1993_v33, %v1989_v12  ;;  %v2059_v14 = vmul.f32 %v2058_v4, %v5955_v6  ;;  %v2043_v26 = vadd.f32 0.0036580483, %v2042_v5 }
 0x2e1   : > { %v1995_v47 = vmul.f32 %v1994_v52, %v1970_v25  ;;  %v2024_v21 = vmul.f32 %v4338_v24, %v2023_v57 }
 0x2e2   : > { %v5981_v56 = vadd.f32 1.0, %v2059_v14  ;;  %v2044_v44 = vmul.f32 %v2043_v26, %v5955_v6 }
 0x2e3   : > { %v2025_v29 = vadd.f32 %v4338_v24, %v2024_v21  ;;  %v4045_v63 = vclamps-f32 %v1995_v47, 1.0 }
 0x2e4   : > { %v2072_v26 = vand.u32 2147483648, %v5981_v56  ;;  %vm2066_vm12 = vweird.f32 %v5981_v56 }
 0x2e5   : > { %v2029_v59 = vsel %vm2028_vm1, %v4338_v24, %v2025_v29  ;;  %v2442_v32 = vadd.f32 1.0, %v4045_v63 }
 0x2e6   : > { %v2034_v9 = vsel %vm2031_vm2, %v2033_v16, %v2029_v59 }
 0x2e7   : > { %v2035_v11 = vmul.f32 %v2034_v9, %v2010_v55  ;;  %v2458_v13 = vmul.f32 %v2442_v32, %v1770_v2 }
 0x2e9   : > { %v4046_v62 = vclamps-f32 %v2035_v11, 1.0 }
 0x2ea   : > { %v1503_v30 = vpop.xlane.xlu1 %1502 }
 0x2eb   : > { %v1527_v53 = vmul.f32 %v1503_v30, %v5515_v54  ;;  %v2443_v35 = vadd.f32 1.0, %v4046_v62  ;;  %v2045_v30 = vadd.f32 0.05243302, %v2044_v44 }
 0x2ed   : > { %v1543_v27 = vadd.f32 1e-05, %v1527_v53  ;;  %v2459_v40 = vmul.f32 %v2443_v35, %v1771_v19  ;;  %v2046_v11 = vmul.f32 %v2045_v30, %v5955_v6 }
 0x2ef   : > { %4339 = vrsqrt.f32 %v1543_v27  ;;  %v2472_v7 = vpack.c.bf16 %v2459_v40, %v2458_v13  ;;  %vm1628_vm4 = vweird.f32 %v1543_v27  ;;  %v2047_v35 = vadd.f32 0.18741608, %v2046_v11 }
 0x2f1   : > { %2564 = vmatmul.bf16.gmra.mxu3 %v2472_v7 }
 0x2f2   : > { %v1505_v10 = vpop.xlane.xlu1 %1504 }
 0x2f3   : > { %v1528_v1 = vmul.f32 %v1505_v10, %v5515_v54 }
 0x2f5   : > { %v4340_v49 = vpop.eup %4339  ;;  %v1544_v39 = vadd.f32 1e-05, %v1528_v1 }
 0x2f6   : > { %v1623_v20 = vmul.f32 %v4340_v49, %v1543_v27  ;;  %vm1629_vm3 = vweird.f32 %v4340_v49 }
 0x2f7   : > { %4341 = vrsqrt.f32 %v1544_v39  ;;  %vm1630_vm0 = vmor %vm1628_vm4, %vm1629_vm3  ;;  %vm1638_vm6 = vweird.f32 %v1544_v39 }
 0x2f8   : > { %v1624_v22 = vmul.f32 %v4340_v49, %v1623_v20  ;;  %4343 = vrcp.f32 %v5981_v56 }
 0x2fa   : > { %v1625_v34 = vmul.f32 0.5, %v1624_v22  ;;  %v1432_v38 = vpop.xlane.xlu1 %1431 }
 0x2fb   : > { %v1455_v24 = vmul.f32 %v5515_v54, %v1432_v38 }
 0x2fc   : > { %v1626_v61 = vsub.f32 1.5, %v1625_v34  ;;  %v1507_v33 = vpop.xlane.xlu2 %1506 }
 0x2fd   : > { %v4342_v60 = vpop.eup %4341  ;;  %v1529_v12 = vmul.f32 %v1507_v33, %v5515_v54  ;;  %v5986_v17 = vsub.f32 %v5640_v28, %v1455_v24 }
 0x2fe   : > { %v1627_v25 = vmul.f32 %v4340_v49, %v1626_v61  ;;  %v1633_v52 = vmul.f32 %v4342_v60, %v1544_v39  ;;  %v5993_v42 = vpop.eup %4343  ;;  %vm1639_vm5 = vweird.f32 %v4342_v60 }
 0x2ff   : > { %v1545_v57 = vadd.f32 1e-05, %v1529_v12  ;;  %v1487_v8 = vmul.f32 %v5986_v17, %v5986_v17  ;;  %vm1640_vm7 = vmor %vm1638_vm6, %vm1639_vm5  ;;  %vm2067_vm11 = vweird.f32 %v5993_v42 }
 0x300   : > { %v1631_v47 = vsel %vm1630_vm0, %v4340_v49, %v1627_v25  ;;  %v1634_v21 = vmul.f32 %v4342_v60, %v1633_v52  ;;  %vm6047_vm13 = vmor %vm2066_vm12, %vm2067_vm11 }
 0x301   : > { %v1719_v0 = vmul.f32 %v1631_v47, %v5599_v43  ;;  %4345 = vrsqrt.f32 %v1545_v57  ;;  %1518 = vadd.xlane.f32.xlu1 %v1487_v8  ;;  %v2062_v43 = vmul.f32 %v5993_v42, %v5981_v56  ;;  %vm1648_vm9 = vweird.f32 %v1545_v57 }
 0x302   : > { %v1635_v28 = vmul.f32 0.5, %v1634_v21  ;;  %v2070_v21 = vand.u32 2147483647, %v5981_v56 }
 0x303   : > { %v1738_v29 = vmul.f32 %v5613_v58, %v1719_v0  ;;  %v2063_v19 = vsub.f32 1.0, %v2062_v43 }
 0x304   : > { %v1636_v16 = vsub.f32 1.5, %v1635_v28  ;;  %v1509_v53 = vpop.xlane.xlu2 %1508  ;;  %vm2071_vm14 = vcmp.eq.f32.partialorder %v2070_v21, 8.507059e+37 }
 0x305   : > { %v1530_v63 = vmul.f32 %v1509_v53, %v5515_v54  ;;  %v5998_v55 = vadd.f32 %v5625_v36, %v1738_v29  ;;  %v2064_v14 = vmul.f32 %v5993_v42, %v2063_v19 }
 0x306   : > { %v1637_v59 = vmul.f32 %v4342_v60, %v1636_v16  ;;  %v6056_v16 = vld [vmem:[%s7304_s7] ss:$0 sm:$0xff] }
 0x307   : > { %v4346_v9 = vpop.eup %4345  ;;  %v6002_v27 = vadd.f32 1e-05, %v1530_v63  ;;  %v6005_v48 = vmul.f32 0.70710677, %v5998_v55 }
 0x308   : > { %v1641_v51 = vsel %vm1640_vm7, %v4342_v60, %v1637_v59  ;;  %v1643_v62 = vmul.f32 %v4346_v9, %v1545_v57  ;;  %vm1649_vm8 = vweird.f32 %v4346_v9  ;;  %v2065_v60 = vadd.f32 %v5993_v42, %v2064_v14 }
 0x309   : > { %v1720_v32 = vmul.f32 %v1641_v51, %v5606_v46  ;;  %4347 = vrsqrt.f32 %v6002_v27  ;;  %v2078_v4 = vmul.f32 %v6005_v48, %v6005_v48  ;;  %vm1650_vm10 = vmor %vm1648_vm9, %vm1649_vm8  ;;  %v2073_v59 = vor.u32 1.1754944e-38, %v2072_v26 }
 0x30a   : > { %v1644_v2 = vmul.f32 %v4346_v9, %v1643_v62  ;;  %v2069_v63 = vsel %vm6047_vm13, %v5993_v42, %v2065_v60  ;;  %vm1658_vm1 = vweird.f32 %v6002_v27 }
 0x30b   : > { %v6012_v10 = vmin.f32 %v2078_v4, 16.0  ;;  %v1739_v1 = vmul.f32 %v5613_v58, %v1720_v32  ;;  %v2048_v58 = vmul.f32 %v2047_v35, %v5955_v6  ;;  %v6069_v32 = vld [vmem:[%s7305_s8] ss:$0 sm:$0xff]  ;;  %v2074_v19 = vsel %vm2071_vm14, %v2073_v59, %v2069_v63 }
 0x30c   : > { %v1645_v23 = vmul.f32 0.5, %v1644_v2  ;;  %v1511_v13 = vpop.xlane.xlu0 %1510 }
 0x30d   : > { %v1531_v40 = vmul.f32 %v1511_v13, %v5515_v54  ;;  %v2080_v49 = vmul.f32 2.1237322e-06, %v6012_v10  ;;  %v2091_v46 = vmul.f32 3.8918573e-05, %v6012_v10  ;;  %v6020_v7 = vadd.f32 %v5625_v36, %v1739_v1 }
 0x30e   : > { %v1646_v39 = vsub.f32 1.5, %v1645_v23  ;;  %v2049_v52 = vadd.f32 1.1283791, %v2048_v58 }
 0x30f   : > { %v6022_v20 = vpop.eup %4347  ;;  %v6024_v5 = vadd.f32 1e-05, %v1531_v40  ;;  %v2081_v22 = vadd.f32 0.00028619796, %v2080_v49  ;;  %v2092_v34 = vadd.f32 0.001143296, %v2091_v46 }
 0x310   : > { %v1647_v38 = vmul.f32 %v4346_v9, %v1646_v39  ;;  %v1653_v24 = vmul.f32 %v6022_v20, %v6002_v27  ;;  %v6037_v12 = vmul.f32 0.70710677, %v6020_v7  ;;  %vm1659_vm15 = vweird.f32 %v6022_v20 }
 0x311   : > { %4349 = vrsqrt.f32 %v6024_v5  ;;  %v2082_v36 = vmul.f32 %v2081_v22, %v6012_v10  ;;  %v2093_v61 = vmul.f32 %v2092_v34, %v6012_v10  ;;  %v2050_v49 = vmul.f32 %v2049_v52, %v5941_v37  ;;  %vm6089_vm2 = vmor %vm1658_vm1, %vm1659_vm15 }
 0x312   : > { %v1651_v33 = vsel %vm1650_vm10, %v4346_v9, %v1647_v38  ;;  %v1654_v6 = vmul.f32 %v6022_v20, %v1653_v24  ;;  %v2118_v0 = vmul.f32 %v6037_v12, %v6037_v12  ;;  %vm1668_vm4 = vweird.f32 %v6024_v5 }
 0x313   : > { %v1721_v25 = vmul.f32 %v1651_v33, %v5637_v15  ;;  %v2083_v57 = vadd.f32 0.0036580483, %v2082_v36  ;;  %v2094_v8 = vadd.f32 0.014752088, %v2093_v61  ;;  %v2075_v36 = vmul.f32 %v2074_v19, %v2050_v49 }
 0x314   : > { %v1655_v44 = vmul.f32 0.5, %v1654_v6  ;;  %v1513_v47 = vpop.xlane.xlu1 %1512  ;;  %v6062_v43 = vmin.f32 %v2118_v0, 16.0 }
 0x315   : > { %v1532_v28 = vmul.f32 %v1513_v47, %v5515_v54  ;;  %v2084_v15 = vmul.f32 %v2083_v57, %v6012_v10  ;;  %v2095_v30 = vmul.f32 %v2094_v8, %v6012_v10  ;;  %v1740_v56 = vmul.f32 %v6056_v16, %v1721_v25 }
 0x316   : > { %v1656_v53 = vsub.f32 1.5, %v1655_v44  ;;  %v2120_v42 = vmul.f32 2.1237322e-06, %v6062_v43  ;;  %v2131_v34 = vmul.f32 3.8918573e-05, %v6062_v43 }
 0x317   : > { %v4350_v9 = vpop.eup %4349  ;;  %v6064_v11 = vadd.f32 1e-05, %v1532_v28  ;;  %v2085_v51 = vadd.f32 0.05243302, %v2084_v15  ;;  %v2096_v62 = vadd.f32 0.112945676, %v2095_v30  ;;  %v6072_v4 = vadd.f32 %v6069_v32, %v1740_v56 }
 0x318   : > { %v1663_v2 = vmul.f32 %v4350_v9, %v6024_v5  ;;  %v1657_v23 = vmul.f32 %v6022_v20, %v1656_v53  ;;  %v2121_v14 = vadd.f32 0.00028619796, %v2120_v42  ;;  %vm1669_vm3 = vweird.f32 %v4350_v9 }
 0x319   : > { %4351 = vrsqrt.f32 %v6064_v11  ;;  %v2086_v35 = vmul.f32 %v2085_v51, %v6012_v10  ;;  %v2097_v1 = vmul.f32 %v2096_v62, %v6012_v10  ;;  %v6082_v40 = vmul.f32 0.70710677, %v6072_v4  ;;  %vm1670_vm0 = vmor %vm1668_vm4, %vm1669_vm3 }
 0x31a   : > { %v1664_v13 = vmul.f32 %v4350_v9, %v1663_v2  ;;  %v2122_v61 = vmul.f32 %v2121_v14, %v6062_v43  ;;  %v1661_v27 = vsel %vm6089_vm2, %v6022_v20, %v1657_v23  ;;  %v2132_v57 = vadd.f32 0.001143296, %v2131_v34 }
 0x31b   : > { %v2087_v46 = vadd.f32 0.18741608, %v2086_v35  ;;  %v2098_v39 = vadd.f32 0.4994258, %v2097_v1  ;;  %v2158_v38 = vmul.f32 %v6082_v40, %v6082_v40  ;;  %v4047_v20 = vclamps-f32 %v2075_v36, 1.0 }
 0x31c   : > { %v1665_v58 = vmul.f32 0.5, %v1664_v13  ;;  %v1515_v22 = vpop.xlane.xlu2 %1514  ;;  %v2123_v47 = vadd.f32 0.0036580483, %v2122_v61  ;;  %v1722_v0 = vmul.f32 %v1661_v27, %v5665_v18  ;;  %v2133_v15 = vmul.f32 %v2132_v57, %v6062_v43 }
 0x31d   : > { %v1533_v26 = vmul.f32 %v1515_v22, %v5515_v54  ;;  %v2099_v37 = vmul.f32 %v2098_v39, %v6012_v10  ;;  %v2088_v25 = vmul.f32 %v2087_v46, %v6012_v10  ;;  %v6108_v21 = vmin.f32 %v2158_v38, 16.0 }
 0x31e   : > { %v1666_v33 = vsub.f32 1.5, %v1665_v58  ;;  %v2124_v29 = vmul.f32 %v2123_v47, %v6062_v43  ;;  %v6121_v18 = vmul.f32 0.5, %v5933_v31  ;;  %v6123_v59 = vadd.f32 1.0, %v4047_v20 }
 0x31f   : > { %v6099_v6 = vpop.eup %4351  ;;  %v6101_v60 = vadd.f32 1e-05, %v1533_v26  ;;  %v6104_v52 = vadd.f32 1.0, %v2099_v37  ;;  %v2089_v56 = vadd.f32 1.1283791, %v2088_v25  ;;  %v1741_v42 = vmul.f32 %v6056_v16, %v1722_v0 }
 0x320   : > { %v1667_v8 = vmul.f32 %v4350_v9, %v1666_v33  ;;  %v1673_v44 = vmul.f32 %v6099_v6, %v6064_v11  ;;  %v2160_v53 = vmul.f32 2.1237322e-06, %v6108_v21  ;;  %v2171_v5 = vmul.f32 3.8918573e-05, %v6108_v21 }
 0x321   : > { %4353 = vrsqrt.f32 %v6101_v60  ;;  %v2125_v62 = vadd.f32 0.05243302, %v2124_v29  ;;  %vm1679_vm5 = vweird.f32 %v6099_v6  ;;  %vm1678_vm6 = vweird.f32 %v6064_v11 }
 0x322   : > { %4355 = vrcp.f32 %v6104_v52  ;;  %v1671_v10 = vsel %vm1670_vm0, %v4350_v9, %v1667_v8  ;;  %v1674_v28 = vmul.f32 %v6099_v6, %v1673_v44  ;;  %v2134_v9 = vadd.f32 0.014752088, %v2133_v15  ;;  %vm6176_vm12 = vmor %vm1678_vm6, %vm1679_vm5 }
 0x323   : > { %v1723_v51 = vmul.f32 %v1671_v10, %v5707_v3  ;;  %v2161_v2 = vadd.f32 0.00028619796, %v2160_v53  ;;  %v2172_v13 = vadd.f32 0.001143296, %v2171_v5  ;;  %v2090_v3 = vmul.f32 %v2089_v56, %v6005_v48 }
 0x324   : > { %v1517_v30 = vpop.xlane.xlu0 %1516  ;;  %v1675_v35 = vmul.f32 0.5, %v1674_v28  ;;  %v2135_v23 = vmul.f32 %v2134_v9, %v6062_v43  ;;  %vm2106_vm7 = vweird.f32 %v6104_v52  ;;  %v2110_v14 = vand.u32 2147483647, %v6104_v52 }
 0x325   : > { %v1534_v63 = vmul.f32 %v1517_v30, %v5515_v54  ;;  %v2162_v46 = vmul.f32 %v2161_v2, %v6108_v21  ;;  %v2126_v22 = vmul.f32 %v2125_v62, %v6062_v43  ;;  %v1742_v38 = vmul.f32 %v6056_v16, %v1723_v51 }
 0x326   : > { %v2136_v34 = vadd.f32 0.112945676, %v2135_v23  ;;  %v1676_v48 = vsub.f32 1.5, %v1675_v35  ;;  %v2173_v36 = vmul.f32 %v2172_v13, %v6108_v21  ;;  %v2112_v61 = vand.u32 2147483648, %v6104_v52 }
 0x327   : > { %v6127_v19 = vpop.eup %4353  ;;  %v6129_v1 = vadd.f32 1e-05, %v1534_v63  ;;  %v2163_v26 = vadd.f32 0.0036580483, %v2162_v46  ;;  %v6149_v33 = vadd.f32 %v6069_v32, %v1741_v42  ;;  %vm6152_vm9 = vcmp.eq.f32.partialorder %v2110_v14, 8.507059e+37 }
 0x328   : > { %v4356_v49 = vpop.eup %4355  ;;  %v1683_v31 = vmul.f32 %v6127_v19, %v6101_v60  ;;  %v2137_v27 = vmul.f32 %v2136_v34, %v6062_v43  ;;  %v2174_v8 = vadd.f32 0.014752088, %v2173_v36  ;;  %v2127_v47 = vadd.f32 0.18741608, %v2126_v22 }
 0x329   : > { %4357 = vrsqrt.f32 %v6129_v1  ;;  %v2102_v39 = vmul.f32 %v4356_v49, %v6104_v52  ;;  %vm2107_vm8 = vweird.f32 %v4356_v49  ;;  %v2164_v57 = vmul.f32 %v2163_v26, %v6108_v21 }
 0x32a   : > { %v1684_v58 = vmul.f32 %v6127_v19, %v1683_v31  ;;  %v2138_v20 = vadd.f32 0.4994258, %v2137_v27  ;;  %v6157_v0 = vadd.f32 %v6069_v32, %v1742_v38  ;;  %v1677_v28 = vmul.f32 %v6099_v6, %v1676_v48  ;;  %vm2108_vm10 = vmor %vm2106_vm7, %vm2107_vm8 }
 0x32b   : > { %v2103_v24 = vsub.f32 1.0, %v2102_v39  ;;  %v2175_v30 = vmul.f32 %v2174_v8, %v6108_v21  ;;  %v2113_v53 = vor.u32 1.1754944e-38, %v2112_v61  ;;  %v2165_v5 = vadd.f32 0.05243302, %v2164_v57 }
 0x32c   : > { %v1685_v37 = vmul.f32 0.5, %v1684_v58  ;;  %v6168_v63 = vmul.f32 0.70710677, %v6149_v33  ;;  %vm1689_vm11 = vweird.f32 %v6127_v19  ;;  %v2139_v51 = vmul.f32 %v2138_v20, %v6062_v43 }
 0x32d   : > { %v2104_v25 = vmul.f32 %v4356_v49, %v2103_v24  ;;  %v2176_v62 = vadd.f32 0.112945676, %v2175_v30  ;;  %v2128_v35 = vmul.f32 %v2127_v47, %v6062_v43  ;;  %v6185_v23 = vmul.f32 0.70710677, %v6157_v0 }
 0x32e   : > { %v1686_v29 = vsub.f32 1.5, %v1685_v37  ;;  %v1681_v13 = vsel %vm6176_vm12, %v6099_v6, %v1677_v28  ;;  %v6191_v31 = vadd.f32 1.0, %v2139_v51  ;;  %v2166_v46 = vmul.f32 %v2165_v5, %v6108_v21 }
 0x32f   : > { %v6159_v10 = vpop.eup %4357  ;;  %v2105_v15 = vadd.f32 %v4356_v49, %v2104_v25  ;;  %v2177_v39 = vmul.f32 %v2176_v62, %v6108_v21  ;;  %v2198_v14 = vmul.f32 %v6168_v63, %v6168_v63  ;;  %v2238_v43 = vmul.f32 %v6185_v23, %v6185_v23 }
 0x330   : > { %v1693_v56 = vmul.f32 %v6159_v10, %v6129_v1  ;;  %v1687_v11 = vmul.f32 %v6127_v19, %v1686_v29  ;;  %v2460_v6 = vmul.f32 %v6123_v59, %v6121_v18  ;;  %4359 = vrcp.f32 %v6191_v31 }
 0x331   : > { %v2109_v9 = vsel %vm2108_vm10, %v4356_v49, %v2105_v15  ;;  %vm1688_vm13 = vweird.f32 %v6101_v60  ;;  %v2129_v34 = vadd.f32 1.1283791, %v2128_v35  ;;  %v2178_v38 = vadd.f32 0.4994258, %v2177_v39 }
 0x332   : > { %v1694_v52 = vmul.f32 %v6159_v10, %v1693_v56  ;;  %v2114_v42 = vsel %vm6152_vm9, %v2113_v53, %v2109_v9  ;;  %v1724_v48 = vmul.f32 %v1681_v13, %v5737_v50  ;;  %vm6207_vm14 = vmor %vm1688_vm13, %vm1689_vm11  ;;  %vm1698_vm15 = vweird.f32 %v6129_v1 }
 0x333   : > { %v2115_v49 = vmul.f32 %v2114_v42, %v2090_v3  ;;  %v1773_v3 = vmul.f32 0.5, %v5998_v55  ;;  %v6212_v18 = vmin.f32 %v2198_v14, 16.0  ;;  %v6214_v59 = vmin.f32 %v2238_v43, 16.0 }
 0x334   : > { %v1695_v58 = vmul.f32 0.5, %v1694_v52  ;;  %v1691_v55 = vsel %vm6207_vm14, %v6127_v19, %v1687_v11  ;;  %vm1699_vm1 = vweird.f32 %v6159_v10  ;;  %v2167_v50 = vadd.f32 0.18741608, %v2166_v46 }
 0x335   : > { %v4048_v22 = vclamps-f32 %v2115_v49, 1.0  ;;  %v2179_v60 = vmul.f32 %v2178_v38, %v6108_v21  ;;  %v2200_v61 = vmul.f32 2.1237322e-06, %v6212_v18  ;;  %v2211_v27 = vmul.f32 3.8918573e-05, %v6212_v18  ;;  %vm6249_vm0 = vmor %vm1698_vm15, %vm1699_vm1 }
 0x336   : > { %v1696_v36 = vsub.f32 1.5, %v1695_v58  ;;  %v2130_v25 = vmul.f32 %v2129_v34, %v6037_v12  ;;  %v2240_v8 = vmul.f32 2.1237322e-06, %v6214_v59  ;;  %v2251_v44 = vmul.f32 3.8918573e-05, %v6214_v59  ;;  %v4360_v19 = vpop.eup %4359 }
 0x337   : > { %v2445_v26 = vadd.f32 1.0, %v4048_v22  ;;  %v6224_v57 = vadd.f32 1.0, %v2179_v60  ;;  %v2150_v20 = vand.u32 2147483647, %v6191_v31  ;;  %v2201_v28 = vadd.f32 0.00028619796, %v2200_v61 }
 0x338   : > { %v2212_v29 = vadd.f32 0.001143296, %v2211_v27  ;;  %v1725_v15 = vmul.f32 %v1691_v55, %v5775_v41  ;;  %v2142_v30 = vmul.f32 %v4360_v19, %v6191_v31  ;;  %vm2146_vm2 = vweird.f32 %v6191_v31 }
 0x339   : > { %v2461_v37 = vmul.f32 %v2445_v26, %v1773_v3  ;;  %4361 = vrcp.f32 %v6224_v57  ;;  %v6234_v12 = vmul.f32 %v6159_v10, %v1696_v36  ;;  %v2152_v56 = vand.u32 2147483648, %v6191_v31 }
 0x33a   : > { %v2168_v53 = vmul.f32 %v2167_v50, %v6108_v21  ;;  %v2202_v5 = vmul.f32 %v2201_v28, %v6212_v18  ;;  %v2143_v9 = vsub.f32 1.0, %v2142_v30  ;;  %v2213_v51 = vmul.f32 %v2212_v29, %v6212_v18 }
 0x33b   : > { %v2473_v47 = vpack.c.bf16 %v2461_v37, %v2460_v6  ;;  %v2241_v41 = vadd.f32 0.00028619796, %v2240_v8  ;;  %v2252_v62 = vadd.f32 0.001143296, %v2251_v44  ;;  %vm2147_vm3 = vweird.f32 %v4360_v19 }
 0x33c   : > { %vm6240_vm4 = vcmp.eq.f32.partialorder %v2150_v20, 8.507059e+37  ;;  %v2203_v52 = vadd.f32 0.0036580483, %v2202_v5  ;;  %v1743_v42 = vmul.f32 %v6056_v16, %v1724_v48  ;;  %v2144_v35 = vmul.f32 %v4360_v19, %v2143_v9  ;;  %vm2148_vm5 = vmor %vm2146_vm2, %vm2147_vm3 }
 0x33d   : > { %2569 = vmatmul.bf16.gmra.mxu3 %v2473_v47  ;;  %v2214_v13 = vadd.f32 0.014752088, %v2213_v51  ;;  %v2242_v11 = vmul.f32 %v2241_v41, %v6214_v59  ;;  %v2253_v49 = vmul.f32 %v2252_v62, %v6214_v59  ;;  %v1701_v46 = vsel %vm6249_vm0, %v6159_v10, %v6234_v12  ;;  %v6298_v62 = vld [vmem:[%s7307_s10] ss:$0 sm:$0xff] }
 0x33e   : > { %v2153_v39 = vor.u32 1.1754944e-38, %v2152_v56  ;;  %v2169_v14 = vadd.f32 1.1283791, %v2168_v53  ;;  %v2204_v43 = vmul.f32 %v2203_v52, %v6212_v18  ;;  %v2145_v58 = vadd.f32 %v4360_v19, %v2144_v35 }
 0x33f   : > { %v4362_v1 = vpop.eup %4361  ;;  %v2215_v22 = vmul.f32 %v2214_v13, %v6212_v18  ;;  %v2243_v6 = vadd.f32 0.0036580483, %v2242_v11  ;;  %v2254_v3 = vadd.f32 0.014752088, %v2253_v49  ;;  %v1744_v48 = vmul.f32 %v6056_v16, %v1725_v15 }
 0x340   : > { %v2182_v34 = vmul.f32 %v4362_v1, %v6224_v57  ;;  %v2205_v38 = vadd.f32 0.05243302, %v2204_v43  ;;  %v6267_v10 = vadd.f32 %v6069_v32, %v1743_v42  ;;  %v2149_v24 = vsel %vm2148_vm5, %v4360_v19, %v2145_v58 }
 0x341   : > { %v2190_v26 = vand.u32 2147483647, %v6224_v57  ;;  %v2216_v55 = vadd.f32 0.112945676, %v2215_v22  ;;  %v2255_v50 = vmul.f32 %v2254_v3, %v6214_v59  ;;  %v2154_v60 = vsel %vm6240_vm4, %v2153_v39, %v2149_v24 }
 0x342   : > { %v2183_v36 = vsub.f32 1.0, %v2182_v34  ;;  %vm2187_vm6 = vweird.f32 %v4362_v1  ;;  %v2192_v31 = vand.u32 2147483648, %v6224_v57  ;;  %v2206_v37 = vmul.f32 %v2205_v38, %v6212_v18 }
 0x343   : > { %v2217_v61 = vmul.f32 %v2216_v55, %v6212_v18  ;;  %v2244_v27 = vmul.f32 %v2243_v6, %v6214_v59  ;;  %v2256_v8 = vadd.f32 0.112945676, %v2255_v50  ;;  %v2155_v44 = vmul.f32 %v2154_v60, %v2130_v25 }
 0x344   : > { %v2184_v19 = vmul.f32 %v4362_v1, %v2183_v36  ;;  %v6278_v47 = vadd.f32 %v6069_v32, %v1744_v48  ;;  %v6281_v20 = vmul.f32 0.70710677, %v6267_v10  ;;  %v2170_v28 = vmul.f32 %v2169_v14, %v6082_v40 }
 0x345   : > { %vm2186_vm7 = vweird.f32 %v6224_v57  ;;  %v2218_v29 = vadd.f32 0.4994258, %v2217_v61  ;;  %v2257_v15 = vmul.f32 %v2256_v8, %v6214_v59  ;;  %vm2191_vm8 = vcmp.eq.f32.partialorder %v2190_v26, 8.507059e+37 }
 0x346   : > { %v2185_v30 = vadd.f32 %v4362_v1, %v2184_v19  ;;  %v2193_v12 = vor.u32 1.1754944e-38, %v2192_v31  ;;  %v2278_v25 = vmul.f32 %v6281_v20, %v6281_v20  ;;  %vm2188_vm9 = vmor %vm2186_vm7, %vm2187_vm6  ;;  %v2207_v56 = vadd.f32 0.18741608, %v2206_v37 }
 0x347   : > { %v2219_v53 = vmul.f32 %v2218_v29, %v6212_v18  ;;  %v2245_v5 = vadd.f32 0.05243302, %v2244_v27  ;;  %v2258_v9 = vadd.f32 0.4994258, %v2257_v15  ;;  %v4049_v51 = vclamps-f32 %v2155_v44, 1.0 }
 0x348   : > { %v2189_v40 = vsel %vm2188_vm9, %v4362_v1, %v2185_v30  ;;  %v6291_v57 = vmul.f32 0.70710677, %v6278_v47  ;;  %v6293_v41 = vmin.f32 %v2278_v25, 16.0  ;;  %v1726_v42 = vmul.f32 %v1701_v46, %v5834_v45 }
 0x349   : > { %v2194_v2 = vsel %vm2191_vm8, %v2193_v12, %v2189_v40  ;;  %v6300_v52 = vadd.f32 1.0, %v2219_v53  ;;  %v2259_v35 = vmul.f32 %v2258_v9, %v6214_v59  ;;  %v2208_v11 = vmul.f32 %v2207_v56, %v6212_v18 }
 0x34a   : > { %v2195_v21 = vmul.f32 %v2194_v2, %v2170_v28  ;;  %v2280_v13 = vmul.f32 2.1237322e-06, %v6293_v41  ;;  %v2246_v49 = vmul.f32 %v2245_v5, %v6214_v59  ;;  %v2446_v43 = vadd.f32 1.0, %v4049_v51 }
 0x34b   : > { %4363 = vrcp.f32 %v6300_v52  ;;  %v6308_v1 = vadd.f32 1.0, %v2259_v35  ;;  %v2318_v58 = vmul.f32 %v6291_v57, %v6291_v57  ;;  %v1774_v46 = vmul.f32 0.5, %v6020_v7 }
 0x34c   : > { %v4050_v14 = vclamps-f32 %v2195_v21, 1.0  ;;  %v2281_v22 = vadd.f32 0.00028619796, %v2280_v13  ;;  %v2291_v18 = vmul.f32 3.8918573e-05, %v6293_v41  ;;  %v1745_v6 = vmul.f32 %v6056_v16, %v1726_v42 }
 0x34d   : > { %v2555_v39 = vpop.f32.mrf.mxu3  ;;  %v1775_v3 = vmul.f32 0.5, %v6072_v4  ;;  %4365 = vrcp.f32 %v6308_v1  ;;  %v2247_v38 = vadd.f32 0.18741608, %v2246_v49  ;;  %v2462_v24 = vmul.f32 %v2446_v43, %v1774_v46 }
 0x34e   : > { %v6313_v45 = vadd.f32 %v6298_v62, %v2555_v39  ;;  %v2447_v34 = vadd.f32 1.0, %v4050_v14  ;;  %v2292_v48 = vadd.f32 0.001143296, %v2291_v18  ;;  %v2209_v55 = vadd.f32 1.1283791, %v2208_v11 }
 0x34f   : > { %v6321_v50 = vmin.f32 %v2318_v58, 16.0  ;;  %v2282_v60 = vmul.f32 %v2281_v22, %v6293_v41  ;;  %v6328_v61 = vadd.f32 %v6069_v32, %v1745_v6  ;;  %v2230_v27 = vand.u32 2147483647, %v6300_v52 }
 0x350   : > { %2597 = vadd.xlane.f32.xlu2 %v6313_v45  ;;  %v2463_v26 = vmul.f32 %v2447_v34, %v1775_v3  ;;  %v2293_v36 = vmul.f32 %v2292_v48, %v6293_v41  ;;  %v2248_v8 = vmul.f32 %v2247_v38, %v6214_v59  ;;  %v2210_v15 = vmul.f32 %v2209_v55, %v6168_v63 }
 0x351   : > { %v4364_v7 = vpop.eup %4363  ;;  %v2320_v37 = vmul.f32 2.1237322e-06, %v6321_v50  ;;  %v2331_v19 = vmul.f32 3.8918573e-05, %v6321_v50  ;;  %vm2226_vm10 = vweird.f32 %v6300_v52  ;;  %v2232_v56 = vand.u32 2147483648, %v6300_v52 }
 0x352   : > { %v2474_v31 = vpack.c.bf16 %v2463_v26, %v2462_v24  ;;  %v2222_v4 = vmul.f32 %v4364_v7, %v6300_v52  ;;  %v2294_v44 = vadd.f32 0.014752088, %v2293_v36  ;;  %v2283_v59 = vadd.f32 0.0036580483, %v2282_v60 }
 0x353   : > { %v4366_v28 = vpop.eup %4365  ;;  %v2321_v12 = vadd.f32 0.00028619796, %v2320_v37  ;;  %vm2227_vm11 = vweird.f32 %v4364_v7  ;;  %v2332_v51 = vadd.f32 0.001143296, %v2331_v19  ;;  %vm6342_vm12 = vcmp.eq.f32.partialorder %v2230_v27, 8.507059e+37 }
 0x354   : > { %2574 = vmatmul.bf16.gmra.mxu3 %v2474_v31  ;;  %v2223_v30 = vsub.f32 1.0, %v2222_v4  ;;  %v2262_v53 = vmul.f32 %v4366_v28, %v6308_v1  ;;  %v2295_v9 = vmul.f32 %v2294_v44, %v6293_v41  ;;  %v2249_v40 = vadd.f32 1.1283791, %v2248_v8  ;;  %vm2228_vm13 = vmor %vm2226_vm10, %vm2227_vm11 }
 0x355   : > { %v2557_v29 = vpop.f32.mrf.mxu3  ;;  %v2322_v42 = vmul.f32 %v2321_v12, %v6321_v50  ;;  %v2272_v35 = vand.u32 2147483648, %v6308_v1  ;;  %v2333_v11 = vmul.f32 %v2332_v51, %v6321_v50  ;;  %v2233_v49 = vor.u32 1.1754944e-38, %v2232_v56 }
 0x356   : > { %v6336_v25 = vadd.f32 %v6298_v62, %v2557_v29  ;;  %v2224_v5 = vmul.f32 %v4364_v7, %v2223_v30  ;;  %v2263_v2 = vsub.f32 1.0, %v2262_v53  ;;  %v2296_v13 = vadd.f32 0.112945676, %v2295_v9 }
 0x357   : > { %vm2267_vm14 = vweird.f32 %v4366_v28  ;;  %v2270_v14 = vand.u32 2147483647, %v6308_v1  ;;  %v2284_v58 = vmul.f32 %v2283_v59, %v6293_v41  ;;  %v2334_v22 = vadd.f32 0.014752088, %v2333_v11 }
 0x358   : > { %2599 = vadd.xlane.f32.xlu0 %v6336_v25  ;;  %v2225_v21 = vadd.f32 %v4364_v7, %v2224_v5  ;;  %v2264_v39 = vmul.f32 %v4366_v28, %v2263_v2  ;;  %v2297_v46 = vmul.f32 %v2296_v13, %v6293_v41  ;;  %vm2266_vm15 = vweird.f32 %v6308_v1 }
 0x359   : > { %v2323_v3 = vadd.f32 0.0036580483, %v2322_v42  ;;  %vm2268_vm1 = vmor %vm2266_vm15, %vm2267_vm14  ;;  %v2273_v34 = vor.u32 1.1754944e-38, %v2272_v35  ;;  %v2335_v48 = vmul.f32 %v2334_v22, %v6321_v50  ;;  %v2250_v24 = vmul.f32 %v2249_v40, %v6185_v23 }
 0x35a   : > { %v2229_v43 = vsel %vm2228_vm13, %v4364_v7, %v2225_v21  ;;  %v2265_v6 = vadd.f32 %v4366_v28, %v2264_v39  ;;  %v2298_v38 = vadd.f32 0.4994258, %v2297_v46  ;;  %vm2271_vm2 = vcmp.eq.f32.partialorder %v2270_v14, 8.507059e+37 }
 0x35b   : > { %v2234_v18 = vsel %vm6342_vm12, %v2233_v49, %v2229_v43  ;;  %v2285_v60 = vadd.f32 0.05243302, %v2284_v58  ;;  %v2324_v4 = vmul.f32 %v2323_v3, %v6321_v50  ;;  %v2336_v1 = vadd.f32 0.112945676, %v2335_v48 }
 0x35c   : > { %v2235_v52 = vmul.f32 %v2234_v18, %v2210_v15  ;;  %v2269_v26 = vsel %vm2268_vm1, %v4366_v28, %v2265_v6  ;;  %v2299_v36 = vmul.f32 %v2298_v38, %v6293_v41  ;;  %v6362_v37 = vmul.f32 0.70710677, %v6328_v61 }
 0x35d   : > { %v2274_v7 = vsel %vm2271_vm2, %v2273_v34, %v2269_v26  ;;  %v2337_v19 = vmul.f32 %v2336_v1, %v6321_v50  ;;  %v1776_v23 = vmul.f32 0.5, %v6149_v33  ;;  %v1777_v28 = vmul.f32 0.5, %v6157_v0 }
 0x35e   : > { %v4051_v55 = vclamps-f32 %v2235_v52, 1.0  ;;  %v2275_v31 = vmul.f32 %v2274_v7, %v2250_v24  ;;  %v2300_v27 = vadd.f32 1.0, %v2299_v36  ;;  %v2286_v29 = vmul.f32 %v2285_v60, %v6293_v41 }
 0x35f   : > { %v2325_v12 = vadd.f32 0.05243302, %v2324_v4  ;;  %v2338_v56 = vadd.f32 0.4994258, %v2337_v19  ;;  %v2358_v53 = vmul.f32 %v6362_v37, %v6362_v37 }
 0x360   : > { %v4052_v8 = vclamps-f32 %v2275_v31, 1.0  ;;  %v2448_v44 = vadd.f32 1.0, %v4051_v55  ;;  %4367 = vrcp.f32 %v2300_v27  ;;  %v2560_v15 = vpop.f32.mrf.mxu3  ;;  %v2287_v33 = vadd.f32 0.18741608, %v2286_v29 }
 0x361   : > { %v6371_v59 = vadd.f32 %v6298_v62, %v2560_v15  ;;  %v2339_v51 = vmul.f32 %v2338_v56, %v6321_v50  ;;  %v2326_v63 = vmul.f32 %v2325_v12, %v6321_v50  ;;  %v6376_v2 = vmin.f32 %v2358_v53, 16.0 }
 0x362   : > { %v2449_v30 = vadd.f32 1.0, %v4052_v8  ;;  %v2464_v5 = vmul.f32 %v2448_v44, %v1776_v23  ;;  %v2288_v35 = vmul.f32 %v2287_v33, %v6293_v41  ;;  %v2312_v43 = vand.u32 2147483648, %v2300_v27 }
 0x363   : > { %2601 = vadd.xlane.f32.xlu1 %v6371_v59  ;;  %v2340_v40 = vadd.f32 1.0, %v2339_v51  ;;  %v2327_v49 = vadd.f32 0.18741608, %v2326_v63  ;;  %v2371_v39 = vmul.f32 3.8918573e-05, %v6376_v2  ;;  %vm2306_vm4 = vweird.f32 %v2300_v27 }
 0x364   : > { %v2465_v9 = vmul.f32 %v2449_v30, %v1777_v28  ;;  %v2310_v46 = vand.u32 2147483647, %v2300_v27  ;;  %v2289_v22 = vadd.f32 1.1283791, %v2288_v35  ;;  %v2313_v52 = vor.u32 1.1754944e-38, %v2312_v43 }
 0x365   : > { %4369 = vrcp.f32 %v2340_v40  ;;  %v2328_v41 = vmul.f32 %v2327_v49, %v6321_v50  ;;  %v2372_v3 = vadd.f32 0.001143296, %v2371_v39  ;;  %v2350_v36 = vand.u32 2147483647, %v2340_v40 }
 0x366   : > { %v2475_v0 = vpack.c.bf16 %v2465_v9, %v2464_v5  ;;  %v4368_v42 = vpop.eup %4367  ;;  %vm2311_vm5 = vcmp.eq.f32.partialorder %v2310_v46, 8.507059e+37  ;;  %v2290_v24 = vmul.f32 %v2289_v22, %v6281_v20  ;;  %v2352_v31 = vand.u32 2147483648, %v2340_v40 }
 0x367   : > { %v2302_v21 = vmul.f32 %v4368_v42, %v2300_v27  ;;  %vm2307_vm3 = vweird.f32 %v4368_v42  ;;  %v2329_v60 = vadd.f32 1.1283791, %v2328_v41  ;;  %v2373_v4 = vmul.f32 %v2372_v3, %v6376_v2 }
 0x368   : > { %2579 = vmatmul.bf16.gmra.mxu3 %v2475_v0  ;;  %v2562_v13 = vpop.f32.mrf.mxu3  ;;  %vm2308_vm0 = vmor %vm2306_vm4, %vm2307_vm3  ;;  %vm2346_vm7 = vweird.f32 %v2340_v40  ;;  %v2353_v44 = vor.u32 1.1754944e-38, %v2352_v31  ;;  %vm2351_vm9 = vcmp.eq.f32.partialorder %v2350_v36, 8.507059e+37  ;;  %v1778_v33 = vmul.f32 0.5, %v6267_v10 }
 0x369   : > { %v2303_v11 = vsub.f32 1.0, %v2302_v21  ;;  %v6381_v14 = vadd.f32 %v6298_v62, %v2562_v13  ;;  %v2374_v19 = vadd.f32 0.014752088, %v2373_v4  ;;  %v2330_v28 = vmul.f32 %v2329_v60, %v6291_v57 }
 0x36a   : > { %v1779_v0 = vmul.f32 0.5, %v6278_v47  ;;  %v2360_v22 = vmul.f32 2.1237322e-06, %v6376_v2 }
 0x36b   : > { %v2304_v58 = vmul.f32 %v4368_v42, %v2303_v11  ;;  %2603 = vadd.xlane.f32.xlu2 %v6381_v14  ;;  %v4370_v18 = vpop.eup %4369  ;;  %v2375_v56 = vmul.f32 %v2374_v19, %v6376_v2 }
 0x36c   : > { %v2342_v34 = vmul.f32 %v4370_v18, %v2340_v40  ;;  %vm2347_vm6 = vweird.f32 %v4370_v18  ;;  %v2361_v3 = vadd.f32 0.00028619796, %v2360_v22 }
 0x36d   : > { %v2305_v6 = vadd.f32 %v4368_v42, %v2304_v58  ;;  %vm2348_vm8 = vmor %vm2346_vm7, %vm2347_vm6  ;;  %v2376_v40 = vadd.f32 0.112945676, %v2375_v56 }
 0x36e   : > { %v2343_v55 = vsub.f32 1.0, %v2342_v34 }
 0x36f   : > { %v2309_v38 = vsel %vm2308_vm0, %v4368_v42, %v2305_v6  ;;  %v2377_v43 = vmul.f32 %v2376_v40, %v6376_v2 }
 0x370   : > { %v2314_v26 = vsel %vm2311_vm5, %v2313_v52, %v2309_v38  ;;  %v2344_v50 = vmul.f32 %v4370_v18, %v2343_v55  ;;  %v2362_v38 = vmul.f32 %v2361_v3, %v6376_v2 }
 0x371   : > { %v2315_v1 = vmul.f32 %v2314_v26, %v2290_v24  ;;  %v2378_v58 = vadd.f32 0.4994258, %v2377_v43 }
 0x372   : > { %v2345_v8 = vadd.f32 %v4370_v18, %v2344_v50  ;;  %v2363_v26 = vadd.f32 0.0036580483, %v2362_v38 }
 0x373   : > { %v4053_v23 = vclamps-f32 %v2315_v1, 1.0  ;;  %v2379_v6 = vmul.f32 %v2378_v58, %v6376_v2 }
 0x374   : > { %v1519_v48 = vpop.xlane.xlu1 %1518  ;;  %v2565_v20 = vpop.f32.mrf.mxu3  ;;  %v2349_v29 = vsel %vm2348_vm8, %v4370_v18, %v2345_v8 }
 0x375   : > { %v1535_v7 = vmul.f32 %v1519_v48, %v5515_v54  ;;  %v6390_v15 = vadd.f32 %v6298_v62, %v2565_v20  ;;  %v2354_v30 = vsel %vm2351_vm9, %v2353_v44, %v2349_v29  ;;  %v2450_v9 = vadd.f32 1.0, %v4053_v23 }
 0x376   : > { %v2355_v12 = vmul.f32 %v2354_v30, %v2330_v28  ;;  %v2380_v34 = vadd.f32 1.0, %v2379_v6 }
 0x377   : > { %v1551_v27 = vadd.f32 1e-05, %v1535_v7  ;;  %2605 = vadd.xlane.f32.xlu0 %v6390_v15  ;;  %v2466_v42 = vmul.f32 %v2450_v9, %v1778_v33 }
 0x378   : > { %v4054_v5 = vclamps-f32 %v2355_v12, 1.0  ;;  %vm2386_vm14 = vweird.f32 %v2380_v34 }
 0x379   : > { %4371 = vrsqrt.f32 %v1551_v27  ;;  %vm1708_vm11 = vweird.f32 %v1551_v27 }
 0x37a   : > { %v2451_v57 = vadd.f32 1.0, %v4054_v5  ;;  %4373 = vrcp.f32 %v2380_v34 }
 0x37c   : > { %v2467_v21 = vmul.f32 %v2451_v57, %v1779_v0  ;;  %v2567_v35 = vpop.f32.mrf.mxu3  ;;  %v2392_v0 = vand.u32 2147483648, %v2380_v34  ;;  %v2390_v57 = vand.u32 2147483647, %v2380_v34 }
 0x37d   : > { %v6397_v13 = vadd.f32 %v6298_v62, %v2567_v35 }
 0x37e   : > { %v2476_v49 = vpack.c.bf16 %v2467_v21, %v2466_v42  ;;  %v2393_v21 = vor.u32 1.1754944e-38, %v2392_v0  ;;  %vm2391_vm1 = vcmp.eq.f32.partialorder %v2390_v57, 8.507059e+37 }
 0x37f   : > { %v4372_v53 = vpop.eup %4371  ;;  %2607 = vadd.xlane.f32.xlu1 %v6397_v13 }
 0x380   : > { %v1703_v51 = vmul.f32 %v4372_v53, %v1551_v27  ;;  %vm1709_vm10 = vweird.f32 %v4372_v53  ;;  %2584 = vmatmul.bf16.gmra.mxu3 %v2476_v49 }
 0x381   : > { %vm1710_vm12 = vmor %vm1708_vm11, %vm1709_vm10 }
 0x382   : > { %v1704_v63 = vmul.f32 %v4372_v53, %v1703_v51 }
 0x384   : > { %v1705_v11 = vmul.f32 0.5, %v1704_v63 }
 0x386   : > { %v1706_v39 = vsub.f32 1.5, %v1705_v11 }
 0x388   : > { %v1707_v10 = vmul.f32 %v4372_v53, %v1706_v39 }
 0x38a   : > { %v1711_v47 = vsel %vm1710_vm12, %v4372_v53, %v1707_v10 }
 0x38b   : > { %v1727_v46 = vmul.f32 %v1711_v47, %v5986_v17 }
 0x38d   : > { %v1746_v18 = vmul.f32 %v6056_v16, %v1727_v46  ;;  %v2364_v16 = vmul.f32 %v2363_v26, %v6376_v2 }
 0x38f   : > { %v6406_v41 = vadd.f32 %v6069_v32, %v1746_v18  ;;  %v4374_v32 = vpop.eup %4373  ;;  %v2365_v50 = vadd.f32 0.05243302, %v2364_v16 }
 0x390   : > { %v2382_v27 = vmul.f32 %v4374_v32, %v2380_v34  ;;  %vm2387_vm13 = vweird.f32 %v4374_v32 }
 0x391   : > { %v1797_v52 = vmul.f32 0.70710677, %v6406_v41  ;;  %v2366_v20 = vmul.f32 %v2365_v50, %v6376_v2  ;;  %vm2388_vm15 = vmor %vm2386_vm14, %vm2387_vm13 }
 0x392   : > { %v2383_v23 = vsub.f32 1.0, %v2382_v27 }
 0x393   : > { %v2398_v48 = vmul.f32 %v1797_v52, %v1797_v52  ;;  %v2367_v12 = vadd.f32 0.18741608, %v2366_v20 }
 0x394   : > { %v2384_v56 = vmul.f32 %v4374_v32, %v2383_v23 }
 0x395   : > { %v2399_v24 = vmin.f32 %v2398_v48, 16.0  ;;  %v2368_v51 = vmul.f32 %v2367_v12, %v6376_v2 }
 0x396   : > { %v2385_v33 = vadd.f32 %v4374_v32, %v2384_v56 }
 0x397   : > { %v2400_v17 = vmul.f32 2.1237322e-06, %v2399_v24  ;;  %v2411_v55 = vmul.f32 3.8918573e-05, %v2399_v24  ;;  %v2369_v40 = vadd.f32 1.1283791, %v2368_v51 }
 0x398   : > { %v2389_v42 = vsel %vm2388_vm15, %v4374_v32, %v2385_v33 }
 0x399   : > { %v2401_v7 = vadd.f32 0.00028619796, %v2400_v17  ;;  %v2412_v60 = vadd.f32 0.001143296, %v2411_v55  ;;  %v2394_v11 = vsel %vm2391_vm1, %v2393_v21, %v2389_v42  ;;  %v2370_v43 = vmul.f32 %v2369_v40, %v6362_v37 }
 0x39a   : > { %v1780_v55 = vmul.f32 0.5, %v6328_v61 }
 0x39b   : > { %v2402_v36 = vmul.f32 %v2401_v7, %v2399_v24  ;;  %v2413_v31 = vmul.f32 %v2412_v60, %v2399_v24  ;;  %v2395_v2 = vmul.f32 %v2394_v11, %v2370_v43  ;;  %v1781_v7 = vmul.f32 0.5, %v6406_v41 }
 0x39d   : > { %v2414_v4 = vadd.f32 0.014752088, %v2413_v31  ;;  %v2403_v1 = vadd.f32 0.0036580483, %v2402_v36  ;;  %v4055_v3 = vclamps-f32 %v2395_v2, 1.0 }
 0x39f   : > { %v2415_v8 = vmul.f32 %v2414_v4, %v2399_v24  ;;  %v2404_v19 = vmul.f32 %v2403_v1, %v2399_v24  ;;  %v2452_v17 = vadd.f32 1.0, %v4055_v3 }
 0x3a1   : > { %v2416_v44 = vadd.f32 0.112945676, %v2415_v8  ;;  %v2405_v30 = vadd.f32 0.05243302, %v2404_v19  ;;  %v2468_v36 = vmul.f32 %v2452_v17, %v1780_v55 }
 0x3a3   : > { %v2417_v28 = vmul.f32 %v2416_v44, %v2399_v24  ;;  %v2406_v9 = vmul.f32 %v2405_v30, %v2399_v24 }
 0x3a5   : > { %v2418_v29 = vadd.f32 0.4994258, %v2417_v28  ;;  %v2407_v63 = vadd.f32 0.18741608, %v2406_v9 }
 0x3a7   : > { %v2419_v53 = vmul.f32 %v2418_v29, %v2399_v24  ;;  %v2408_v49 = vmul.f32 %v2407_v63, %v2399_v24 }
 0x3a9   : > { %v2420_v5 = vadd.f32 1.0, %v2419_v53  ;;  %v2409_v58 = vadd.f32 1.1283791, %v2408_v49 }
 0x3ab   : > { %4375 = vrcp.f32 %v2420_v5  ;;  %v2432_v47 = vand.u32 2147483648, %v2420_v5  ;;  %v2430_v22 = vand.u32 2147483647, %v2420_v5  ;;  %vm2426_vm3 = vweird.f32 %v2420_v5 }
 0x3ac   : > { %v2410_v34 = vmul.f32 %v2409_v58, %v1797_v52 }
 0x3ad   : > { %v2433_v6 = vor.u32 1.1754944e-38, %v2432_v47  ;;  %vm2431_vm0 = vcmp.eq.f32.partialorder %v2430_v22, 8.507059e+37 }
 0x3b1   : > { %v4376_v35 = vpop.eup %4375 }
 0x3b2   : > { %v2422_v39 = vmul.f32 %v4376_v35, %v2420_v5  ;;  %vm2427_vm2 = vweird.f32 %v4376_v35 }
 0x3b3   : > { %vm2428_vm4 = vmor %vm2426_vm3, %vm2427_vm2 }
 0x3b4   : > { %v2423_v10 = vsub.f32 1.0, %v2422_v39 }
 0x3b6   : > { %v2424_v46 = vmul.f32 %v4376_v35, %v2423_v10 }
 0x3b8   : > { %v2425_v18 = vadd.f32 %v4376_v35, %v2424_v46 }
 0x3ba   : > { %v2429_v38 = vsel %vm2428_vm4, %v4376_v35, %v2425_v18 }
 0x3bb   : > { %v2434_v48 = vsel %vm2431_vm0, %v2433_v6, %v2429_v38 }
 0x3bc   : > { %v2435_v24 = vmul.f32 %v2434_v48, %v2410_v34 }
 0x3be   : > { %v4056_v26 = vclamps-f32 %v2435_v24, 1.0 }
 0x3c0   : > { %v2570_v37 = vpop.f32.mrf.mxu3  ;;  %v2453_v60 = vadd.f32 1.0, %v4056_v26 }
 0x3c1   : > { %v2571_v16 = vadd.f32 %v6298_v62, %v2570_v37 }
 0x3c2   : > { %v2469_v31 = vmul.f32 %v2453_v60, %v1781_v7 }
 0x3c3   : > { %2609 = vadd.xlane.f32.xlu0 %v2571_v16  ;;  %v2598_v4 = vpop.xlane.xlu2 %2597 }
 0x3c4   : > { %v2477_v32 = vpack.c.bf16 %v2469_v31, %v2468_v36  ;;  %v2629_v52 = vmul.f32 %v2598_v4, %v5515_v54 }
 0x3c6   : > { %2589 = vmatmul.bf16.gmra.mxu3 %v2477_v32  ;;  %v6419_v1 = vsub.f32 %v6313_v45, %v2629_v52 }
 0x3c8   : > { %v2661_v50 = vmul.f32 %v6419_v1, %v6419_v1  ;;  %v2572_v41 = vpop.f32.mrf.mxu3 }
 0x3c9   : > { %v2573_v44 = vadd.f32 %v6298_v62, %v2572_v41 }
 0x3ca   : > { %2677 = vadd.xlane.f32.xlu2 %v2661_v50 }
 0x3cb   : > { %v2600_v61 = vpop.xlane.xlu0 %2599 }
 0x3cc   : > { %v2630_v27 = vmul.f32 %v2600_v61, %v5515_v54  ;;  %v6500_v61 = vld [vmem:[%s7308_s11] ss:$0 sm:$0xff] }
 0x3ce   : > { %v6425_v8 = vsub.f32 %v6336_v25, %v2630_v27 }
 0x3d0   : > { %v2662_v19 = vmul.f32 %v6425_v8, %v6425_v8 }
 0x3d2   : > { %2611 = vadd.xlane.f32.xlu2 %v2573_v44  ;;  %2679 = vadd.xlane.f32.xlu1 %v2662_v19 }
 0x3d6   : > { %v2602_v23 = vpop.xlane.xlu1 %2601 }
 0x3d7   : > { %v2575_v45 = vpop.f32.mrf.mxu3  ;;  %v2631_v28 = vmul.f32 %v2602_v23, %v5515_v54 }
 0x3d8   : > { %v6431_v20 = vadd.f32 %v6298_v62, %v2575_v45 }
 0x3d9   : > { %v6436_v29 = vsub.f32 %v6371_v59, %v2631_v28 }
 0x3da   : > { %2613 = vadd.xlane.f32.xlu1 %v6431_v20 }
 0x3db   : > { %v2663_v25 = vmul.f32 %v6436_v29, %v6436_v29 }
 0x3dd   : > { %2681 = vadd.xlane.f32.xlu0 %v2663_v25 }
 0x3de   : > { %v2604_v30 = vpop.xlane.xlu2 %2603 }
 0x3df   : > { %v2577_v12 = vpop.f32.mrf.mxu3  ;;  %v2632_v56 = vmul.f32 %v2604_v30, %v5515_v54 }
 0x3e0   : > { %v6445_v5 = vadd.f32 %v6298_v62, %v2577_v12 }
 0x3e1   : > { %v6442_v53 = vsub.f32 %v6381_v14, %v2632_v56 }
 0x3e3   : > { %v2664_v9 = vmul.f32 %v6442_v53, %v6442_v53 }
 0x3e5   : > { %2683 = vadd.xlane.f32.xlu2 %v2664_v9  ;;  %2615 = vadd.xlane.f32.xlu0 %v6445_v5 }
 0x3ea   : > { %v2606_v33 = vpop.xlane.xlu0 %2605 }
 0x3eb   : > { %v2580_v59 = vpop.f32.mrf.mxu3  ;;  %v2633_v0 = vmul.f32 %v2606_v33, %v5515_v54 }
 0x3ec   : > { %v6451_v51 = vadd.f32 %v6298_v62, %v2580_v59 }
 0x3ed   : > { %v6456_v14 = vsub.f32 %v6390_v15, %v2633_v0 }
 0x3ee   : > { %2617 = vadd.xlane.f32.xlu2 %v6451_v51 }
 0x3ef   : > { %v2665_v57 = vmul.f32 %v6456_v14, %v6456_v14 }
 0x3f1   : > { %2685 = vadd.xlane.f32.xlu1 %v2665_v57 }
 0x3f2   : > { %v2608_v63 = vpop.xlane.xlu1 %2607 }
 0x3f3   : > { %v2582_v40 = vpop.f32.mrf.mxu3  ;;  %v2634_v42 = vmul.f32 %v2608_v63, %v5515_v54 }
 0x3f4   : > { %v6465_v35 = vadd.f32 %v6298_v62, %v2582_v40 }
 0x3f5   : > { %v6462_v21 = vsub.f32 %v6397_v13, %v2634_v42 }
 0x3f7   : > { %v2666_v11 = vmul.f32 %v6462_v21, %v6462_v21 }
 0x3f9   : > { %2619 = vadd.xlane.f32.xlu1 %v6465_v35  ;;  %2687 = vadd.xlane.f32.xlu0 %v2666_v11 }
 0x403   : > { %v2585_v15 = vpop.f32.mrf.mxu3 }
 0x404   : > { %v6471_v49 = vadd.f32 %v6298_v62, %v2585_v15 }
 0x406   : > { %2621 = vadd.xlane.f32.xlu0 %v6471_v49 }
 0x40b   : > { %v2587_v47 = vpop.f32.mrf.mxu3 }
 0x40c   : > { %v6481_v22 = vadd.f32 %v6298_v62, %v2587_v47 }
 0x436   : > { %v2610_v39 = vpop.xlane.xlu0 %2609 }
 0x437   : > { %v2635_v43 = vmul.f32 %v2610_v39, %v5515_v54 }
 0x439   : > { %v6475_v13 = vsub.f32 %v2571_v16, %v2635_v43 }
 0x43b   : > { %v2667_v10 = vmul.f32 %v6475_v13, %v6475_v13 }
 0x43d   : > { %2689 = vadd.xlane.f32.xlu2 %v2667_v10  ;;  %v2678_v2 = vpop.xlane.xlu2 %2677 }
 0x43e   : > { %v2709_v58 = vmul.f32 %v2678_v2, %v5515_v54 }
 0x440   : > { %v2725_v46 = vadd.f32 1e-05, %v2709_v58 }
 0x442   : > { %4377 = vrsqrt.f32 %v2725_v46  ;;  %vm2747_vm6 = vweird.f32 %v2725_v46 }
 0x445   : > { %2623 = vadd.xlane.f32.xlu2 %v6481_v22  ;;  %v2612_v18 = vpop.xlane.xlu2 %2611  ;;  %v2680_v6 = vpop.xlane.xlu1 %2679 }
 0x446   : > { %v2636_v3 = vmul.f32 %v2612_v18, %v5515_v54  ;;  %v2710_v34 = vmul.f32 %v2680_v6, %v5515_v54 }
 0x448   : > { %v4378_v38 = vpop.eup %4377  ;;  %v6486_v48 = vsub.f32 %v2573_v44, %v2636_v3  ;;  %v2726_v24 = vadd.f32 1e-05, %v2710_v34  ;;  %v3689_v34 = vld [vmem:[#allocation7 + $0xf0] sm:$0xff] }
 0x449   : > { %v2742_v26 = vmul.f32 %v4378_v38, %v2725_v46  ;;  %v2590_v55 = vpop.f32.mrf.mxu3  ;;  %vm2748_vm5 = vweird.f32 %v4378_v38  ;;  %3697 = vmatpush.msrb.mxu0 %v3689_v34  ;;  %v3677_v34 = vld [vmem:[#allocation7 + $0x90] sm:$0xff] }
 0x44a   : > { %4379 = vrsqrt.f32 %v2726_v24  ;;  %v2668_v17 = vmul.f32 %v6486_v48, %v6486_v48  ;;  %v6492_v32 = vadd.f32 %v6298_v62, %v2590_v55  ;;  %vm2749_vm7 = vmor %vm2747_vm6, %vm2748_vm5  ;;  %vm2757_vm9 = vweird.f32 %v2726_v24 }
 0x44b   : > { %v2743_v37 = vmul.f32 %v4378_v38, %v2742_v26 }
 0x44c   : > { %2691 = vadd.xlane.f32.xlu1 %v2668_v17 }
 0x44d   : > { %v2744_v7 = vmul.f32 0.5, %v2743_v37  ;;  %v2614_v60 = vpop.xlane.xlu1 %2613 }
 0x44e   : > { %v2637_v36 = vmul.f32 %v2614_v60, %v5515_v54  ;;  %v3687_v60 = vld [vmem:[#allocation7 + $0xe0] sm:$0xff] }
 0x44f   : > { %v2745_v16 = vsub.f32 1.5, %v2744_v7  ;;  %3698 = vmatpush.msrb.mxu0 %v3687_v60  ;;  %v3676_v60 = vld [vmem:[#allocation7 + $0x88] sm:$0xff] }
 0x450   : > { %v4380_v31 = vpop.eup %4379  ;;  %v6495_v50 = vsub.f32 %v6431_v20, %v2637_v36  ;;  %v2682_v45 = vpop.xlane.xlu0 %2681  ;;  %v6509_v20 = vld [vmem:[%s7410_s25] ss:$0 sm:$0xff] }
 0x451   : > { %v2746_v4 = vmul.f32 %v4378_v38, %v2745_v16  ;;  %v2752_v52 = vmul.f32 %v4380_v31, %v2726_v24  ;;  %v2711_v28 = vmul.f32 %v2682_v45, %v5515_v54  ;;  %v2592_v25 = vpop.f32.mrf.mxu3  ;;  %vm2758_vm8 = vweird.f32 %v4380_v31  ;;  %v3688_v16 = vld [vmem:[#allocation7 + $0xe8] sm:$0xff]  ;;  %v3683_v45 = vld [vmem:[#allocation7 + $0xc0] sm:$0xff] }
 0x452   : > { %v2669_v44 = vmul.f32 %v6495_v50, %v6495_v50  ;;  %v6520_v59 = vadd.f32 %v6298_v62, %v2592_v25  ;;  %vm2759_vm10 = vmor %vm2757_vm9, %vm2758_vm8 }
 0x453   : > { %v2750_v41 = vsel %vm2749_vm7, %v4378_v38, %v2746_v4  ;;  %v2753_v27 = vmul.f32 %v4380_v31, %v2752_v52  ;;  %v6513_v56 = vadd.f32 1e-05, %v2711_v28  ;;  %v3690_v38 = vld [vmem:[#allocation7 + $0xf8] sm:$0xff] }
 0x454   : > { %v2901_v19 = vmul.f32 %v2750_v41, %v6419_v1  ;;  %2625 = vadd.xlane.f32.xlu1 %v6492_v32  ;;  %2693 = vadd.xlane.f32.xlu0 %v2669_v44  ;;  %v3685_v44 = vld [vmem:[#allocation7 + $0xd0] sm:$0xff] }
 0x455   : > { %v2754_v23 = vmul.f32 0.5, %v2753_v27  ;;  %4381 = vrsqrt.f32 %v6513_v56  ;;  %3762 = vmatpush.msrb.mxu1 %v3690_v38  ;;  %vm2767_vm12 = vweird.f32 %v6513_v56  ;;  %3699 = vmatpush.msrb.mxu0 %v3685_v44  ;;  %v3678_v38 = vld [vmem:[#allocation7 + $0x98] sm:$0xff] }
 0x456   : > { %v2920_v30 = vmul.f32 %v6500_v61, %v2901_v19  ;;  %v3686_v19 = vld [vmem:[#allocation7 + $0xd8] sm:$0xff] }
 0x457   : > { %v2755_v12 = vsub.f32 1.5, %v2754_v23  ;;  %3763 = vmatpush.msrb.mxu1 %v3688_v16  ;;  %3700 = vmatpush.msrb.mxu0 %v3683_v45 }
 0x458   : > { %v6516_v1 = vadd.f32 %v6509_v20, %v2920_v30  ;;  %v2684_v57 = vpop.xlane.xlu2 %2683  ;;  %v2616_v63 = vpop.xlane.xlu0 %2615  ;;  %v3684_v30 = vld [vmem:[#allocation7 + $0xc8] sm:$0xff] }
 0x459   : > { %v2756_v9 = vmul.f32 %v4380_v31, %v2755_v12  ;;  %v2712_v11 = vmul.f32 %v2684_v57, %v5515_v54  ;;  %v2638_v15 = vmul.f32 %v2616_v63, %v5515_v54  ;;  %3764 = vmatpush.msrb.mxu1 %v3686_v19  ;;  %v3681_v57 = vld [vmem:[#allocation7 + $0xb0] sm:$0xff] }
 0x45a   : > { %v6523_v33 = vmul.f32 0.70710677, %v6516_v1  ;;  %3701 = vmatpush.msrb.mxu0 %v3681_v57  ;;  %v3671_v57 = vld [vmem:[#allocation7 + $0x60] sm:$0xff] }
 0x45b   : > { %v2760_v0 = vsel %vm2759_vm10, %v4380_v31, %v2756_v9  ;;  %v6534_v43 = vpop.eup %4381  ;;  %v6536_v10 = vadd.f32 1e-05, %v2712_v11  ;;  %v6539_v2 = vsub.f32 %v6445_v5, %v2638_v15  ;;  %3765 = vmatpush.msrb.mxu1 %v3684_v30 }
 0x45c   : > { %v2987_v40 = vmul.f32 %v6523_v33, %v6523_v33  ;;  %v2902_v42 = vmul.f32 %v2760_v0, %v6425_v8  ;;  %2627 = vadd.xlane.f32.xlu0 %v6520_v59  ;;  %v2762_v8 = vmul.f32 %v6534_v43, %v6513_v56  ;;  %vm2768_vm11 = vweird.f32 %v6534_v43  ;;  %v3682_v56 = vld [vmem:[#allocation7 + $0xb8] sm:$0xff] }
 0x45d   : > { %4383 = vrsqrt.f32 %v6536_v10  ;;  %v2670_v46 = vmul.f32 %v6539_v2, %v6539_v2  ;;  %vm6575_vm13 = vmor %vm2767_vm12, %vm2768_vm11  ;;  %3766 = vmatpush.msrb.mxu1 %v3682_v56  ;;  %vm2777_vm15 = vweird.f32 %v6536_v10  ;;  %v3672_v56 = vld [vmem:[#allocation7 + $0x68] sm:$0xff] }
 0x45e   : > { %v6531_v62 = vmin.f32 %v2987_v40, 16.0  ;;  %v2921_v39 = vmul.f32 %v6500_v61, %v2902_v42  ;;  %v2763_v6 = vmul.f32 %v6534_v43, %v2762_v8  ;;  %v3679_v8 = vld [vmem:[#allocation7 + $0xa0] sm:$0xff] }
 0x45f   : > { %2695 = vadd.xlane.f32.xlu2 %v2670_v46  ;;  %3702 = vmatpush.msrb.mxu0 %v3679_v8  ;;  %v3669_v8 = vld [vmem:[#allocation7 + $0x50] sm:$0xff] }
 0x460   : > { %v2989_v47 = vmul.f32 2.1237322e-06, %v6531_v62  ;;  %v3000_v58 = vmul.f32 3.8918573e-05, %v6531_v62  ;;  %v6549_v18 = vadd.f32 %v6509_v20, %v2921_v39  ;;  %v2764_v26 = vmul.f32 0.5, %v2763_v6 }
 0x461   : > { %v2618_v17 = vpop.xlane.xlu2 %2617  ;;  %3703 = vmatpush.msrb.mxu0 %v3677_v34 }
 0x462   : > { %v2990_v3 = vadd.f32 0.00028619796, %v2989_v47  ;;  %v3001_v5 = vadd.f32 0.001143296, %v3000_v58  ;;  %v6553_v24 = vmul.f32 0.70710677, %v6549_v18  ;;  %v2639_v7 = vmul.f32 %v2618_v17, %v5515_v54 }
 0x463   : > { %v2765_v31 = vsub.f32 1.5, %v2764_v26  ;;  %v6561_v41 = vpop.eup %4383  ;;  %v3680_v47 = vld [vmem:[#allocation7 + $0xa8] sm:$0xff] }
 0x464   : > { %v2991_v37 = vmul.f32 %v2990_v3, %v6531_v62  ;;  %v3002_v55 = vmul.f32 %v3001_v5, %v6531_v62  ;;  %v3027_v36 = vmul.f32 %v6553_v24, %v6553_v24  ;;  %v6564_v27 = vsub.f32 %v6451_v51, %v2639_v7  ;;  %v2686_v9 = vpop.xlane.xlu1 %2685  ;;  %3767 = vmatpush.msrb.mxu1 %v3680_v47  ;;  %v3675_v7 = vld [vmem:[#allocation7 + $0x80] sm:$0xff] }
 0x465   : > { %v2766_v28 = vmul.f32 %v6534_v43, %v2765_v31  ;;  %v2772_v25 = vmul.f32 %v6561_v41, %v6536_v10  ;;  %v2713_v15 = vmul.f32 %v2686_v9, %v5515_v54  ;;  %vm2778_vm14 = vweird.f32 %v6561_v41  ;;  %3704 = vmatpush.msrb.mxu0 %v3675_v7 }
 0x466   : > { %v2992_v4 = vadd.f32 0.0036580483, %v2991_v37  ;;  %v3003_v52 = vadd.f32 0.014752088, %v3002_v55  ;;  %v6566_v23 = vmin.f32 %v3027_v36, 16.0  ;;  %v2671_v0 = vmul.f32 %v6564_v27, %v6564_v27  ;;  %3768 = vmatpush.msrb.mxu1 %v3678_v38  ;;  %vm6605_vm1 = vmor %vm2777_vm15, %vm2778_vm14 }
 0x467   : > { %v2770_v42 = vsel %vm6575_vm13, %v6534_v43, %v2766_v28  ;;  %v2773_v11 = vmul.f32 %v6561_v41, %v2772_v25  ;;  %v6589_v3 = vadd.f32 1e-05, %v2713_v15  ;;  %v3673_v28 = vld [vmem:[#allocation7 + $0x70] sm:$0xff]  ;;  %v3674_v25 = vld [vmem:[#allocation7 + $0x78] sm:$0xff] }
 0x468   : > { %v2993_v12 = vmul.f32 %v2992_v4, %v6531_v62  ;;  %v3004_v63 = vmul.f32 %v3003_v52, %v6531_v62  ;;  %v3029_v40 = vmul.f32 2.1237322e-06, %v6566_v23  ;;  %2697 = vadd.xlane.f32.xlu1 %v2671_v0  ;;  %v2903_v46 = vmul.f32 %v2770_v42, %v6436_v29  ;;  %3769 = vmatpush.msrb.mxu1 %v3676_v60  ;;  %v3666_v60 = vld [vmem:[#allocation7 + $0x38] sm:$0xff] }
 0x469   : > { %v2774_v6 = vmul.f32 0.5, %v2773_v11  ;;  %v3040_v5 = vmul.f32 3.8918573e-05, %v6566_v23  ;;  %4385 = vrsqrt.f32 %v6589_v3  ;;  %3705 = vmatpush.msrb.mxu0 %v3673_v28  ;;  %vm2787_vm2 = vweird.f32 %v6589_v3 }
 0x46a   : > { %v2994_v39 = vadd.f32 0.05243302, %v2993_v12  ;;  %v3005_v58 = vadd.f32 0.112945676, %v3004_v63  ;;  %v3030_v17 = vadd.f32 0.00028619796, %v3029_v40  ;;  %v2922_v37 = vmul.f32 %v6500_v61, %v2903_v46  ;;  %3770 = vmatpush.msrb.mxu1 %v3674_v25 }
 0x46b   : > { %v2775_v55 = vsub.f32 1.5, %v2774_v6  ;;  %v3041_v52 = vadd.f32 0.001143296, %v3040_v5  ;;  %3706 = vmatpush.msrb.mxu0 %v3671_v57 }
 0x46c   : > { %v2995_v43 = vmul.f32 %v2994_v39, %v6531_v62  ;;  %v3006_v26 = vmul.f32 %v3005_v58, %v6531_v62  ;;  %v3031_v36 = vmul.f32 %v3030_v17, %v6566_v23  ;;  %v6599_v31 = vadd.f32 %v6509_v20, %v2922_v37  ;;  %v2688_v19 = vpop.xlane.xlu0 %2687  ;;  %v2620_v45 = vpop.xlane.xlu1 %2619  ;;  %3771 = vmatpush.msrb.mxu1 %v3672_v56  ;;  %v3665_v37 = vld [vmem:[#allocation7 + $0x30] sm:$0xff] }
 0x46d   : > { %v2776_v4 = vmul.f32 %v6561_v41, %v2775_v55  ;;  %v2714_v9 = vmul.f32 %v2688_v19, %v5515_v54  ;;  %v2640_v0 = vmul.f32 %v2620_v45, %v5515_v54  ;;  %3707 = vmatpush.msrb.mxu0 %v3669_v8  ;;  %v3663_v19 = vld [vmem:[#allocation7 + $0x20] sm:$0xff]  ;;  %v3661_v56 = vld [vmem:[#allocation7 + $0x10] sm:$0xff]  ;;  %v3662_v8 = vld [vmem:[#allocation7 + $0x18] sm:$0xff] }
 0x46e   : > { %v2996_v29 = vadd.f32 0.18741608, %v2995_v43  ;;  %v3007_v16 = vadd.f32 0.4994258, %v3006_v26  ;;  %v6612_v51 = vmul.f32 0.70710677, %v6599_v31 }
 0x46f   : > { %v2780_v10 = vsel %vm6605_vm1, %v6561_v41, %v2776_v4  ;;  %v3032_v40 = vadd.f32 0.0036580483, %v3031_v36  ;;  %v6622_v42 = vpop.eup %4385  ;;  %v6624_v11 = vadd.f32 1e-05, %v2714_v9  ;;  %v6627_v15 = vsub.f32 %v6465_v35, %v2640_v0  ;;  %v3670_v35 = vld [vmem:[#allocation7 + $0x58] sm:$0xff]  ;;  %v3667_v43 = vld [vmem:[#allocation7 + $0x40] sm:$0xff] }
 0x470   : > { %v2997_v30 = vmul.f32 %v2996_v29, %v6531_v62  ;;  %v3008_v12 = vmul.f32 %v3007_v16, %v6531_v62  ;;  %v3042_v62 = vmul.f32 %v3041_v52, %v6566_v23  ;;  %v3067_v41 = vmul.f32 %v6612_v51, %v6612_v51  ;;  %3772 = vmatpush.msrb.mxu1 %v3670_v35 }
 0x471   : > { %v2782_v39 = vmul.f32 %v6622_v42, %v6589_v3  ;;  %v2904_v47 = vmul.f32 %v2780_v10, %v6442_v53  ;;  %v2672_v58 = vmul.f32 %v6627_v15, %v6627_v15  ;;  %v3033_v5 = vmul.f32 %v3032_v40, %v6566_v23  ;;  %v3668_v53 = vld [vmem:[#allocation7 + $0x48] sm:$0xff]  ;;  %3708 = vmatpush.msrb.mxu0 %v3667_v43 }
 0x472   : > { %v6619_v63 = vadd.f32 1.0, %v3008_v12  ;;  %v2998_v46 = vadd.f32 1.1283791, %v2997_v30  ;;  %v3043_v34 = vadd.f32 0.014752088, %v3042_v62  ;;  %v6642_v26 = vmin.f32 %v3067_v41, 16.0  ;;  %3773 = vmatpush.msrb.mxu1 %v3668_v53 }
 0x473   : > { %v2783_v6 = vmul.f32 %v6622_v42, %v2782_v39  ;;  %2699 = vadd.xlane.f32.xlu2 %v2672_v58  ;;  %v2923_v7 = vmul.f32 %v6500_v61, %v2904_v47  ;;  %vm2788_vm3 = vweird.f32 %v6622_v42  ;;  %v3034_v45 = vadd.f32 0.05243302, %v3033_v5  ;;  %3709 = vmatpush.msrb.mxu0 %v3665_v37  ;;  %v3664_v30 = vld [vmem:[#allocation7 + $0x28] sm:$0xff]  ;;  %v3659_v5 = vld [vmem:[#allocation7] sm:$0xff] }
 0x474   : > { %4387 = vrcp.f32 %v6619_v63  ;;  %v3019_v38 = vand.u32 2147483647, %v6619_v63  ;;  %v3021_v55 = vand.u32 2147483648, %v6619_v63  ;;  %v3044_v29 = vmul.f32 %v3043_v34, %v6566_v23  ;;  %3774 = vmatpush.msrb.mxu1 %v3666_v60  ;;  %vm6675_vm6 = vmor %vm2787_vm2, %vm2788_vm3  ;;  %v3660_v34 = vld [vmem:[#allocation7 + $0x8] sm:$0xff] }
 0x475   : > { %4389 = vrsqrt.f32 %v6624_v11  ;;  %v2784_v17 = vmul.f32 0.5, %v2783_v6  ;;  %v6649_v16 = vmul.f32 %v2998_v46, %v6523_v33  ;;  %v3069_v36 = vmul.f32 2.1237322e-06, %v6642_v26  ;;  %3710 = vmatpush.msrb.mxu0 %v3663_v19 }
 0x476   : > { %v3080_v4 = vmul.f32 3.8918573e-05, %v6642_v26  ;;  %vm3015_vm4 = vweird.f32 %v6619_v63  ;;  %v3045_v28 = vadd.f32 0.112945676, %v3044_v29  ;;  %vm6660_vm0 = vcmp.eq.f32.partialorder %v3019_v38, 8.507059e+37  ;;  %3775 = vmatpush.msrb.mxu1 %v3664_v30 }
 0x477   : > { %v2785_v44 = vsub.f32 1.5, %v2784_v17  ;;  %v3070_v10 = vadd.f32 0.00028619796, %v3069_v36  ;;  %vm2797_vm5 = vweird.f32 %v6624_v11  ;;  %v3022_v40 = vor.u32 1.1754944e-38, %v3021_v55  ;;  %3711 = vmatpush.msrb.mxu0 %v3661_v56 }
 0x478   : > { %v3081_v9 = vadd.f32 0.001143296, %v3080_v4  ;;  %v6669_v62 = vadd.f32 %v6509_v20, %v2923_v7  ;;  %v3046_v58 = vmul.f32 %v3045_v28, %v6566_v23  ;;  %3776 = vmatpush.msrb.mxu1 %v3662_v8  ;;  %v3035_v29 = vmul.f32 %v3034_v45, %v6566_v23 }
 0x479   : > { %v2786_v0 = vmul.f32 %v6622_v42, %v2785_v44  ;;  %v2622_v39 = vpop.xlane.xlu0 %2621  ;;  %v3071_v35 = vmul.f32 %v3070_v10, %v6642_v26  ;;  %3712 = vmatpush.msrb.mxu0 %v3659_v5 }
 0x47a   : > { %v6653_v52 = vpop.eup %4387  ;;  %v3082_v46 = vmul.f32 %v3081_v9, %v6642_v26  ;;  %v2641_v43 = vmul.f32 %v2622_v39, %v5515_v54  ;;  %v3047_v38 = vadd.f32 0.4994258, %v3046_v58  ;;  %3777 = vmatpush.msrb.mxu1 %v3660_v34  ;;  %v3036_v56 = vadd.f32 0.18741608, %v3035_v29 }
 0x47b   : > { %v6656_v25 = vpop.eup %4389  ;;  %v3011_v33 = vmul.f32 %v6653_v52, %v6619_v63  ;;  %v2790_v6 = vsel %vm6675_vm6, %v6622_v42, %v2786_v0  ;;  %vm3016_vm7 = vweird.f32 %v6653_v52  ;;  %v3072_v17 = vadd.f32 0.0036580483, %v3071_v35 }
 0x47c   : > { %v2792_v57 = vmul.f32 %v6656_v25, %v6624_v11  ;;  %v3083_v37 = vadd.f32 0.014752088, %v3082_v46  ;;  %vm2798_vm8 = vweird.f32 %v6656_v25  ;;  %v6691_v42 = vsub.f32 %v6471_v49, %v2641_v43  ;;  %vm3017_vm9 = vmor %vm3015_vm4, %vm3016_vm7 }
 0x47d   : > { %v3012_v47 = vsub.f32 1.0, %v3011_v33  ;;  %v3048_v60 = vmul.f32 %v3047_v38, %v6566_v23  ;;  %v3073_v36 = vmul.f32 %v3072_v17, %v6642_v26  ;;  %v6705_v49 = vmul.f32 0.70710677, %v6669_v62  ;;  %vm2799_vm10 = vmor %vm2797_vm5, %vm2798_vm8 }
 0x47e   : > { %v2793_v3 = vmul.f32 %v6656_v25, %v2792_v57  ;;  %v3084_v4 = vmul.f32 %v3083_v37, %v6642_v26  ;;  %v2673_v19 = vmul.f32 %v6691_v42, %v6691_v42  ;;  %v2905_v45 = vmul.f32 %v2790_v6, %v6456_v14 }
 0x47f   : > { %v3013_v53 = vmul.f32 %v6653_v52, %v3012_v47  ;;  %v3049_v30 = vadd.f32 1.0, %v3048_v60  ;;  %v3074_v33 = vadd.f32 0.05243302, %v3073_v36  ;;  %v3107_v63 = vmul.f32 %v6705_v49, %v6705_v49 }
 0x480   : > { %v2794_v55 = vmul.f32 0.5, %v2793_v3  ;;  %v3085_v10 = vadd.f32 0.112945676, %v3084_v4  ;;  %2701 = vadd.xlane.f32.xlu0 %v2673_v19  ;;  %v2924_v57 = vmul.f32 %v6500_v61, %v2905_v45  ;;  %v2955_v58 = vmul.f32 0.5, %v6516_v1 }
 0x481   : > { %v3014_v7 = vadd.f32 %v6653_v52, %v3013_v53  ;;  %4391 = vrcp.f32 %v3049_v30  ;;  %v6723_v39 = vmin.f32 %v3107_v63, 16.0  ;;  %v3037_v46 = vmul.f32 %v3036_v56, %v6566_v23 }
 0x482   : > { %v2795_v44 = vsub.f32 1.5, %v2794_v55  ;;  %v3086_v41 = vmul.f32 %v3085_v10, %v6642_v26  ;;  %v6726_v8 = vadd.f32 %v6509_v20, %v2924_v57  ;;  %v3059_v37 = vand.u32 2147483647, %v3049_v30 }
 0x483   : > { %v3018_v28 = vsel %vm3017_vm9, %v6653_v52, %v3014_v7  ;;  %v3109_v35 = vmul.f32 2.1237322e-06, %v6723_v39  ;;  %v3061_v60 = vand.u32 2147483648, %v3049_v30  ;;  %v3038_v36 = vadd.f32 1.1283791, %v3037_v46 }
 0x484   : > { %v2796_v9 = vmul.f32 %v6656_v25, %v2795_v44  ;;  %v3023_v0 = vsel %vm6660_vm0, %v3022_v40, %v3018_v28  ;;  %v3075_v40 = vmul.f32 %v3074_v33, %v6642_v26  ;;  %v3087_v47 = vadd.f32 0.4994258, %v3086_v41 }
 0x485   : > { %v3024_v14 = vmul.f32 %v3023_v0, %v6649_v16  ;;  %v6735_v3 = vmul.f32 0.70710677, %v6726_v8  ;;  %v3110_v53 = vadd.f32 0.00028619796, %v3109_v35  ;;  %vm3055_vm12 = vweird.f32 %v3049_v30 }
 0x486   : > { %v2800_v52 = vsel %vm2799_vm10, %v6656_v25, %v2796_v9  ;;  %v3120_v25 = vmul.f32 3.8918573e-05, %v6723_v39  ;;  %v3088_v6 = vmul.f32 %v3087_v47, %v6642_v26  ;;  %v3076_v34 = vadd.f32 0.18741608, %v3075_v40 }
 0x487   : > { %v4089_v12 = vclamps-f32 %v3024_v14, 1.0  ;;  %v2906_v11 = vmul.f32 %v2800_v52, %v6462_v21  ;;  %v4392_v43 = vpop.eup %4391  ;;  %v3111_v23 = vmul.f32 %v3110_v53, %v6723_v39  ;;  %v3147_v29 = vmul.f32 %v6735_v3, %v6735_v3 }
 0x488   : > { %v3121_v38 = vadd.f32 0.001143296, %v3120_v25  ;;  %v3051_v21 = vmul.f32 %v4392_v43, %v3049_v30  ;;  %v6737_v17 = vadd.f32 1.0, %v3088_v6  ;;  %vm3056_vm11 = vweird.f32 %v4392_v43 }
 0x489   : > { %v3627_v16 = vadd.f32 1.0, %v4089_v12  ;;  %v2925_v1 = vmul.f32 %v6500_v61, %v2906_v11  ;;  %v3077_v4 = vmul.f32 %v3076_v34, %v6642_v26  ;;  %v6746_v44 = vmin.f32 %v3147_v29, 16.0  ;;  %vm3057_vm14 = vmor %vm3055_vm12, %vm3056_vm11 }
 0x48a   : > { %v3122_v55 = vmul.f32 %v3121_v38, %v6723_v39  ;;  %v3052_v7 = vsub.f32 1.0, %v3051_v21  ;;  %4393 = vrcp.f32 %v6737_v17  ;;  %v3112_v45 = vadd.f32 0.0036580483, %v3111_v23 }
 0x48b   : > { %v3643_v5 = vmul.f32 %v3627_v16, %v2955_v58  ;;  %v6749_v33 = vadd.f32 %v6509_v20, %v2925_v1  ;;  %vm6751_vm13 = vcmp.eq.f32.partialorder %v3059_v37, 8.507059e+37  ;;  %v3149_v9 = vmul.f32 2.1237322e-06, %v6746_v44 }
 0x48c   : > { %v3053_v19 = vmul.f32 %v4392_v43, %v3052_v7  ;;  %v3123_v28 = vadd.f32 0.014752088, %v3122_v55  ;;  %v3062_v63 = vor.u32 1.1754944e-38, %v3061_v60  ;;  %v3160_v26 = vmul.f32 3.8918573e-05, %v6746_v44 }
 0x48d   : > { %3713 = vmatmul.f32.vlgmr.msrb.gmra.mxu0 %v3643_v5  ;;  %3778 = vmatmul.f32.vlgmr.msrb.gmra.mxu1 %v3643_v5  ;;  %v3039_v14 = vmul.f32 %v3038_v36, %v6553_v24  ;;  %v3078_v52 = vadd.f32 1.1283791, %v3077_v4  ;;  %v3150_v56 = vadd.f32 0.00028619796, %v3149_v9  ;;  %v6761_v30 = vmul.f32 0.70710677, %v6749_v33 }
 0x48e   : > { %v3054_v0 = vadd.f32 %v4392_v43, %v3053_v19  ;;  %v3124_v57 = vmul.f32 %v3123_v28, %v6723_v39  ;;  %v3113_v40 = vmul.f32 %v3112_v45, %v6723_v39  ;;  %v3161_v11 = vadd.f32 0.001143296, %v3160_v26 }
 0x48f   : > { %v2956_v58 = vmul.f32 0.5, %v6549_v18  ;;  %v3151_v46 = vmul.f32 %v3150_v56, %v6746_v44  ;;  %v3101_v34 = vand.u32 2147483648, %v6737_v17  ;;  %v3187_v18 = vmul.f32 %v6761_v30, %v6761_v30 }
 0x490   : > { %v4394_v41 = vpop.eup %4393  ;;  %v3058_v12 = vsel %vm3057_vm14, %v4392_v43, %v3054_v0  ;;  %v3125_v47 = vadd.f32 0.112945676, %v3124_v57  ;;  %v3162_v6 = vmul.f32 %v3161_v11, %v6746_v44  ;;  %v3099_v43 = vand.u32 2147483647, %v6737_v17 }
 0x491   : > { %v3063_v16 = vsel %vm6751_vm13, %v3062_v63, %v3058_v12  ;;  %v3091_v24 = vmul.f32 %v4394_v41, %v6737_v17  ;;  %v3079_v38 = vmul.f32 %v3078_v52, %v6612_v51  ;;  %v3114_v21 = vadd.f32 0.05243302, %v3113_v40 }
 0x492   : > { %v3064_v35 = vmul.f32 %v3063_v16, %v3039_v14  ;;  %v3126_v25 = vmul.f32 %v3125_v47, %v6723_v39  ;;  %vm3096_vm15 = vweird.f32 %v4394_v41  ;;  %v3163_v23 = vadd.f32 0.014752088, %v3162_v6 }
 0x493   : > { %v3092_v5 = vsub.f32 1.0, %v3091_v24  ;;  %v6776_v55 = vmin.f32 %v3187_v18, 16.0  ;;  %vm3095_vm1 = vweird.f32 %v6737_v17  ;;  %v3152_v60 = vadd.f32 0.0036580483, %v3151_v46 }
 0x494   : > { %v4090_v53 = vclamps-f32 %v3064_v35, 1.0  ;;  %v3127_v1 = vadd.f32 0.4994258, %v3126_v25  ;;  %v3102_v4 = vor.u32 1.1754944e-38, %v3101_v34  ;;  %v3164_v19 = vmul.f32 %v3163_v23, %v6746_v44  ;;  %vm3097_vm2 = vmor %vm3095_vm1, %vm3096_vm15 }
 0x495   : > { %v3093_v37 = vmul.f32 %v4394_v41, %v3092_v5  ;;  %v3189_v45 = vmul.f32 2.1237322e-06, %v6776_v55  ;;  %v3115_v28 = vmul.f32 %v3114_v21, %v6723_v39  ;;  %v3200_v9 = vmul.f32 3.8918573e-05, %v6776_v55 }
 0x496   : > { %v3628_v29 = vadd.f32 1.0, %v4090_v53  ;;  %v3128_v7 = vmul.f32 %v3127_v1, %v6723_v39  ;;  %vm3100_vm3 = vcmp.eq.f32.partialorder %v3099_v43, 8.507059e+37  ;;  %v3165_v63 = vadd.f32 0.112945676, %v3164_v19 }
 0x497   : > { %v3094_v36 = vadd.f32 %v4394_v41, %v3093_v37  ;;  %v3190_v17 = vadd.f32 0.00028619796, %v3189_v45  ;;  %v3153_v26 = vmul.f32 %v3152_v60, %v6746_v44  ;;  %v3116_v56 = vadd.f32 0.18741608, %v3115_v28 }
 0x498   : > { %v3644_v51 = vmul.f32 %v3628_v29, %v2956_v58  ;;  %v3129_v10 = vadd.f32 1.0, %v3128_v7  ;;  %v3166_v52 = vmul.f32 %v3165_v63, %v6746_v44  ;;  %v3201_v12 = vadd.f32 0.001143296, %v3200_v9 }
 0x499   : > { %v3098_v0 = vsel %vm3097_vm2, %v4394_v41, %v3094_v36  ;;  %v3191_v11 = vmul.f32 %v3190_v17, %v6776_v55  ;;  %v3154_v58 = vadd.f32 0.05243302, %v3153_v26  ;;  %v2957_v16 = vmul.f32 0.5, %v6599_v31 }
 0x49a   : > { %3716 = vmatmul.f32.gmra.mxu0 %v3644_v51  ;;  %3781 = vmatmul.f32.gmra.mxu1 %v3644_v51  ;;  %v3103_v57 = vsel %vm3100_vm3, %v3102_v4, %v3098_v0  ;;  %4395 = vrcp.f32 %v3129_v10  ;;  %v3167_v47 = vadd.f32 0.4994258, %v3166_v52  ;;  %v3202_v41 = vmul.f32 %v3201_v12, %v6776_v55 }
 0x49b   : > { %v3104_v14 = vmul.f32 %v3103_v57, %v3079_v38  ;;  %v3117_v46 = vmul.f32 %v3116_v56, %v6723_v39  ;;  %v3192_v34 = vadd.f32 0.0036580483, %v3191_v11  ;;  %v3155_v18 = vmul.f32 %v3154_v58, %v6746_v44 }
 0x49c   : > { %v3168_v35 = vmul.f32 %v3167_v47, %v6746_v44  ;;  %v3203_v6 = vadd.f32 0.014752088, %v3202_v41  ;;  %v3139_v31 = vand.u32 2147483647, %v3129_v10  ;;  %v3141_v37 = vand.u32 2147483648, %v3129_v10 }
 0x49d   : > { %v4091_v40 = vclamps-f32 %v3104_v14, 1.0  ;;  %v3118_v1 = vadd.f32 1.1283791, %v3117_v46  ;;  %v3193_v39 = vmul.f32 %v3192_v34, %v6776_v55  ;;  %v3156_v7 = vadd.f32 0.18741608, %v3155_v18 }
 0x49e   : > { %v3169_v53 = vadd.f32 1.0, %v3168_v35  ;;  %v3204_v38 = vmul.f32 %v3203_v6, %v6776_v55  ;;  %vm3135_vm0 = vweird.f32 %v3129_v10  ;;  %v3142_v19 = vor.u32 1.1754944e-38, %v3141_v37 }
 0x49f   : > { %v3629_v24 = vadd.f32 1.0, %v4091_v40  ;;  %v3119_v4 = vmul.f32 %v3118_v1, %v6705_v49  ;;  %vm3140_vm6 = vcmp.eq.f32.partialorder %v3139_v31, 8.507059e+37  ;;  %v3194_v51 = vadd.f32 0.05243302, %v3193_v39 }
 0x4a0   : > { %v4396_v25 = vpop.eup %4395  ;;  %4397 = vrcp.f32 %v3169_v53  ;;  %v3205_v29 = vadd.f32 0.112945676, %v3204_v38  ;;  %v3157_v17 = vmul.f32 %v3156_v7, %v6746_v44  ;;  %v2958_v49 = vmul.f32 0.5, %v6669_v62 }
 0x4a1   : > { %v3645_v5 = vmul.f32 %v3629_v24, %v2957_v16  ;;  %v3131_v43 = vmul.f32 %v4396_v25, %v3129_v10  ;;  %vm3136_vm4 = vweird.f32 %v4396_v25  ;;  %v3195_v40 = vmul.f32 %v3194_v51, %v6776_v55 }
 0x4a2   : > { %v3206_v36 = vmul.f32 %v3205_v29, %v6776_v55  ;;  %vm3137_vm5 = vmor %vm3135_vm0, %vm3136_vm4  ;;  %v3158_v47 = vadd.f32 1.1283791, %v3157_v17  ;;  %v3181_v11 = vand.u32 2147483648, %v3169_v53  ;;  %v3179_v44 = vand.u32 2147483647, %v3169_v53 }
 0x4a3   : > { %3719 = vmatmul.f32.gmra.mxu0 %v3645_v5  ;;  %3784 = vmatmul.f32.gmra.mxu1 %v3645_v5  ;;  %v3132_v21 = vsub.f32 1.0, %v3131_v43  ;;  %vm3175_vm8 = vweird.f32 %v3169_v53 }
 0x4a4   : > { %v3207_v28 = vadd.f32 0.4994258, %v3206_v36  ;;  %v3182_v62 = vor.u32 1.1754944e-38, %v3181_v11  ;;  %v3159_v5 = vmul.f32 %v3158_v47, %v6735_v3  ;;  %vm3180_vm10 = vcmp.eq.f32.partialorder %v3179_v44, 8.507059e+37 }
 0x4a5   : > { %v3133_v23 = vmul.f32 %v4396_v25, %v3132_v21  ;;  %v2959_v3 = vmul.f32 0.5, %v6726_v8 }
 0x4a6   : > { %v4398_v0 = vpop.eup %4397  ;;  %v3208_v10 = vmul.f32 %v3207_v28, %v6776_v55 }
 0x4a7   : > { %v3134_v60 = vadd.f32 %v4396_v25, %v3133_v23  ;;  %v3171_v14 = vmul.f32 %v4398_v0, %v3169_v53  ;;  %vm3176_vm7 = vweird.f32 %v4398_v0 }
 0x4a8   : > { %v3209_v58 = vadd.f32 1.0, %v3208_v10  ;;  %vm3177_vm9 = vmor %vm3175_vm8, %vm3176_vm7 }
 0x4a9   : > { %v3138_v45 = vsel %vm3137_vm5, %v4396_v25, %v3134_v60  ;;  %v3172_v12 = vsub.f32 1.0, %v3171_v14  ;;  %v3196_v25 = vadd.f32 0.18741608, %v3195_v40 }
 0x4aa   : > { %v3143_v63 = vsel %vm3140_vm6, %v3142_v19, %v3138_v45  ;;  %v3221_v19 = vand.u32 2147483648, %v3209_v58  ;;  %vm3215_vm14 = vweird.f32 %v3209_v58 }
 0x4ab   : > { %v3144_v26 = vmul.f32 %v3143_v63, %v3119_v4  ;;  %v3173_v16 = vmul.f32 %v4398_v0, %v3172_v12  ;;  %v3197_v53 = vmul.f32 %v3196_v25, %v6776_v55 }
 0x4ad   : > { %v4092_v56 = vclamps-f32 %v3144_v26, 1.0  ;;  %v3174_v35 = vadd.f32 %v4398_v0, %v3173_v16  ;;  %v3198_v60 = vadd.f32 1.1283791, %v3197_v53 }
 0x4af   : > { %v3630_v41 = vadd.f32 1.0, %v4092_v56  ;;  %v3178_v43 = vsel %vm3177_vm9, %v4398_v0, %v3174_v35  ;;  %v3199_v17 = vmul.f32 %v3198_v60, %v6761_v30 }
 0x4b0   : > { %v2690_v9 = vpop.xlane.xlu2 %2689  ;;  %v3183_v18 = vsel %vm3180_vm10, %v3182_v62, %v3178_v43 }
 0x4b1   : > { %v2715_v57 = vmul.f32 %v2690_v9, %v5515_v54  ;;  %v3646_v24 = vmul.f32 %v3630_v41, %v2958_v49  ;;  %v3184_v21 = vmul.f32 %v3183_v18, %v3159_v5  ;;  %v2960_v41 = vmul.f32 0.5, %v6749_v33 }
 0x4b3   : > { %v2731_v52 = vadd.f32 1e-05, %v2715_v57  ;;  %3722 = vmatmul.f32.gmra.mxu0 %v3646_v24  ;;  %3787 = vmatmul.f32.gmra.mxu1 %v3646_v24  ;;  %v4093_v23 = vclamps-f32 %v3184_v21, 1.0  ;;  %v3222_v57 = vor.u32 1.1754944e-38, %v3221_v19  ;;  %v6848_v19 = vld [vmem:[%s7308_s11] ss:$0 sm:$0xff] }
 0x4b5   : > { %4399 = vrsqrt.f32 %v2731_v52  ;;  %v3631_v7 = vadd.f32 1.0, %v4093_v23  ;;  %vm2807_vm13 = vweird.f32 %v2731_v52 }
 0x4b6   : > { %4401 = vrcp.f32 %v3209_v58 }
 0x4b7   : > { %v3647_v45 = vmul.f32 %v3631_v7, %v2959_v3 }
 0x4b8   : > { %v2624_v46 = vpop.xlane.xlu2 %2623 }
 0x4b9   : > { %v2642_v6 = vmul.f32 %v2624_v46, %v5515_v54 }
 0x4bb   : > { %v4400_v34 = vpop.eup %4399  ;;  %v6804_v38 = vsub.f32 %v6481_v22, %v2642_v6  ;;  %v3219_v22 = vand.u32 2147483647, %v3209_v58  ;;  %3725 = vmatmul.f32.gmra.mxu0 %v3647_v45  ;;  %3790 = vmatmul.f32.gmra.mxu1 %v3647_v45 }
 0x4bc   : > { %v2802_v1 = vmul.f32 %v4400_v34, %v2731_v52  ;;  %v4402_v31 = vpop.eup %4401  ;;  %vm2808_vm12 = vweird.f32 %v4400_v34 }
 0x4bd   : > { %v2674_v37 = vmul.f32 %v6804_v38, %v6804_v38  ;;  %v3211_v39 = vmul.f32 %v4402_v31, %v3209_v58  ;;  %vm3216_vm11 = vweird.f32 %v4402_v31  ;;  %vm2809_vm15 = vmor %vm2807_vm13, %vm2808_vm12  ;;  %vm3220_vm2 = vcmp.eq.f32.partialorder %v3219_v22, 8.507059e+37 }
 0x4be   : > { %v2803_v29 = vmul.f32 %v4400_v34, %v2802_v1  ;;  %vm3217_vm1 = vmor %vm3215_vm14, %vm3216_vm11 }
 0x4bf   : > { %2703 = vadd.xlane.f32.xlu1 %v2674_v37  ;;  %v3212_v36 = vsub.f32 1.0, %v3211_v39  ;;  %v2692_v55 = vpop.xlane.xlu1 %2691 }
 0x4c0   : > { %v2804_v4 = vmul.f32 0.5, %v2803_v29  ;;  %v2716_v9 = vmul.f32 %v2692_v55, %v5515_v54 }
 0x4c1   : > { %v3213_v51 = vmul.f32 %v4402_v31, %v3212_v36 }
 0x4c2   : > { %v2805_v28 = vsub.f32 1.5, %v2804_v4  ;;  %v2732_v63 = vadd.f32 1e-05, %v2716_v9  ;;  %v6854_v9 = vld [vmem:[%s7410_s25] ss:$0 sm:$0xff] }
 0x4c3   : > { %v3214_v0 = vadd.f32 %v4402_v31, %v3213_v51 }
 0x4c4   : > { %v2806_v8 = vmul.f32 %v4400_v34, %v2805_v28  ;;  %4403 = vrsqrt.f32 %v2732_v63  ;;  %vm2817_vm4 = vweird.f32 %v2732_v63 }
 0x4c5   : > { %v3218_v26 = vsel %vm3217_vm1, %v4402_v31, %v3214_v0 }
 0x4c6   : > { %v2810_v14 = vsel %vm2809_vm15, %v4400_v34, %v2806_v8  ;;  %v3223_v10 = vsel %vm3220_vm2, %v3222_v57, %v3218_v26 }
 0x4c7   : > { %v3224_v49 = vmul.f32 %v3223_v10, %v3199_v17  ;;  %v2626_v56 = vpop.xlane.xlu1 %2625  ;;  %v2907_v52 = vmul.f32 %v2810_v14, %v6475_v13  ;;  %v2694_v40 = vpop.xlane.xlu0 %2693 }
 0x4c8   : > { %v2643_v47 = vmul.f32 %v2626_v56, %v5515_v54  ;;  %v2717_v11 = vmul.f32 %v2694_v40, %v5515_v54 }
 0x4c9   : > { %v4094_v12 = vclamps-f32 %v3224_v49, 1.0  ;;  %v2926_v30 = vmul.f32 %v6500_v61, %v2907_v52 }
 0x4ca   : > { %v4404_v58 = vpop.eup %4403  ;;  %v6819_v44 = vsub.f32 %v6492_v32, %v2643_v47  ;;  %v2733_v35 = vadd.f32 1e-05, %v2717_v11 }
 0x4cb   : > { %v3632_v16 = vadd.f32 1.0, %v4094_v12  ;;  %v2812_v24 = vmul.f32 %v4404_v58, %v2732_v63  ;;  %v6822_v25 = vadd.f32 %v6509_v20, %v2926_v30  ;;  %vm2818_vm3 = vweird.f32 %v4404_v58 }
 0x4cc   : > { %v2675_v46 = vmul.f32 %v6819_v44, %v6819_v44  ;;  %4405 = vrsqrt.f32 %v2733_v35  ;;  %vm2819_vm0 = vmor %vm2817_vm4, %vm2818_vm3  ;;  %vm2827_vm6 = vweird.f32 %v2733_v35 }
 0x4cd   : > { %v3648_v13 = vmul.f32 %v3632_v16, %v2960_v41  ;;  %v2813_v62 = vmul.f32 %v4404_v58, %v2812_v24  ;;  %v6827_v61 = vmul.f32 0.70710677, %v6822_v25 }
 0x4ce   : > { %2705 = vadd.xlane.f32.xlu2 %v2675_v46 }
 0x4cf   : > { %3728 = vmatmul.f32.gmra.mxu0 %v3648_v13  ;;  %3793 = vmatmul.f32.gmra.mxu1 %v3648_v13  ;;  %v2814_v33 = vmul.f32 0.5, %v2813_v62  ;;  %v2628_v32 = vpop.xlane.xlu0 %2627  ;;  %v3227_v6 = vmul.f32 %v6827_v61, %v6827_v61 }
 0x4d0   : > { %v2644_v20 = vmul.f32 %v2628_v32, %v5515_v54 }
 0x4d1   : > { %v2815_v5 = vsub.f32 1.5, %v2814_v33  ;;  %v6832_v43 = vmin.f32 %v3227_v6, 16.0 }
 0x4d2   : > { %v4406_v34 = vpop.eup %4405  ;;  %v6835_v21 = vsub.f32 %v6520_v59, %v2644_v20  ;;  %v2696_v29 = vpop.xlane.xlu2 %2695 }
 0x4d3   : > { %v2816_v18 = vmul.f32 %v4404_v58, %v2815_v5  ;;  %v2822_v53 = vmul.f32 %v4406_v34, %v2733_v35  ;;  %v3229_v1 = vmul.f32 2.1237322e-06, %v6832_v43  ;;  %v3240_v31 = vmul.f32 3.8918573e-05, %v6832_v43 }
 0x4d4   : > { %v2676_v23 = vmul.f32 %v6835_v21, %v6835_v21  ;;  %v2718_v36 = vmul.f32 %v2696_v29, %v5515_v54  ;;  %vm2828_vm5 = vweird.f32 %v4406_v34 }
 0x4d5   : > { %v2820_v37 = vsel %vm2819_vm0, %v4404_v58, %v2816_v18  ;;  %v2823_v39 = vmul.f32 %v4406_v34, %v2822_v53  ;;  %v3230_v3 = vadd.f32 0.00028619796, %v3229_v1  ;;  %v3241_v7 = vadd.f32 0.001143296, %v3240_v31  ;;  %vm2829_vm7 = vmor %vm2827_vm6, %vm2828_vm5 }
 0x4d6   : > { %v2908_v60 = vmul.f32 %v2820_v37, %v6486_v48  ;;  %2707 = vadd.xlane.f32.xlu0 %v2676_v23  ;;  %v2734_v45 = vadd.f32 1e-05, %v2718_v36 }
 0x4d7   : > { %v2824_v59 = vmul.f32 0.5, %v2823_v39  ;;  %v3231_v4 = vmul.f32 %v3230_v3, %v6832_v43  ;;  %v3242_v22 = vmul.f32 %v3241_v7, %v6832_v43 }
 0x4d8   : > { %v2927_v55 = vmul.f32 %v6848_v19, %v2908_v60  ;;  %4407 = vrsqrt.f32 %v2734_v45  ;;  %vm2837_vm9 = vweird.f32 %v2734_v45 }
 0x4d9   : > { %v2825_v51 = vsub.f32 1.5, %v2824_v59  ;;  %v3232_v28 = vadd.f32 0.0036580483, %v3231_v4  ;;  %v3243_v48 = vadd.f32 0.014752088, %v3242_v22 }
 0x4da   : > { %v6857_v0 = vadd.f32 %v6854_v9, %v2927_v55 }
 0x4db   : > { %v2826_v8 = vmul.f32 %v4406_v34, %v2825_v51  ;;  %v3233_v63 = vmul.f32 %v3232_v28, %v6832_v43  ;;  %v3244_v17 = vmul.f32 %v3243_v48, %v6832_v43  ;;  %v2698_v14 = vpop.xlane.xlu1 %2697 }
 0x4dc   : > { %v6862_v57 = vmul.f32 0.70710677, %v6857_v0  ;;  %v2719_v49 = vmul.f32 %v2698_v14, %v5515_v54 }
 0x4dd   : > { %v2830_v26 = vsel %vm2829_vm7, %v4406_v34, %v2826_v8  ;;  %v3245_v10 = vadd.f32 0.112945676, %v3244_v17  ;;  %v3234_v56 = vadd.f32 0.05243302, %v3233_v63 }
 0x4de   : > { %v3267_v52 = vmul.f32 %v6862_v57, %v6862_v57  ;;  %v2909_v12 = vmul.f32 %v2830_v26, %v6495_v50  ;;  %v4408_v47 = vpop.eup %4407  ;;  %v2735_v11 = vadd.f32 1e-05, %v2719_v49 }
 0x4df   : > { %v3246_v40 = vmul.f32 %v3245_v10, %v6832_v43  ;;  %v2832_v41 = vmul.f32 %v4408_v47, %v2734_v45  ;;  %v3235_v24 = vmul.f32 %v3234_v56, %v6832_v43  ;;  %vm2838_vm8 = vweird.f32 %v4408_v47 }
 0x4e0   : > { %v6869_v30 = vmin.f32 %v3267_v52, 16.0  ;;  %v2928_v58 = vmul.f32 %v6848_v19, %v2909_v12  ;;  %4409 = vrsqrt.f32 %v2735_v11  ;;  %vm2839_vm10 = vmor %vm2837_vm9, %vm2838_vm8  ;;  %vm2847_vm11 = vweird.f32 %v2735_v11 }
 0x4e1   : > { %v3247_v16 = vadd.f32 0.4994258, %v3246_v40  ;;  %v2833_v46 = vmul.f32 %v4408_v47, %v2832_v41  ;;  %v3236_v20 = vadd.f32 0.18741608, %v3235_v24 }
 0x4e2   : > { %v3269_v35 = vmul.f32 2.1237322e-06, %v6869_v30  ;;  %v3280_v13 = vmul.f32 3.8918573e-05, %v6869_v30  ;;  %v6877_v62 = vadd.f32 %v6854_v9, %v2928_v58 }
 0x4e3   : > { %v3248_v50 = vmul.f32 %v3247_v16, %v6832_v43  ;;  %v2834_v6 = vmul.f32 0.5, %v2833_v46  ;;  %v3237_v60 = vmul.f32 %v3236_v20, %v6832_v43 }
 0x4e4   : > { %v3270_v33 = vadd.f32 0.00028619796, %v3269_v35  ;;  %v3281_v32 = vadd.f32 0.001143296, %v3280_v13  ;;  %v6884_v53 = vmul.f32 0.70710677, %v6877_v62 }
 0x4e5   : > { %v6879_v5 = vadd.f32 1.0, %v3248_v50  ;;  %v2835_v1 = vsub.f32 1.5, %v2834_v6  ;;  %v3238_v26 = vadd.f32 1.1283791, %v3237_v60 }
 0x4e6   : > { %v3271_v34 = vmul.f32 %v3270_v33, %v6869_v30  ;;  %v3282_v18 = vmul.f32 %v3281_v32, %v6869_v30  ;;  %v4410_v31 = vpop.eup %4409  ;;  %v3307_v23 = vmul.f32 %v6884_v53, %v6884_v53  ;;  %v2700_v7 = vpop.xlane.xlu2 %2699 }
 0x4e7   : > { %4411 = vrcp.f32 %v6879_v5  ;;  %v2836_v39 = vmul.f32 %v4408_v47, %v2835_v1  ;;  %v2842_v29 = vmul.f32 %v4410_v31, %v2735_v11  ;;  %v2720_v55 = vmul.f32 %v2700_v7, %v5515_v54 }
 0x4e8   : > { %v3272_v37 = vadd.f32 0.0036580483, %v3271_v34  ;;  %v3283_v3 = vadd.f32 0.014752088, %v3282_v18  ;;  %v6891_v59 = vmin.f32 %v3307_v23, 16.0  ;;  %vm2848_vm12 = vweird.f32 %v4410_v31 }
 0x4e9   : > { %v2840_v4 = vsel %vm2839_vm10, %v4408_v47, %v2836_v39  ;;  %v2843_v22 = vmul.f32 %v4410_v31, %v2842_v29  ;;  %v6897_v17 = vadd.f32 1e-05, %v2720_v55  ;;  %v3259_v10 = vand.u32 2147483647, %v6879_v5  ;;  %vm6907_vm14 = vmor %vm2847_vm11, %vm2848_vm12 }
 0x4ea   : > { %v3273_v36 = vmul.f32 %v3272_v37, %v6869_v30  ;;  %v3284_v28 = vmul.f32 %v3283_v3, %v6869_v30  ;;  %v3309_v48 = vmul.f32 2.1237322e-06, %v6891_v59  ;;  %v2910_v45 = vmul.f32 %v2840_v4, %v6539_v2 }
 0x4eb   : > { %v2844_v63 = vmul.f32 0.5, %v2843_v22  ;;  %v3320_v43 = vmul.f32 3.8918573e-05, %v6891_v59  ;;  %4413 = vrsqrt.f32 %v6897_v17  ;;  %v3261_v56 = vand.u32 2147483648, %v6879_v5 }
 0x4ec   : > { %v3274_v51 = vadd.f32 0.05243302, %v3273_v36  ;;  %v3285_v2 = vadd.f32 0.112945676, %v3284_v28  ;;  %v3310_v12 = vadd.f32 0.00028619796, %v3309_v48  ;;  %v2929_v40 = vmul.f32 %v6848_v19, %v2910_v45 }
 0x4ed   : > { %v4412_v8 = vpop.eup %4411  ;;  %v2845_v49 = vsub.f32 1.5, %v2844_v63  ;;  %v3321_v41 = vadd.f32 0.001143296, %v3320_v43  ;;  %v3239_v33 = vmul.f32 %v3238_v26, %v6827_v61  ;;  %vm3255_vm15 = vweird.f32 %v6879_v5 }
 0x4ee   : > { %v3251_v14 = vmul.f32 %v4412_v8, %v6879_v5  ;;  %vm3256_vm13 = vweird.f32 %v4412_v8  ;;  %v3275_v58 = vmul.f32 %v3274_v51, %v6869_v30  ;;  %v3286_v35 = vmul.f32 %v3285_v2, %v6869_v30 }
 0x4ef   : > { %v2846_v47 = vmul.f32 %v4410_v31, %v2845_v49  ;;  %v3311_v13 = vmul.f32 %v3310_v12, %v6891_v59  ;;  %v6914_v46 = vadd.f32 %v6854_v9, %v2929_v40  ;;  %v3322_v11 = vmul.f32 %v3321_v41, %v6891_v59  ;;  %vm3257_vm1 = vmor %vm3255_vm15, %vm3256_vm13 }
 0x4f0   : > { %v3252_v52 = vsub.f32 1.0, %v3251_v14  ;;  %v3262_v6 = vor.u32 1.1754944e-38, %v3261_v56  ;;  %v3287_v20 = vadd.f32 0.4994258, %v3286_v35  ;;  %v3276_v1 = vadd.f32 0.18741608, %v3275_v58 }
 0x4f1   : > { %v2850_v50 = vsel %vm6907_vm14, %v4410_v31, %v2846_v47  ;;  %v3312_v34 = vadd.f32 0.0036580483, %v3311_v13  ;;  %v4414_v18 = vpop.eup %4413  ;;  %v3323_v37 = vadd.f32 0.014752088, %v3322_v11  ;;  %v6923_v23 = vmul.f32 0.70710677, %v6914_v46 }
 0x4f2   : > { %v3253_v24 = vmul.f32 %v4412_v8, %v3252_v52  ;;  %v2911_v31 = vmul.f32 %v2850_v50, %v6564_v27  ;;  %v2852_v61 = vmul.f32 %v4414_v18, %v6897_v17  ;;  %vm3260_vm2 = vcmp.eq.f32.partialorder %v3259_v10, 8.507059e+37  ;;  %v3691_v10 = vld [vmem:[%s7423_s14] sm:$0x3] }
 0x4f3   : > { %v3288_v5 = vmul.f32 %v3287_v20, %v6869_v30  ;;  %v2702_v29 = vpop.xlane.xlu0 %2701  ;;  %v3313_v7 = vmul.f32 %v3312_v34, %v6891_v59  ;;  %v3324_v60 = vmul.f32 %v3323_v37, %v6891_v59  ;;  %v3277_v27 = vmul.f32 %v3276_v1, %v6869_v30 }
 0x4f4   : > { %v3254_v32 = vadd.f32 %v4412_v8, %v3253_v24  ;;  %v2853_v36 = vmul.f32 %v4414_v18, %v2852_v61  ;;  %v2721_v4 = vmul.f32 %v2702_v29, %v5515_v54  ;;  %v3347_v28 = vmul.f32 %v6923_v23, %v6923_v23 }
 0x4f5   : > { %v6931_v55 = vadd.f32 1.0, %v3288_v5  ;;  %v3325_v51 = vadd.f32 0.112945676, %v3324_v60  ;;  %v2930_v48 = vmul.f32 %v6848_v19, %v2911_v31  ;;  %v2961_v43 = vmul.f32 0.5, %v6822_v25 }
 0x4f6   : > { %v3258_v39 = vsel %vm3257_vm1, %v4412_v8, %v3254_v32  ;;  %v2854_v45 = vmul.f32 0.5, %v2853_v36  ;;  %v6937_v8 = vadd.f32 1e-05, %v2721_v4  ;;  %v3314_v26 = vadd.f32 0.05243302, %v3313_v7 }
 0x4f7   : > { %v3263_v3 = vsel %vm3260_vm2, %v3262_v6, %v3258_v39  ;;  %4415 = vrcp.f32 %v6931_v55  ;;  %vm2858_vm3 = vweird.f32 %v4414_v18  ;;  %vm2857_vm4 = vweird.f32 %v6897_v17 }
 0x4f8   : > { %v3264_v22 = vmul.f32 %v3263_v3, %v3239_v33  ;;  %v2855_v14 = vsub.f32 1.5, %v2854_v45  ;;  %4417 = vrsqrt.f32 %v6937_v8  ;;  %v3278_v49 = vadd.f32 1.1283791, %v3277_v27  ;;  %vm6952_vm0 = vmor %vm2857_vm4, %vm2858_vm3 }
 0x4f9   : > { %v3326_v56 = vmul.f32 %v3325_v51, %v6891_v59  ;;  %v6947_v12 = vmin.f32 %v3347_v28, 16.0  ;;  %v6950_v25 = vadd.f32 %v6854_v9, %v2930_v48  ;;  %v6956_v47 = vperm.slane %v3691_v10, 0 }
 0x4fa   : > { %v4095_v63 = vclamps-f32 %v3264_v22, 1.0  ;;  %v2856_v52 = vmul.f32 %v4414_v18, %v2855_v14  ;;  %v3315_v58 = vmul.f32 %v3314_v26, %v6891_v59  ;;  %v6961_v24 = vperm.slane %v3691_v10, 1 }
 0x4fb   : > { %v3327_v41 = vadd.f32 0.4994258, %v3326_v56  ;;  %v3349_v35 = vmul.f32 2.1237322e-06, %v6947_v12  ;;  %v3360_v13 = vmul.f32 3.8918573e-05, %v6947_v12  ;;  %v3279_v50 = vmul.f32 %v3278_v49, %v6862_v57 }
 0x4fc   : > { %v3633_v30 = vadd.f32 1.0, %v4095_v63  ;;  %v2860_v16 = vsel %vm6952_vm0, %v4414_v18, %v2856_v52  ;;  %v3299_v11 = vand.u32 2147483647, %v6931_v55  ;;  %v6972_v18 = vmul.f32 0.70710677, %v6950_v25 }
 0x4fd   : > { %v4416_v17 = vpop.eup %4415  ;;  %v3328_v32 = vmul.f32 %v3327_v41, %v6891_v59  ;;  %v3350_v20 = vadd.f32 0.00028619796, %v3349_v35  ;;  %v3361_v34 = vadd.f32 0.001143296, %v3360_v13  ;;  %v2912_v1 = vmul.f32 %v2860_v16, %v6627_v15 }
 0x4fe   : > { %v3649_v2 = vmul.f32 %v3633_v30, %v2961_v43  ;;  %v3291_v33 = vmul.f32 %v4416_v17, %v6931_v55  ;;  %v6969_v6 = vpop.eup %4417  ;;  %v3301_v57 = vand.u32 2147483648, %v6931_v55  ;;  %v3316_v61 = vadd.f32 0.18741608, %v3315_v58 }
 0x4ff   : > { %v2862_v37 = vmul.f32 %v6969_v6, %v6937_v8  ;;  %v6978_v39 = vadd.f32 1.0, %v3328_v32  ;;  %v3351_v5 = vmul.f32 %v3350_v20, %v6947_v12  ;;  %v3362_v29 = vmul.f32 %v3361_v34, %v6947_v12 }
 0x500   : > { %3731 = vmatmul.f32.gmra.mxu0 %v3649_v2  ;;  %3796 = vmatmul.f32.gmra.mxu1 %v3649_v2  ;;  %v3292_v31 = vsub.f32 1.0, %v3291_v33  ;;  %v3387_v3 = vmul.f32 %v6972_v18, %v6972_v18  ;;  %vm3296_vm5 = vweird.f32 %v4416_v17  ;;  %v2931_v15 = vmul.f32 %v6848_v19, %v2912_v1 }
 0x501   : > { %v2863_v7 = vmul.f32 %v6969_v6, %v2862_v37  ;;  %vm2867_vm6 = vweird.f32 %v6937_v8  ;;  %vm3295_vm7 = vweird.f32 %v6931_v55  ;;  %vm6988_vm8 = vcmp.eq.f32.partialorder %v3299_v11, 8.507059e+37 }
 0x502   : > { %v3293_v60 = vmul.f32 %v4416_v17, %v3292_v31  ;;  %4419 = vrcp.f32 %v6978_v39  ;;  %v3352_v27 = vadd.f32 0.0036580483, %v3351_v5  ;;  %v3363_v51 = vadd.f32 0.014752088, %v3362_v29  ;;  %vm3297_vm10 = vmor %vm3295_vm7, %vm3296_vm5 }
 0x503   : > { %v2864_v4 = vmul.f32 0.5, %v2863_v7  ;;  %vm2868_vm9 = vweird.f32 %v6969_v6  ;;  %v3302_v28 = vor.u32 1.1754944e-38, %v3301_v57  ;;  %v3317_v48 = vmul.f32 %v3316_v61, %v6891_v59 }
 0x504   : > { %v3294_v22 = vadd.f32 %v4416_v17, %v3293_v60  ;;  %v6995_v45 = vmin.f32 %v3387_v3, 16.0  ;;  %v3364_v43 = vmul.f32 %v3363_v51, %v6947_v12  ;;  %v6999_v26 = vadd.f32 %v6854_v9, %v2931_v15  ;;  %vm7013_vm11 = vmor %vm2867_vm6, %vm2868_vm9 }
 0x505   : > { %v2865_v63 = vsub.f32 1.5, %v2864_v4  ;;  %v3353_v49 = vmul.f32 %v3352_v27, %v6947_v12  ;;  %v2962_v16 = vmul.f32 0.5, %v6857_v0  ;;  %v3318_v8 = vadd.f32 1.1283791, %v3317_v48 }
 0x506   : > { %v3298_v55 = vsel %vm3297_vm10, %v4416_v17, %v3294_v22  ;;  %v3389_v56 = vmul.f32 2.1237322e-06, %v6995_v45  ;;  %v3400_v59 = vmul.f32 3.8918573e-05, %v6995_v45  ;;  %v3365_v35 = vadd.f32 0.112945676, %v3364_v43 }
 0x507   : > { %v3303_v10 = vsel %vm6988_vm8, %v3302_v28, %v3298_v55  ;;  %v2866_v52 = vmul.f32 %v6969_v6, %v2865_v63  ;;  %v3354_v32 = vadd.f32 0.05243302, %v3353_v49  ;;  %v3339_v57 = vand.u32 2147483647, %v6978_v39 }
 0x508   : > { %v3304_v58 = vmul.f32 %v3303_v10, %v3279_v50  ;;  %v4420_v41 = vpop.eup %4419  ;;  %v3390_v13 = vadd.f32 0.00028619796, %v3389_v56  ;;  %v3366_v0 = vmul.f32 %v3365_v35, %v6947_v12  ;;  %v3401_v34 = vadd.f32 0.001143296, %v3400_v59 }
 0x509   : > { %v2870_v33 = vsel %vm7013_vm11, %v6969_v6, %v2866_v52  ;;  %v3331_v11 = vmul.f32 %v4420_v41, %v6978_v39  ;;  %v7031_v6 = vmul.f32 0.70710677, %v6999_v26  ;;  %v3341_v61 = vand.u32 2147483648, %v6978_v39 }
 0x50a   : > { %v3714_v14 = vpop.f32.mrf.mxu0  ;;  %v3779_v30 = vpop.f32.mrf.mxu1  ;;  %v4096_v50 = vclamps-f32 %v3304_v58, 1.0  ;;  %v3391_v20 = vmul.f32 %v3390_v13, %v6995_v45  ;;  %v2913_v31 = vmul.f32 %v2870_v33, %v6691_v42  ;;  %v3367_v5 = vadd.f32 0.4994258, %v3366_v0 }
 0x50b   : > { %v3715_v2 = vadd.f32 %v3714_v14, %v6956_v47  ;;  %v3780_v40 = vadd.f32 %v3779_v30, %v6961_v24  ;;  %v3332_v37 = vsub.f32 1.0, %v3331_v11  ;;  %v3402_v29 = vmul.f32 %v3401_v34, %v6995_v45 }
 0x50c   : > { %v3634_v1 = vadd.f32 1.0, %v4096_v50  ;;  %vm3336_vm12 = vweird.f32 %v4420_v41  ;;  %v3427_v60 = vmul.f32 %v7031_v6, %v7031_v6  ;;  %vm3335_vm13 = vweird.f32 %v6978_v39 }
 0x50d   : > { %3827 = vst [vmem:[%s7023_s29] sm:$0xff] %v3715_v2  ;;  %v3333_v7 = vmul.f32 %v4420_v41, %v3332_v37  ;;  %v3368_v15 = vmul.f32 %v3367_v5, %v6947_v12  ;;  %v3403_v36 = vadd.f32 0.014752088, %v3402_v29  ;;  %v2932_v42 = vmul.f32 %v6848_v19, %v2913_v31  ;;  %vm3337_vm14 = vmor %vm3335_vm13, %vm3336_vm12 }
 0x50e   : > { %3828 = vst [vmem:[%s7023_s29 + $0x8] sm:$0xff] %v3780_v40  ;;  %v3650_v3 = vmul.f32 %v3634_v1, %v2962_v16  ;;  %v3355_v22 = vmul.f32 %v3354_v32, %v6947_v12  ;;  %v3392_v27 = vadd.f32 0.0036580483, %v3391_v20  ;;  %v7043_v51 = vmin.f32 %v3427_v60, 16.0 }
 0x50f   : > { %v3334_v4 = vadd.f32 %v4420_v41, %v3333_v7  ;;  %v3319_v28 = vmul.f32 %v3318_v8, %v6884_v53  ;;  %v3342_v48 = vor.u32 1.1754944e-38, %v3341_v61  ;;  %v7046_v63 = vadd.f32 1.0, %v3368_v15 }
 0x510   : > { %3734 = vmatmul.f32.gmra.mxu0 %v3650_v3  ;;  %3799 = vmatmul.f32.gmra.mxu1 %v3650_v3  ;;  %v3404_v39 = vmul.f32 %v3403_v36, %v6995_v45  ;;  %vm3340_vm15 = vcmp.eq.f32.partialorder %v3339_v57, 8.507059e+37  ;;  %v3429_v43 = vmul.f32 2.1237322e-06, %v7043_v51  ;;  %v3440_v14 = vmul.f32 3.8918573e-05, %v7043_v51 }
 0x511   : > { %v3338_v55 = vsel %vm3337_vm14, %v4420_v41, %v3334_v4  ;;  %4421 = vrcp.f32 %v7046_v63  ;;  %v7053_v10 = vadd.f32 %v6854_v9, %v2932_v42  ;;  %v3356_v53 = vadd.f32 0.18741608, %v3355_v22 }
 0x512   : > { %v3343_v30 = vsel %vm3340_vm15, %v3342_v48, %v3338_v55  ;;  %v3393_v56 = vmul.f32 %v3392_v27, %v6995_v45  ;;  %v3405_v59 = vadd.f32 0.112945676, %v3404_v39  ;;  %v3430_v52 = vadd.f32 0.00028619796, %v3429_v43 }
 0x513   : > { %v3344_v49 = vmul.f32 %v3343_v30, %v3319_v28  ;;  %v3441_v2 = vadd.f32 0.001143296, %v3440_v14  ;;  %v7059_v17 = vmul.f32 0.70710677, %v7053_v10  ;;  %v2963_v13 = vmul.f32 0.5, %v6877_v62 }
 0x514   : > { %v3406_v58 = vmul.f32 %v3405_v59, %v6995_v45  ;;  %v3357_v50 = vmul.f32 %v3356_v53, %v6947_v12  ;;  %v3394_v8 = vadd.f32 0.05243302, %v3393_v56  ;;  %v3431_v34 = vmul.f32 %v3430_v52, %v7043_v51 }
 0x515   : > { %v4097_v40 = vclamps-f32 %v3344_v49, 1.0  ;;  %v3442_v41 = vmul.f32 %v3441_v2, %v7043_v51  ;;  %v3467_v62 = vmul.f32 %v7059_v17, %v7059_v17  ;;  %v3381_v5 = vand.u32 2147483648, %v7046_v63 }
 0x516   : > { %v3407_v20 = vadd.f32 0.4994258, %v3406_v58  ;;  %v3358_v12 = vadd.f32 1.1283791, %v3357_v50  ;;  %v3395_v29 = vmul.f32 %v3394_v8, %v6995_v45  ;;  %v3432_v7 = vadd.f32 0.0036580483, %v3431_v34 }
 0x517   : > { %v3717_v16 = vpop.f32.mrf.mxu0  ;;  %v3782_v35 = vpop.f32.mrf.mxu1  ;;  %v3635_v33 = vadd.f32 1.0, %v4097_v40  ;;  %v3443_v57 = vadd.f32 0.014752088, %v3442_v41  ;;  %v7077_v15 = vmin.f32 %v3467_v62, 16.0  ;;  %v3379_v42 = vand.u32 2147483647, %v7046_v63 }
 0x518   : > { %v4422_v11 = vpop.eup %4421  ;;  %v3718_v32 = vadd.f32 %v3717_v16, %v6956_v47  ;;  %v3783_v0 = vadd.f32 %v3782_v35, %v6961_v24  ;;  %v3408_v31 = vmul.f32 %v3407_v20, %v6995_v45  ;;  %vm3375_vm2 = vweird.f32 %v7046_v63 }
 0x519   : > { %v3651_v1 = vmul.f32 %v3635_v33, %v2963_v13  ;;  %v3371_v37 = vmul.f32 %v4422_v11, %v7046_v63  ;;  %v3444_v60 = vmul.f32 %v3443_v57, %v7043_v51  ;;  %vm3376_vm1 = vweird.f32 %v4422_v11 }
 0x51a   : > { %3829 = vst [vmem:[%s7023_s29 + $0x10] sm:$0xff] %v3718_v32  ;;  %v7074_v3 = vadd.f32 1.0, %v3408_v31  ;;  %v3396_v22 = vadd.f32 0.18741608, %v3395_v29  ;;  %v3469_v28 = vmul.f32 2.1237322e-06, %v7077_v15  ;;  %v3359_v55 = vmul.f32 %v3358_v12, %v6923_v23  ;;  %vm3377_vm3 = vmor %vm3375_vm2, %vm3376_vm1 }
 0x51b   : > { %3830 = vst [vmem:[%s7023_s29 + $0x18] sm:$0xff] %v3783_v0  ;;  %3737 = vmatmul.f32.gmra.mxu0 %v3651_v1  ;;  %3802 = vmatmul.f32.gmra.mxu1 %v3651_v1  ;;  %v3372_v61 = vsub.f32 1.0, %v3371_v37  ;;  %v3445_v27 = vadd.f32 0.112945676, %v3444_v60  ;;  %v3382_v43 = vor.u32 1.1754944e-38, %v3381_v5  ;;  %v3433_v14 = vmul.f32 %v3432_v7, %v7043_v51 }
 0x51c   : > { %4423 = vrcp.f32 %v7074_v3  ;;  %v3480_v30 = vmul.f32 3.8918573e-05, %v7077_v15  ;;  %vm3380_vm4 = vcmp.eq.f32.partialorder %v3379_v42, 8.507059e+37  ;;  %v3470_v52 = vadd.f32 0.00028619796, %v3469_v28 }
 0x51d   : > { %v3373_v36 = vmul.f32 %v4422_v11, %v3372_v61  ;;  %v3446_v59 = vmul.f32 %v3445_v27, %v7043_v51  ;;  %v3397_v40 = vmul.f32 %v3396_v22, %v6995_v45  ;;  %v3434_v41 = vadd.f32 0.05243302, %v3433_v14 }
 0x51e   : > { %v3481_v2 = vadd.f32 0.001143296, %v3480_v30  ;;  %v3471_v35 = vmul.f32 %v3470_v52, %v7077_v15  ;;  %v2964_v0 = vmul.f32 0.5, %v6914_v46  ;;  %v3421_v1 = vand.u32 2147483648, %v7074_v3 }
 0x51f   : > { %v3374_v4 = vadd.f32 %v4422_v11, %v3373_v36  ;;  %v3447_v16 = vadd.f32 0.4994258, %v3446_v59  ;;  %v3398_v34 = vadd.f32 1.1283791, %v3397_v40  ;;  %v3435_v37 = vmul.f32 %v3434_v41, %v7043_v51 }
 0x520   : > { %v3720_v48 = vpop.f32.mrf.mxu0  ;;  %v3785_v39 = vpop.f32.mrf.mxu1  ;;  %v3482_v13 = vmul.f32 %v3481_v2, %v7077_v15  ;;  %v3419_v61 = vand.u32 2147483647, %v7074_v3  ;;  %vm3415_vm5 = vweird.f32 %v7074_v3  ;;  %v3422_v7 = vor.u32 1.1754944e-38, %v3421_v1 }
 0x521   : > { %v3721_v63 = vadd.f32 %v3720_v48, %v6956_v47  ;;  %v3786_v49 = vadd.f32 %v3785_v39, %v6961_v24  ;;  %v3378_v53 = vsel %vm3377_vm3, %v4422_v11, %v3374_v4  ;;  %v3448_v8 = vmul.f32 %v3447_v16, %v7043_v51 }
 0x522   : > { %v3383_v56 = vsel %vm3380_vm4, %v3382_v43, %v3378_v53  ;;  %v4424_v58 = vpop.eup %4423  ;;  %v3472_v11 = vadd.f32 0.0036580483, %v3471_v35  ;;  %v3483_v32 = vadd.f32 0.014752088, %v3482_v13  ;;  %v3436_v60 = vadd.f32 0.18741608, %v3435_v37 }
 0x523   : > { %3831 = vst [vmem:[%s7023_s29 + $0x20] sm:$0xff] %v3721_v63  ;;  %v3384_v23 = vmul.f32 %v3383_v56, %v3359_v55  ;;  %v3411_v50 = vmul.f32 %v4424_v58, %v7074_v3  ;;  %v3449_v31 = vadd.f32 1.0, %v3448_v8  ;;  %vm3416_vm0 = vweird.f32 %v4424_v58 }
 0x524   : > { %3832 = vst [vmem:[%s7023_s29 + $0x28] sm:$0xff] %v3786_v49  ;;  %v3484_v57 = vmul.f32 %v3483_v32, %v7077_v15  ;;  %v3473_v5 = vmul.f32 %v3472_v11, %v7077_v15  ;;  %vm3417_vm6 = vmor %vm3415_vm5, %vm3416_vm0  ;;  %v3399_v36 = vmul.f32 %v3398_v34, %v6972_v18  ;;  %vm3420_vm7 = vcmp.eq.f32.partialorder %v3419_v61, 8.507059e+37 }
 0x525   : > { %v4098_v33 = vclamps-f32 %v3384_v23, 1.0  ;;  %v3412_v45 = vsub.f32 1.0, %v3411_v50  ;;  %4425 = vrcp.f32 %v3449_v31  ;;  %v3437_v14 = vmul.f32 %v3436_v60, %v7043_v51 }
 0x526   : > { %v3485_v29 = vadd.f32 0.112945676, %v3484_v57  ;;  %v3474_v27 = vadd.f32 0.05243302, %v3473_v5  ;;  %v2965_v2 = vmul.f32 0.5, %v6950_v25  ;;  %vm3455_vm9 = vweird.f32 %v3449_v31 }
 0x527   : > { %v3636_v20 = vadd.f32 1.0, %v4098_v33  ;;  %v3413_v12 = vmul.f32 %v4424_v58, %v3412_v45  ;;  %v3438_v51 = vadd.f32 1.1283791, %v3437_v14  ;;  %v3459_v13 = vand.u32 2147483647, %v3449_v31 }
 0x528   : > { %v3486_v4 = vmul.f32 %v3485_v29, %v7077_v15  ;;  %v3475_v56 = vmul.f32 %v3474_v27, %v7077_v15 }
 0x529   : > { %v3652_v62 = vmul.f32 %v3636_v20, %v2964_v0  ;;  %v3414_v46 = vadd.f32 %v4424_v58, %v3413_v12  ;;  %v3439_v8 = vmul.f32 %v3438_v51, %v7031_v6  ;;  %vm3460_vm11 = vcmp.eq.f32.partialorder %v3459_v13, 8.507059e+37 }
 0x52a   : > { %v3487_v48 = vadd.f32 0.4994258, %v3486_v4  ;;  %v3476_v33 = vadd.f32 0.18741608, %v3475_v56 }
 0x52b   : > { %3740 = vmatmul.f32.gmra.mxu0 %v3652_v62  ;;  %3805 = vmatmul.f32.gmra.mxu1 %v3652_v62  ;;  %v3418_v42 = vsel %vm3417_vm6, %v4424_v58, %v3414_v46  ;;  %v4426_v55 = vpop.eup %4425  ;;  %v3461_v58 = vand.u32 2147483648, %v3449_v31  ;;  %v2966_v46 = vmul.f32 0.5, %v6999_v26 }
 0x52c   : > { %v3423_v22 = vsel %vm3420_vm7, %v3422_v7, %v3418_v42  ;;  %v3451_v53 = vmul.f32 %v4426_v55, %v3449_v31  ;;  %v3488_v59 = vmul.f32 %v3487_v48, %v7077_v15  ;;  %vm3456_vm8 = vweird.f32 %v4426_v55 }
 0x52d   : > { %v3424_v28 = vmul.f32 %v3423_v22, %v3399_v36  ;;  %vm3457_vm10 = vmor %vm3455_vm9, %vm3456_vm8  ;;  %v3462_v25 = vor.u32 1.1754944e-38, %v3461_v58  ;;  %v3477_v45 = vmul.f32 %v3476_v33, %v7077_v15  ;;  %v2967_v58 = vmul.f32 0.5, %v7053_v10 }
 0x52e   : > { %v3452_v40 = vsub.f32 1.0, %v3451_v53  ;;  %v3489_v41 = vadd.f32 1.0, %v3488_v59 }
 0x52f   : > { %v4099_v49 = vclamps-f32 %v3424_v28, 1.0  ;;  %v3478_v15 = vadd.f32 1.1283791, %v3477_v45 }
 0x530   : > { %v3723_v43 = vpop.f32.mrf.mxu0  ;;  %v3788_v3 = vpop.f32.mrf.mxu1  ;;  %v3453_v35 = vmul.f32 %v4426_v55, %v3452_v40  ;;  %v3499_v42 = vand.u32 2147483647, %v3489_v41  ;;  %v3501_v4 = vand.u32 2147483648, %v3489_v41  ;;  %vm3495_vm14 = vweird.f32 %v3489_v41 }
 0x531   : > { %v3724_v18 = vadd.f32 %v3723_v43, %v6956_v47  ;;  %v3789_v63 = vadd.f32 %v3788_v3, %v6961_v24  ;;  %v3637_v23 = vadd.f32 1.0, %v4099_v49  ;;  %v3479_v43 = vmul.f32 %v3478_v15, %v7059_v17 }
 0x532   : > { %v2704_v39 = vpop.xlane.xlu1 %2703  ;;  %v3454_v50 = vadd.f32 %v4426_v55, %v3453_v35  ;;  %vm3500_vm2 = vcmp.eq.f32.partialorder %v3499_v42, 8.507059e+37 }
 0x533   : > { %v2722_v30 = vmul.f32 %v2704_v39, %v5515_v54  ;;  %3833 = vst [vmem:[%s7023_s29 + $0x30] sm:$0xff] %v3724_v18  ;;  %v3653_v16 = vmul.f32 %v3637_v23, %v2965_v2 }
 0x534   : > { %3834 = vst [vmem:[%s7023_s29 + $0x38] sm:$0xff] %v3789_v63  ;;  %v3458_v11 = vsel %vm3457_vm10, %v4426_v55, %v3454_v50  ;;  %v3502_v55 = vor.u32 1.1754944e-38, %v3501_v4 }
 0x535   : > { %v7111_v52 = vadd.f32 1e-05, %v2722_v30  ;;  %3743 = vmatmul.f32.gmra.mxu0 %v3653_v16  ;;  %3808 = vmatmul.f32.gmra.mxu1 %v3653_v16  ;;  %v3463_v34 = vsel %vm3460_vm11, %v3462_v25, %v3458_v11 }
 0x536   : > { %v3464_v57 = vmul.f32 %v3463_v34, %v3439_v8 }
 0x537   : > { %4427 = vrsqrt.f32 %v7111_v52  ;;  %vm2877_vm1 = vweird.f32 %v7111_v52 }
 0x538   : > { %4429 = vrcp.f32 %v3489_v41  ;;  %v3726_v0 = vpop.f32.mrf.mxu0  ;;  %v3791_v20 = vpop.f32.mrf.mxu1  ;;  %v4100_v12 = vclamps-f32 %v3464_v57, 1.0 }
 0x539   : > { %v3727_v1 = vadd.f32 %v3726_v0, %v6956_v47  ;;  %v3792_v37 = vadd.f32 %v3791_v20, %v6961_v24 }
 0x53a   : > { %v3638_v7 = vadd.f32 1.0, %v4100_v12 }
 0x53b   : > { %3835 = vst [vmem:[%s7023_s29 + $0x40] sm:$0xff] %v3727_v1 }
 0x53c   : > { %3836 = vst [vmem:[%s7023_s29 + $0x48] sm:$0xff] %v3792_v37  ;;  %v3654_v27 = vmul.f32 %v3638_v7, %v2966_v46 }
 0x53d   : > { %v4428_v32 = vpop.eup %4427 }
 0x53e   : > { %v2872_v31 = vmul.f32 %v4428_v32, %v7111_v52  ;;  %v4430_v62 = vpop.eup %4429  ;;  %vm2878_vm13 = vweird.f32 %v4428_v32  ;;  %3746 = vmatmul.f32.gmra.mxu0 %v3654_v27  ;;  %3811 = vmatmul.f32.gmra.mxu1 %v3654_v27 }
 0x53f   : > { %v3491_v6 = vmul.f32 %v4430_v62, %v3489_v41  ;;  %vm3496_vm12 = vweird.f32 %v4430_v62  ;;  %vm2879_vm3 = vmor %vm2877_vm1, %vm2878_vm13 }
 0x540   : > { %v2873_v61 = vmul.f32 %v4428_v32, %v2872_v31  ;;  %vm3497_vm15 = vmor %vm3495_vm14, %vm3496_vm12 }
 0x541   : > { %v2706_v5 = vpop.xlane.xlu2 %2705  ;;  %v3492_v60 = vsub.f32 1.0, %v3491_v6 }
 0x542   : > { %v2723_v29 = vmul.f32 %v2706_v5, %v5515_v54  ;;  %v2874_v36 = vmul.f32 0.5, %v2873_v61 }
 0x543   : > { %v3493_v28 = vmul.f32 %v4430_v62, %v3492_v60 }
 0x544   : > { %v2739_v22 = vadd.f32 1e-05, %v2723_v29  ;;  %v2875_v48 = vsub.f32 1.5, %v2874_v36 }
 0x545   : > { %v3494_v39 = vadd.f32 %v4430_v62, %v3493_v28 }
 0x546   : > { %4431 = vrsqrt.f32 %v2739_v22  ;;  %v2876_v26 = vmul.f32 %v4428_v32, %v2875_v48  ;;  %vm2887_vm0 = vweird.f32 %v2739_v22 }
 0x547   : > { %v3498_v3 = vsel %vm3497_vm15, %v4430_v62, %v3494_v39 }
 0x548   : > { %v3503_v63 = vsel %vm3500_vm2, %v3502_v55, %v3498_v3  ;;  %v2880_v49 = vsel %vm2879_vm3, %v4428_v32, %v2876_v26 }
 0x549   : > { %v2708_v14 = vpop.xlane.xlu0 %2707  ;;  %v3504_v2 = vmul.f32 %v3503_v63, %v3479_v43  ;;  %v2914_v51 = vmul.f32 %v2880_v49, %v6804_v38 }
 0x54a   : > { %v2724_v53 = vmul.f32 %v2708_v14, %v5515_v54 }
 0x54b   : > { %v4101_v17 = vclamps-f32 %v3504_v2, 1.0  ;;  %v2933_v54 = vmul.f32 %v6848_v19, %v2914_v51 }
 0x54c   : > { %v3729_v30 = vpop.f32.mrf.mxu0  ;;  %v3794_v18 = vpop.f32.mrf.mxu1  ;;  %v2740_v23 = vadd.f32 1e-05, %v2724_v53 }
 0x54d   : > { %v3730_v56 = vadd.f32 %v3729_v30, %v6956_v47  ;;  %v3795_v59 = vadd.f32 %v3794_v18, %v6961_v24  ;;  %v4432_v52 = vpop.eup %4431  ;;  %v3639_v41 = vadd.f32 1.0, %v4101_v17  ;;  %v7137_v33 = vadd.f32 %v6854_v9, %v2933_v54 }
 0x54e   : > { %v2882_v40 = vmul.f32 %v4432_v52, %v2739_v22  ;;  %4433 = vrsqrt.f32 %v2740_v23  ;;  %vm2888_vm4 = vweird.f32 %v4432_v52  ;;  %vm2897_vm7 = vweird.f32 %v2740_v23 }
 0x54f   : > { %3837 = vst [vmem:[%s7023_s29 + $0x50] sm:$0xff] %v3730_v56  ;;  %v3655_v35 = vmul.f32 %v3639_v41, %v2967_v58  ;;  %v7140_v25 = vmul.f32 0.70710677, %v7137_v33  ;;  %vm2889_vm5 = vmor %vm2887_vm0, %vm2888_vm4 }
 0x550   : > { %3838 = vst [vmem:[%s7023_s29 + $0x58] sm:$0xff] %v3795_v59  ;;  %v2883_v16 = vmul.f32 %v4432_v52, %v2882_v40 }
 0x551   : > { %3749 = vmatmul.f32.gmra.mxu0 %v3655_v35  ;;  %3814 = vmatmul.f32.gmra.mxu1 %v3655_v35  ;;  %v3507_v11 = vmul.f32 %v7140_v25, %v7140_v25 }
 0x552   : > { %v2884_v13 = vmul.f32 0.5, %v2883_v16 }
 0x553   : > { %v3508_v20 = vmin.f32 %v3507_v11, 16.0 }
 0x554   : > { %v2885_v50 = vsub.f32 1.5, %v2884_v13  ;;  %v4434_v38 = vpop.eup %4433 }
 0x555   : > { %v2892_v10 = vmul.f32 %v4434_v38, %v2740_v23  ;;  %v3509_v1 = vmul.f32 2.1237322e-06, %v3508_v20  ;;  %v3520_v37 = vmul.f32 3.8918573e-05, %v3508_v20  ;;  %vm2898_vm6 = vweird.f32 %v4434_v38 }
 0x556   : > { %v2886_v8 = vmul.f32 %v4432_v52, %v2885_v50  ;;  %vm2899_vm8 = vmor %vm2897_vm7, %vm2898_vm6 }
 0x557   : > { %v2893_v0 = vmul.f32 %v4434_v38, %v2892_v10  ;;  %v3510_v62 = vadd.f32 0.00028619796, %v3509_v1  ;;  %v3521_v12 = vadd.f32 0.001143296, %v3520_v37 }
 0x558   : > { %v2890_v32 = vsel %vm2889_vm5, %v4432_v52, %v2886_v8 }
 0x559   : > { %v2915_v34 = vmul.f32 %v2890_v32, %v6819_v44  ;;  %v2894_v45 = vmul.f32 0.5, %v2893_v0  ;;  %v3511_v5 = vmul.f32 %v3510_v62, %v3508_v20  ;;  %v3522_v46 = vmul.f32 %v3521_v12, %v3508_v20 }
 0x55b   : > { %v2934_v57 = vmul.f32 %v6848_v19, %v2915_v34  ;;  %v2895_v31 = vsub.f32 1.5, %v2894_v45  ;;  %v3512_v7 = vadd.f32 0.0036580483, %v3511_v5  ;;  %v3523_v15 = vadd.f32 0.014752088, %v3522_v46 }
 0x55d   : > { %v7147_v6 = vadd.f32 %v6854_v9, %v2934_v57  ;;  %v2896_v61 = vmul.f32 %v4434_v38, %v2895_v31  ;;  %v3524_v42 = vmul.f32 %v3523_v15, %v3508_v20  ;;  %v3513_v27 = vmul.f32 %v3512_v7, %v3508_v20 }
 0x55f   : > { %v7150_v29 = vmul.f32 0.70710677, %v7147_v6  ;;  %v2900_v44 = vsel %vm2899_vm8, %v4434_v38, %v2896_v61  ;;  %v3525_v28 = vadd.f32 0.112945676, %v3524_v42  ;;  %v3514_v3 = vadd.f32 0.05243302, %v3513_v27 }
 0x560   : > { %v2916_v60 = vmul.f32 %v2900_v44, %v6835_v21 }
 0x561   : > { %v3547_v36 = vmul.f32 %v7150_v29, %v7150_v29  ;;  %v3526_v55 = vmul.f32 %v3525_v28, %v3508_v20  ;;  %v3515_v56 = vmul.f32 %v3514_v3, %v3508_v20 }
 0x562   : > { %v2935_v22 = vmul.f32 %v6848_v19, %v2916_v60 }
 0x563   : > { %v7155_v4 = vmin.f32 %v3547_v36, 16.0  ;;  %v3527_v14 = vadd.f32 0.4994258, %v3526_v55  ;;  %v3516_v17 = vadd.f32 0.18741608, %v3515_v56 }
 0x564   : > { %v7161_v26 = vadd.f32 %v6854_v9, %v2935_v22 }
 0x565   : > { %v3549_v48 = vmul.f32 2.1237322e-06, %v7155_v4  ;;  %v3560_v39 = vmul.f32 3.8918573e-05, %v7155_v4  ;;  %v3528_v63 = vmul.f32 %v3527_v14, %v3508_v20  ;;  %v3517_v50 = vmul.f32 %v3516_v17, %v3508_v20 }
 0x566   : > { %v7164_v30 = vmul.f32 0.70710677, %v7161_v26 }
 0x567   : > { %v3550_v43 = vadd.f32 0.00028619796, %v3549_v48  ;;  %v3561_v21 = vadd.f32 0.001143296, %v3560_v39  ;;  %v3529_v9 = vadd.f32 1.0, %v3528_v63 }
 0x568   : > { %v3587_v49 = vmul.f32 %v7164_v30, %v7164_v30  ;;  %v3518_v37 = vadd.f32 1.1283791, %v3517_v50 }
 0x569   : > { %v3551_v18 = vmul.f32 %v3550_v43, %v7155_v4  ;;  %v3562_v19 = vmul.f32 %v3561_v21, %v7155_v4  ;;  %4435 = vrcp.f32 %v3529_v9  ;;  %v3541_v57 = vand.u32 2147483648, %v3529_v9 }
 0x56a   : > { %v7170_v2 = vmin.f32 %v3587_v49, 16.0  ;;  %v3539_v20 = vand.u32 2147483647, %v3529_v9  ;;  %vm3535_vm10 = vweird.f32 %v3529_v9  ;;  %v3519_v15 = vmul.f32 %v3518_v37, %v7140_v25 }
 0x56b   : > { %v3563_v53 = vadd.f32 0.014752088, %v3562_v19  ;;  %v3552_v59 = vadd.f32 0.0036580483, %v3551_v18  ;;  %v3542_v44 = vor.u32 1.1754944e-38, %v3541_v57  ;;  %v2968_v19 = vmul.f32 0.5, %v7137_v33 }
 0x56c   : > { %v3589_v51 = vmul.f32 2.1237322e-06, %v7170_v2  ;;  %v3600_v58 = vmul.f32 3.8918573e-05, %v7170_v2  ;;  %vm3540_vm12 = vcmp.eq.f32.partialorder %v3539_v20, 8.507059e+37 }
 0x56d   : > { %v3564_v52 = vmul.f32 %v3563_v53, %v7155_v4  ;;  %v3553_v40 = vmul.f32 %v3552_v59, %v7155_v4 }
 0x56e   : > { %v3590_v16 = vadd.f32 0.00028619796, %v3589_v51  ;;  %v3601_v54 = vadd.f32 0.001143296, %v3600_v58 }
 0x56f   : > { %v3565_v23 = vadd.f32 0.112945676, %v3564_v52  ;;  %v4436_v13 = vpop.eup %4435  ;;  %v3554_v38 = vadd.f32 0.05243302, %v3553_v40 }
 0x570   : > { %v3591_v8 = vmul.f32 %v3590_v16, %v7170_v2  ;;  %v3602_v10 = vmul.f32 %v3601_v54, %v7170_v2  ;;  %v3531_v11 = vmul.f32 %v4436_v13, %v3529_v9  ;;  %vm3536_vm9 = vweird.f32 %v4436_v13 }
 0x571   : > { %v3566_v41 = vmul.f32 %v3565_v23, %v7155_v4  ;;  %v3555_v31 = vmul.f32 %v3554_v38, %v7155_v4  ;;  %vm3537_vm11 = vmor %vm3535_vm10, %vm3536_vm9  ;;  %v2969_v38 = vmul.f32 0.5, %v7147_v6 }
 0x572   : > { %v3592_v0 = vadd.f32 0.0036580483, %v3591_v8  ;;  %v3603_v34 = vadd.f32 0.014752088, %v3602_v10  ;;  %v3532_v45 = vsub.f32 1.0, %v3531_v11 }
 0x573   : > { %v3567_v35 = vadd.f32 0.4994258, %v3566_v41  ;;  %v3556_v7 = vadd.f32 0.18741608, %v3555_v31 }
 0x574   : > { %v3604_v62 = vmul.f32 %v3603_v34, %v7170_v2  ;;  %v3533_v12 = vmul.f32 %v4436_v13, %v3532_v45  ;;  %v3593_v61 = vmul.f32 %v3592_v0, %v7170_v2 }
 0x575   : > { %v3568_v32 = vmul.f32 %v3567_v35, %v7155_v4  ;;  %v3557_v3 = vmul.f32 %v3556_v7, %v7155_v4 }
 0x576   : > { %v3534_v5 = vadd.f32 %v4436_v13, %v3533_v12  ;;  %v3605_v46 = vadd.f32 0.112945676, %v3604_v62  ;;  %v3594_v28 = vadd.f32 0.05243302, %v3593_v61 }
 0x577   : > { %v3569_v1 = vadd.f32 1.0, %v3568_v32  ;;  %v3558_v59 = vadd.f32 1.1283791, %v3557_v3 }
 0x578   : > { %v3538_v60 = vsel %vm3537_vm11, %v4436_v13, %v3534_v5  ;;  %v3606_v36 = vmul.f32 %v3605_v46, %v7170_v2  ;;  %v3595_v56 = vmul.f32 %v3594_v28, %v7170_v2  ;;  %v2970_v5 = vmul.f32 0.5, %v7161_v26 }
 0x579   : > { %4437 = vrcp.f32 %v3569_v1  ;;  %v3543_v27 = vsel %vm3540_vm12, %v3542_v44, %v3538_v60  ;;  %v3581_v53 = vand.u32 2147483648, %v3569_v1  ;;  %v3579_v23 = vand.u32 2147483647, %v3569_v1 }
 0x57a   : > { %v3544_v43 = vmul.f32 %v3543_v27, %v3519_v15  ;;  %v3607_v21 = vadd.f32 0.4994258, %v3606_v36  ;;  %vm3575_vm14 = vweird.f32 %v3569_v1  ;;  %v3596_v51 = vadd.f32 0.18741608, %v3595_v56 }
 0x57b   : > { %v3582_v40 = vor.u32 1.1754944e-38, %v3581_v53  ;;  %v3559_v33 = vmul.f32 %v3558_v59, %v7150_v29  ;;  %vm3580_vm1 = vcmp.eq.f32.partialorder %v3579_v23, 8.507059e+37 }
 0x57c   : > { %v4102_v25 = vclamps-f32 %v3544_v43, 1.0  ;;  %v3608_v18 = vmul.f32 %v3607_v21, %v7170_v2  ;;  %v3597_v35 = vmul.f32 %v3596_v51, %v7170_v2 }
 0x57d   : > { %v3732_v42 = vpop.f32.mrf.mxu0  ;;  %v3797_v22 = vpop.f32.mrf.mxu1 }
 0x57e   : > { %v3733_v39 = vadd.f32 %v3732_v42, %v6956_v47  ;;  %v3798_v55 = vadd.f32 %v3797_v22, %v6961_v24  ;;  %v3640_v49 = vadd.f32 1.0, %v4102_v25  ;;  %v3609_v9 = vadd.f32 1.0, %v3608_v18 }
 0x57f   : > { %v4438_v48 = vpop.eup %4437  ;;  %v3598_v11 = vadd.f32 1.1283791, %v3597_v35 }
 0x580   : > { %v3571_v14 = vmul.f32 %v4438_v48, %v3569_v1  ;;  %3839 = vst [vmem:[%s7023_s29 + $0x60] sm:$0xff] %v3733_v39  ;;  %vm3576_vm13 = vweird.f32 %v4438_v48  ;;  %v3656_v17 = vmul.f32 %v3640_v49, %v2968_v19  ;;  %4439 = vrcp.f32 %v3609_v9 }
 0x581   : > { %3840 = vst [vmem:[%s7023_s29 + $0x68] sm:$0xff] %v3798_v55  ;;  %vm3577_vm15 = vmor %vm3575_vm14, %vm3576_vm13  ;;  %v3621_v32 = vand.u32 2147483648, %v3609_v9  ;;  %v3619_v29 = vand.u32 2147483647, %v3609_v9  ;;  %vm3615_vm3 = vweird.f32 %v3609_v9  ;;  %v3599_v31 = vmul.f32 %v3598_v11, %v7164_v30 }
 0x582   : > { %v3572_v63 = vsub.f32 1.0, %v3571_v14  ;;  %3752 = vmatmul.f32.gmra.mxu0 %v3656_v17  ;;  %3817 = vmatmul.f32.gmra.mxu1 %v3656_v17 }
 0x583   : > { %v3622_v6 = vor.u32 1.1754944e-38, %v3621_v32  ;;  %vm3620_vm0 = vcmp.eq.f32.partialorder %v3619_v29, 8.507059e+37 }
 0x584   : > { %v3573_v52 = vmul.f32 %v4438_v48, %v3572_v63 }
 0x586   : > { %v3574_v4 = vadd.f32 %v4438_v48, %v3573_v52  ;;  %v4440_v54 = vpop.eup %4439 }
 0x587   : > { %v3611_v50 = vmul.f32 %v4440_v54, %v3609_v9  ;;  %vm3616_vm2 = vweird.f32 %v4440_v54 }
 0x588   : > { %v3578_v58 = vsel %vm3577_vm15, %v4438_v48, %v3574_v4  ;;  %vm3617_vm4 = vmor %vm3615_vm3, %vm3616_vm2 }
 0x589   : > { %v3583_v41 = vsel %vm3580_vm1, %v3582_v40, %v3578_v58  ;;  %v3612_v10 = vsub.f32 1.0, %v3611_v50 }
 0x58a   : > { %v3584_v16 = vmul.f32 %v3583_v41, %v3559_v33 }
 0x58b   : > { %v3613_v34 = vmul.f32 %v4440_v54, %v3612_v10 }
 0x58c   : > { %v4103_v13 = vclamps-f32 %v3584_v16, 1.0 }
 0x58d   : > { %v3735_v45 = vpop.f32.mrf.mxu0  ;;  %v3800_v1 = vpop.f32.mrf.mxu1  ;;  %v3614_v57 = vadd.f32 %v4440_v54, %v3613_v34 }
 0x58e   : > { %v3641_v8 = vadd.f32 1.0, %v4103_v13  ;;  %v3736_v37 = vadd.f32 %v3735_v45, %v6956_v47  ;;  %v3801_v2 = vadd.f32 %v3800_v1, %v6961_v24 }
 0x58f   : > { %v3618_v62 = vsel %vm3617_vm4, %v4440_v54, %v3614_v57 }
 0x590   : > { %v3657_v0 = vmul.f32 %v3641_v8, %v2969_v38  ;;  %3841 = vst [vmem:[%s7023_s29 + $0x70] sm:$0xff] %v3736_v37  ;;  %v3623_v12 = vsel %vm3620_vm0, %v3622_v6, %v3618_v62 }
 0x591   : > { %3842 = vst [vmem:[%s7023_s29 + $0x78] sm:$0xff] %v3801_v2  ;;  %v3624_v20 = vmul.f32 %v3623_v12, %v3599_v31 }
 0x592   : > { %3755 = vmatmul.f32.gmra.mxu0 %v3657_v0  ;;  %3820 = vmatmul.f32.gmra.mxu1 %v3657_v0 }
 0x593   : > { %v4104_v61 = vclamps-f32 %v3624_v20, 1.0 }
 0x595   : > { %v3642_v46 = vadd.f32 1.0, %v4104_v61 }
 0x597   : > { %v3658_v44 = vmul.f32 %v3642_v46, %v2970_v5 }
 0x598   : > { %v3738_v7 = vpop.f32.mrf.mxu0  ;;  %v3803_v15 = vpop.f32.mrf.mxu1 }
 0x599   : > { %v3739_v60 = vadd.f32 %v3738_v7, %v6956_v47  ;;  %v3804_v30 = vadd.f32 %v3803_v15, %v6961_v24 }
 0x59a   : > { %3758 = vmatmul.f32.gmra.mxu0 %v3658_v44  ;;  %3823 = vmatmul.f32.gmra.mxu1 %v3658_v44 }
 0x59b   : > { %3843 = vst [vmem:[%s7023_s29 + $0x80] sm:$0xff] %v3739_v60 }
 0x59c   : > { %3844 = vst [vmem:[%s7023_s29 + $0x88] sm:$0xff] %v3804_v30 }
 0x5a8   : > { %v3741_v36 = vpop.f32.mrf.mxu0  ;;  %v3806_v42 = vpop.f32.mrf.mxu1 }
 0x5a9   : > { %v3742_v26 = vadd.f32 %v3741_v36, %v6956_v47  ;;  %v3807_v22 = vadd.f32 %v3806_v42, %v6961_v24 }
 0x5ab   : > { %3845 = vst [vmem:[%s7023_s29 + $0x90] sm:$0xff] %v3742_v26 }
 0x5ac   : > { %3846 = vst [vmem:[%s7023_s29 + $0x98] sm:$0xff] %v3807_v22 }
 0x5b2   : > { %v3744_v27 = vpop.f32.mrf.mxu0  ;;  %v3809_v28 = vpop.f32.mrf.mxu1 }
 0x5b3   : > { %v3745_v48 = vadd.f32 %v3744_v27, %v6956_v47  ;;  %v3810_v39 = vadd.f32 %v3809_v28, %v6961_v24 }
 0x5b5   : > { %3847 = vst [vmem:[%s7023_s29 + $0xa0] sm:$0xff] %v3745_v48 }
 0x5b6   : > { %3848 = vst [vmem:[%s7023_s29 + $0xa8] sm:$0xff] %v3810_v39 }
 0x5bb   : > { %v3747_v55 = vpop.f32.mrf.mxu0  ;;  %v3812_v43 = vpop.f32.mrf.mxu1 }
 0x5bc   : > { %v3748_v21 = vadd.f32 %v3747_v55, %v6956_v47  ;;  %v3813_v3 = vadd.f32 %v3812_v43, %v6961_v24 }
 0x5be   : > { %3849 = vst [vmem:[%s7023_s29 + $0xb0] sm:$0xff] %v3748_v21 }
 0x5bf   : > { %3850 = vst [vmem:[%s7023_s29 + $0xb8] sm:$0xff] %v3813_v3 }
 0x5ce   : > { %v3750_v14 = vpop.f32.mrf.mxu0  ;;  %v3815_v25 = vpop.f32.mrf.mxu1 }
 0x5cf   : > { %v3751_v18 = vadd.f32 %v3750_v14, %v6956_v47  ;;  %v3816_v19 = vadd.f32 %v3815_v25, %v6961_v24 }
 0x5d1   : > { %3851 = vst [vmem:[%s7023_s29 + $0xc0] sm:$0xff] %v3751_v18 }
 0x5d2   : > { %3852 = vst [vmem:[%s7023_s29 + $0xc8] sm:$0xff] %v3816_v19 }
 0x5ff   : > { %v3753_v63 = vpop.f32.mrf.mxu0  ;;  %v3818_v49 = vpop.f32.mrf.mxu1 }
 0x600   : > { %v3754_v53 = vadd.f32 %v3753_v63, %v6956_v47  ;;  %v3819_v56 = vadd.f32 %v3818_v49, %v6961_v24 }
 0x602   : > { %3853 = vst [vmem:[%s7023_s29 + $0xd0] sm:$0xff] %v3754_v53 }
 0x603   : > { %3854 = vst [vmem:[%s7023_s29 + $0xd8] sm:$0xff] %v3819_v56 }
 0x60f   : > { %v3756_v9 = vpop.f32.mrf.mxu0  ;;  %v3821_v59 = vpop.f32.mrf.mxu1 }
 0x610   : > { %v3757_v52 = vadd.f32 %v3756_v9, %v6956_v47  ;;  %v3822_v23 = vadd.f32 %v3821_v59, %v6961_v24 }
 0x612   : > { %3855 = vst [vmem:[%s7023_s29 + $0xe0] sm:$0xff] %v3757_v52 }
 0x613   : > { %3856 = vst [vmem:[%s7023_s29 + $0xe8] sm:$0xff] %v3822_v23 }
 0x617   : > { %v3759_v17 = vpop.f32.mrf.mxu0  ;;  %v3824_v4 = vpop.f32.mrf.mxu1  ;;  %3866 = sbr.rel (!%p4773_p11) target bundleno = 1596 (0x63c), region = 96 }
 0x618   : > { %v3760_v40 = vadd.f32 %v3759_v17, %v6956_v47  ;;  %v3825_v51 = vadd.f32 %v3824_v4, %v6961_v24 }
 0x61a   : > { %3857 = vst [vmem:[%s7023_s29 + $0xf0] sm:$0xff] %v3760_v40 }
 0x61b   : > { %3858 = vst [vmem:[%s7023_s29 + $0xf8] sm:$0xff] %v3825_v51 }
 0x61c   : > { %s7447_s28 = smov (!%p3869_p6, %s3868_s28), 16 }
 0x61d   : > { %s4127_s15 = sshll.u32 %s7447_s28, 4 }
 0x61e   : > { %s3873_s26 = ssub.s32 256, %s4127_s15 }
 0x61f   : > { %s3874_s18 = sshll.u32 %s3873_s26, 4 }
 0x620   : > { %3875 = vsyncadd %s7325_s23, %s3874_s18  ;;  %p7243_p2 = scmp.ne.s32.totalorder %s4127_s15, 0  ;;  %s4129_s5 = sshll.u32 %s4742_s22, 8 }
 0x621   : > { %s7432_s30 = sld [smem:[#allocation22_spill]]  ;;  %s3881_s17 = sshll.u32 %s7023_s29, 4  ;;  %s7252_s17 = int_to_ptr.vmem [resolvable:$true] %s3881_s17 }
 0x622   : > { %s7324_s27 = sshll.u32 %s7447_s28, 8  ;;  %s4544_s26 = sshra.s32 %s7252_s17, 4  ;;  %s4545_s26 = int_to_ptr.vmem [resolvable:$true] %s4544_s26 }
 0x623   : > { %s4546_s15 = sshrl.u32 %s7324_s27, 4  ;;  %s4638_s22 = smov [#allocation8]  }
 0x624   : > { %s4551_s18 = scalar_lea.vmem %s4545_s26, %s4546_s15  ;;  %s4555_s13 = scalar_lea.vmem %s4638_s22, 512 }
 0x625   : > { %p4552_p11 = scmp.ne.s32.totalorder %s4545_s26, %s4551_s18  ;;  %p4557_p10 = scmp.lt.s32.totalorder %s4555_s13, %s4551_s18 }
 0x627   : > { %s3879_s12 = scalar_lea.hbm %s7432_s30, %s4129_s5  ;;  %p4553_p5 = pnand %p4552_p11, %p7243_p2 }
 0x628   : > { %s3883_s14 = sshll.u32 %s3879_s12, 4  ;;  %s7254_s14 = int_to_ptr.hbm [resolvable:$true] %s3883_s14 }
 0x629   : > { %p4554_p9 = pneg %p4553_p5 }
 0x62b   : > { %p4559_p1 = pnand %p4557_p10, %p4554_p9 }
 0x62d   : > { %4562 = shalt.err (!%p4559_p1)
}
 0x62e   : > { %s4563_s29 = sshra.s32 %s7254_s14, 4  ;;  %s4574_s26 = scalar_lea.hbm %s7432_s30, 400  ;;  %s4564_s29 = int_to_ptr.hbm [resolvable:$true] %s4563_s29 }
 0x62f   : > { %s4570_s5 = scalar_lea.hbm %s4564_s29, %s4546_s15  ;;  %p4575_p8 = scmp.lt.s32.totalorder %s4564_s29, %s7432_s30 }
 0x630   : > { %p4571_p0 = scmp.ne.s32.totalorder %s4564_s29, %s4570_s5  ;;  %p4576_p4 = scmp.lt.s32.totalorder %s4574_s26, %s4570_s5 }
 0x632   : > { %p4572_p3 = pnand %p4571_p0, %p7243_p2  ;;  %p4577_p12 = por %p4576_p4, %p4575_p8 }
 0x634   : > { %p4573_p7 = pneg %p4572_p3 }
 0x636   : > { %p4578_p13 = pnand %p4577_p12, %p4573_p7 }
 0x638   : > { %4581 = shalt.err (!%p4578_p13)
}
 0x639   : > { %s4639_s18 = smov 256   ;;  %s4640_s15 = smov 16  }
 0x63a   : > { %s7433_s22 = scalar_lea.sflag [#allocation4], %s4848_s20  ;;  %s7434_s13 = sshll.u32 %s7447_s28, 8 }
 0x63b   : > { %3889 = dma.vmem_to_hbm [thread:$0]  (%p7243_p2), %s7252_s17, %s7434_s13, %s7254_s14, %s7433_s22, %s4639_s18, %s4639_s18, %s4640_s15  }
 0x63c PF: > { %s7435_s24 = sld [smem:[#allocation12_spill]]  ;;  %p7438_p11 = scmp.ge.s32.totalorder %s4625_s21, 2 }
 0x63d   : > { %s7436_s23 = sld [smem:[#allocation17_spill]] }
 0x642   : > { %s3898_s27 = sand.u32 1, %s7435_s24  }
 0x643   : > { %p7437_p6 = scmp.ne.s32.totalorder %s7436_s23, 0  ;;  %s3899_s29 = scalar_lea.sflag [#allocation4], %s3898_s27 }
 0x645   : > { %p4184_p5 = pnand %p7438_p11, %p7437_p6 }
 0x647   : > { %p4185_p9 = pneg %p4184_p5 }
 0x649   : > { %4608 = dma.done.wait (%p4185_p9), %s3899_s29, 4096  }
 0x64a   : > { %4610 = vsyncadd (%p4185_p9), %s3899_s29, 4294963200  ;;  %s7439_s21 = sld [smem:[#allocation14_spill]]  ;;  %s7442_s18 = smov %s4617_s19 }
 0x64b   : > { %s7440_s5 = sld [smem:[#allocation13_spill]] }
 0x64c   : > { %s7441_s20 = sld [smem:[#allocation15_spill]] }
 0x650   : > { %p29_p10 = scmp.ge.s32.totalorder %s7439_s21, 4  }
 0x651   : > { %s7443_s19 = smov %s7440_s5 }
 0x652   :  { %31 = sbr.rel (!%p29_p10) target bundleno = 12 (0xc), region = 136 }
 0x657   :  { %3905 = vsyncpa [#allocation3], 1 }
 0x658   :  { %3907 = vsyncpa [#allocation3 + $0x1], 1 }
 0x659   :  { %3908 = vsyncpa [#allocation6], 1 }
 0x65a   :  { %3909 = vsyncpa [#allocation4], 1 }
 0x65b   :  { %3911 = vsyncpa [#allocation4 + $0x1], 1 }

</bundles_post_ra>
